<compile_context>
chip_gen: v6e
topology: v6e:2x2x1
jax: 0.10.0
libtpu: 0.0.40
codegen_flags: <defaults>
</compile_context>

<pallas_src>
import functools

import jax
import jax.numpy as jnp
import numpy as np
from jax import lax
from jax.experimental import pallas as pl
from jax.experimental.pallas import tpu as pltpu

# ----------------------------------------------------------------------------
# Small synthetic WaveRNN hyper-parameters
# ----------------------------------------------------------------------------
N_FREQ = 32                      # n_mels
N_HIDDEN = 32                    # MelResNet hidden channels
N_OUTPUT = 32                    # MelResNet / aux channels
N_AUX = N_OUTPUT // 4            # 8
N_RNN = 64
N_FC = 64
N_CLASSES = 256
N_BITS = 8                       # log2(n_classes)
KERNEL_SIZE = 5
N_RES_BLOCK = 2
UPSAMPLE_SCALES = (2, 2)
TOTAL_SCALE = int(np.prod(UPSAMPLE_SCALES))   # == hop_length
CHUNK = 128                      # lane-dense output flush width


# ----------------------------------------------------------------------------
# Host-side construction of the fused upsample FIR matrix and aux repeat matrix
# (Stretch2d(s) + 'same' box Conv2d composed for all scales == one linear map)
# ----------------------------------------------------------------------------
def _build_upsample_matrices(t_frames, t_res):
    m = np.eye(t_frames, dtype=np.float64)
    length = t_frames
    total = 1
    for s in UPSAMPLE_SCALES:
        rep_mat = np.zeros((length, length * s), dtype=np.float64)   # Stretch2d
        for i in range(length):
            rep_mat[i, i * s:(i + 1) * s] = 1.0
        length *= s
        conv = np.zeros((length, length), dtype=np.float64)          # box conv, zero pad
        for o in range(length):
            conv[max(0, o - s):min(length, o + s + 1), o] = 1.0 / (2 * s + 1)
        m = m @ rep_mat @ conv
        total *= s
    indent = (KERNEL_SIZE - 1) // 2 * total
    m = m[:, indent:length - indent]                                  # (T, S)
    seq_len = length - 2 * indent
    rep = np.zeros((seq_len, t_res), dtype=np.float64)                # aux repeat
    for q in range(t_res):
        rep[q * total:(q + 1) * total, q] = 1.0
    return jnp.asarray(m.T, jnp.float32), jnp.asarray(rep, jnp.float32)


# ----------------------------------------------------------------------------
# Pallas kernel 1: fused conditioning
#   MelResNet (BN folded) + upsample-as-matmul + hoisted AR projections
# ----------------------------------------------------------------------------
def _conditioning_kernel(x_ref, mt_ref, rep_ref,
                         w5_ref, b0_ref, rw1_ref, rb1_ref, rw2_ref, rb2_ref,
                         wo_ref, bo_ref,
                         fcm_ref, fca_ref, fcb_ref, g2wa_ref,
                         f1a_ref, f1b_ref, f2a_ref, f2b_ref,
                         o_xf_ref, o_g2_ref, o_f1_ref, o_f2_ref):
    B, T, _ = x_ref.shape
    K = w5_ref.shape[0]
    T_res = T - (K - 1)

    mt = mt_ref[...]                       # (S, T)   fused stretch+box FIR (transposed)
    rep = rep_ref[...]                     # (S, T_res) aux repeat matrix

    def mm(a, b):
        return jnp.dot(a, b, preferred_element_type=jnp.float32)

    # B (n_folds) is small & static: one grid step, static unrolled loop (no
    # per-fold launch / pipeline overhead).
    for b in range(B):
        x = x_ref[b]                                            # (T, N_FREQ)

        # --- MelResNet: k=5 valid conv as K shifted matmuls (BN scale folded) ---
        acc = jnp.zeros((T_res, w5_ref.shape[2]), jnp.float32)
        for k in range(K):
            acc = acc + mm(x[k:k + T_res, :], w5_ref[k])
        h = jnp.maximum(acc + b0_ref[...], 0.0)
        for r in range(rw1_ref.shape[0]):                       # ResBlocks (1x1 convs)
            y = jnp.maximum(mm(h, rw1_ref[r]) + rb1_ref[r], 0.0)
            y = mm(y, rw2_ref[r]) + rb2_ref[r]
            h = h + y
        res = mm(h, wo_ref[...]) + bo_ref[...]                  # (T_res, N_OUTPUT)

        # --- fused upsample chain + aux repeat, produced time-major ---
        cond = mm(mt, x)                                        # (S, N_FREQ)
        aux = mm(rep, res)                                      # (S, 4*N_AUX)

        # --- hoisted recurrence-independent projections for the AR loop ---
        a1 = aux[:, 0 * N_AUX:1 * N_AUX]
        a2 = aux[:, 1 * N_AUX:2 * N_AUX]
        a3 = aux[:, 2 * N_AUX:3 * N_AUX]
        a4 = aux[:, 3 * N_AUX:4 * N_AUX]
        o_xf_ref[b] = mm(cond, fcm_ref[...]) + mm(a1, fca_ref[...]) + fcb_ref[...]
        o_g2_ref[b] = mm(a2, g2wa_ref[...])
        o_f1_ref[b] = mm(a3, f1a_ref[...]) + f1b_ref[...]
        o_f2_ref[b] = mm(a4, f2a_ref[...]) + f2b_ref[...]


def conditioning(x_tc, q, mt, rep):
    """x_tc: (B, T, N_FREQ) channels-last folded spec.  Returns the four
    precomputed per-step conditioning tensors, each (B, S, N)."""
    B = x_tc.shape[0]
    S = mt.shape[0]
    return pl.pallas_call(
        _conditioning_kernel,
        out_shape=(
            jax.ShapeDtypeStruct((B, S, N_RNN), jnp.float32),
            jax.ShapeDtypeStruct((B, S, 3 * N_RNN), jnp.float32),
            jax.ShapeDtypeStruct((B, S, N_FC), jnp.float32),
            jax.ShapeDtypeStruct((B, S, N_FC), jnp.float32),
        ),
    )(x_tc, mt, rep,
      q['w5'], q['b0'], q['rw1'], q['rb1'], q['rw2'], q['rb2'],
      q['out_w'], q['out_b'],
      q['fc_m'], q['fc_a'], q['fc_b'], q['g2_wiha'],
      q['fc1_a'], q['fc1_b'], q['fc2_a'], q['fc2_b'])


# ----------------------------------------------------------------------------
# Pallas kernel 2: autoregressive WaveRNN sampling loop (fused-GRU formulation)
# ----------------------------------------------------------------------------
def _wavernn_ar_kernel(pre_xf_ref, pre_g2_ref, pre_f1_ref, pre_f2_ref, gum_ref,
                       fc_x_ref, g1_w_ref, g1_b_ref, g2_w_ref, g2_b_ref,
                       fc1_x_ref, fc2_x_ref, fc3_w_ref,
                       out_ref, buf_ref):
    _, S, Bg, _ = pre_xf_ref.shape
    H = N_RNN

    # Hoist weights, bias broadcasts and the class iota out of the serial loop
    # (JAX does not CSE broadcast_in_dim; keep the loop body lean).
    g1_w = g1_w_ref[...]
    g2_w = g2_w_ref[...]
    fc1_x = fc1_x_ref[...]
    fc2_x = fc2_x_ref[...]
    fc3_w = fc3_w_ref[...]
    fc_x_b = jnp.broadcast_to(fc_x_ref[...], (Bg, H))
    g1_b_b = jnp.broadcast_to(g1_b_ref[...], (Bg, 4 * H))
    g2_b_b = jnp.broadcast_to(g2_b_ref[...], (Bg, 4 * H))
    class_iota = lax.broadcasted_iota(jnp.float32, (Bg, N_CLASSES), 1)

    out_ref[...] = jnp.zeros(out_ref.shape, out_ref.dtype)
    buf_ref[...] = jnp.zeros(buf_ref.shape, buf_ref.dtype)

    def mm(a, b):
        return jnp.dot(a, b, preferred_element_type=jnp.float32)

    def gru_fused(x_in, h, w, b_b, pre=None):
        # w columns: [r_sum(H) | z_sum(H) | n_input(H) | n_hidden(H)]
        g = mm(jnp.concatenate([x_in, h], axis=1), w) + b_b
        gi_r, gi_z = g[:, :H], g[:, H:2 * H]
        gi_n, gh_n = g[:, 2 * H:3 * H], g[:, 3 * H:]
        if pre is not None:                       # hoisted a2 @ W_iha term (gate order r,z,n)
            gi_r = gi_r + pre[:, :H]
            gi_z = gi_z + pre[:, H:2 * H]
            gi_n = gi_n + pre[:, 2 * H:]
        r = jax.nn.sigmoid(gi_r)
        z = jax.nn.sigmoid(gi_z)
        n = jnp.tanh(gi_n + r * gh_n)
        return (1.0 - z) * n + z * h

    def step(t, carry):
        x, h1, h2 = carry
        xf = x * fc_x_b + pre_xf_ref[0, t]                     # fc(cat[x, mel, a1]) (hoisted part)
        h1 = gru_fused(xf, h1, g1_w, g1_b_b)
        x2 = xf + h1
        h2 = gru_fused(x2, h2, g2_w, g2_b_b, pre=pre_g2_ref[0, t])
        x3 = x2 + h2
        f1 = jnp.maximum(mm(x3, fc1_x) + pre_f1_ref[0, t], 0.0)
        f2 = jnp.maximum(mm(f1, fc2_x) + pre_f2_ref[0, t], 0.0)

        # multinomial(softmax(logits)) via Gumbel-max; noise (+ fc3 bias) precomputed.
        gl = mm(f2, fc3_w) + gum_ref[0, t]                     # (Bg, N_CLASSES)
        gmax = jnp.max(gl, axis=1, keepdims=True)
        idx = jnp.min(jnp.where(gl >= gmax, class_iota, float(N_CLASSES)),
                      axis=1, keepdims=True)                   # min-index tie-break
        x_new = 2.0 * idx / (2.0 ** N_BITS - 1.0) - 1.0        # normalized sample

        # Lane-dense output: buffer samples and flush 128-wide chunks.
        c = t // CHUNK
        lane = t - c * CHUNK
        buf_ref[:, pl.ds(lane, 1)] = x_new

        @pl.when(jnp.logical_or(lane == CHUNK - 1, t == S - 1))
        def _flush():
            out_ref[0, :, pl.ds(c * CHUNK, CHUNK)] = buf_ref[...]

        return (x_new, h1, h2)

    init = (jnp.zeros((Bg, 1), jnp.float32),
            jnp.zeros((Bg, H), jnp.float32),
            jnp.zeros((Bg, H), jnp.float32))
    # unroll=2: lets the scheduler overlap step t+1's sampling (EUP/VPU/XLU)
    # with step t's serial MXU chain.
    lax.fori_loop(0, S, step, init, unroll=2)


def wavernn_ar_sample(pre_xf, pre_g2, pre_f1, pre_f2, gum, q, num_core_groups=1):
    # pre_*: (B, S, N) from the conditioning kernel; gum noise made here by caller
    # is already (G, S, Bg, N_CLASSES).
    B, S, _ = pre_xf.shape
    G = num_core_groups if (num_core_groups >= 1 and B % num_core_groups == 0) else 1
    Bg = B // G
    S_pad = ((S + CHUNK - 1) // CHUNK) * CHUNK

    def to_groups(a):
        # (B, S, N) -> (G, S, Bg, N); fold b maps to (g, i) with b = g*Bg + i.
        n = a.shape[-1]
        return jnp.transpose(a.reshape(G, Bg, S, n), (0, 2, 1, 3))

    pre_xf_g, pre_g2_g, pre_f1_g, pre_f2_g = map(to_groups, (pre_xf, pre_g2, pre_f1, pre_f2))

    def t_spec(n):
        return pl.BlockSpec((1, S, Bg, n), lambda g: (g, 0, 0, 0))

    def w_spec(shape):
        nd = len(shape)
        return pl.BlockSpec(tuple(shape), lambda g, _nd=nd: (0,) * _nd)

    weights = [q['fc_x'], q['g1_W'], q['g1_b'], q['g2_W'], q['g2_b'],
               q['fc1_x'], q['fc2_x'], q['fc3_w']]
    in_specs = ([t_spec(N_RNN), t_spec(3 * N_RNN), t_spec(N_FC), t_spec(N_FC),
                 t_spec(N_CLASSES)]
                + [w_spec(w.shape) for w in weights])

    out = pl.pallas_call(
        _wavernn_ar_kernel,
        out_shape=jax.ShapeDtypeStruct((G, Bg, S_pad), jnp.float32),
        grid=(G,),
        in_specs=in_specs,
        out_specs=pl.BlockSpec((1, Bg, S_pad), lambda g: (g, 0, 0)),
        scratch_shapes=[pltpu.VMEM((Bg, CHUNK), jnp.float32)],
        compiler_params=pltpu.CompilerParams(
            dimension_semantics=("parallel",)),   # fold groups split across TCs on v7x
    )(pre_xf_g, pre_g2_g, pre_f1_g, pre_f2_g, gum, *weights)

    return out.reshape(B, S_pad)[:, :S]


def _default_core_groups(n_folds):
    """Use both TensorCores on v7x by splitting independent fold chains;
    on 1-TC chips (v5e/v6e, or CPU interpret) keep a single batched group."""
    try:
        kind = jax.devices()[0].device_kind.lower()
    except Exception:
        return 1
    if "v7" in kind and n_folds >= 2 and n_folds % 2 == 0:
        return 2
    return 1


# ----------------------------------------------------------------------------
# WaveRNN.infer glue
# ----------------------------------------------------------------------------
def wavernn_infer(folded_spec, q, key):
    """folded_spec: (n_folds, n_mels, fold_len) padded + folded spectrogram.
    Returns normalized waveform (n_folds, 1, seq_len) in [-1, 1]."""
    B, _, T = folded_spec.shape
    T_res = T - (KERNEL_SIZE - 1)
    mt, rep = _build_upsample_matrices(T, T_res)
    S = mt.shape[0]

    x_tc = jnp.transpose(folded_spec, (0, 2, 1))                 # (B, T, F)
    pre_xf, pre_g2, pre_f1, pre_f2 = conditioning(x_tc, q, mt, rep)

    G = _default_core_groups(B)
    G = G if B % G == 0 else 1
    Bg = B // G
    # Gumbel noise for multinomial sampling (fc3 bias folded in).
    u = jax.random.uniform(key, (G, S, Bg, N_CLASSES), jnp.float32,
                           minval=1e-7, maxval=1.0 - 1e-7)
    gum = -jnp.log(-jnp.log(u)) + q['fc3_b']

    wav = wavernn_ar_sample(pre_xf, pre_g2, pre_f1, pre_f2, gum, q,
                            num_core_groups=G)                   # (B, S)
    return wav[:, None, :]


# ----------------------------------------------------------------------------
# Wrapper helpers (exact ports of the PyTorch wrapper methods)
# ----------------------------------------------------------------------------
def _pad_tensor(x, pad, side='both'):
    if side == 'both':
        return jnp.pad(x, ((0, 0), (0, 0), (pad, pad)))
    if side == 'before':
        return jnp.pad(x, ((0, 0), (0, 0), (pad, 0)))
    if side == 'after':
        return jnp.pad(x, ((0, 0), (0, 0), (0, pad)))
    raise ValueError(f"Unexpected side: '{side}'")


def _fold_with_overlap(x, timesteps, overlap):
    _, channels, total_len = x.shape
    n_folds = (total_len - overlap) // (timesteps + overlap)
    extended_len = n_folds * (overlap + timesteps) + overlap
    remaining = total_len - extended_len
    if remaining != 0:
        n_folds += 1
        padding = timesteps + 2 * overlap - remaining
        x = _pad_tensor(x, padding, side='after')
    folds = []
    for i in range(n_folds):
        start = i * (timesteps + overlap)
        folds.append(x[0, :, start:start + timesteps + 2 * overlap])
    return jnp.stack(folds, axis=0)


def _xfade_and_unfold(y, overlap):
    num_folds, channels, length = y.shape
    timesteps = length - 2 * overlap
    total_len = num_folds * (timesteps + overlap) + overlap
    silence_len = overlap // 2
    fade_len = overlap - silence_len
    silence = jnp.zeros((silence_len,), y.dtype)
    linear = jnp.ones((silence_len,), y.dtype)
    t = jnp.linspace(-1.0, 1.0, fade_len, dtype=y.dtype)
    fade_in = jnp.concatenate([silence, jnp.sqrt(0.5 * (1 + t))])
    fade_out = jnp.concatenate([linear, jnp.sqrt(0.5 * (1 - t))])
    y = y.at[:, :, :overlap].multiply(fade_in)
    y = y.at[:, :, length - overlap:].multiply(fade_out)
    unfolded = jnp.zeros((channels, total_len), y.dtype)
    for i in range(num_folds):
        start = i * (timesteps + overlap)
        unfolded = unfolded.at[:, start:start + timesteps + 2 * overlap].add(y[i])
    return unfolded


def normalized_waveform_to_bits(waveform, bits):
    waveform = (waveform + 1.0) * (2 ** bits - 1) / 2
    return jnp.clip(waveform, 0, 2 ** bits - 1).astype(jnp.int32)


def mu_law_decoding(x_mu, quantization_channels):
    mu = quantization_channels - 1.0
    x = (x_mu.astype(jnp.float32) / mu) * 2 - 1.0
    return jnp.sign(x) * (jnp.exp(jnp.abs(x) * jnp.log1p(mu)) - 1.0) / mu


def wavernn_inference_forward(specgram, params, mulaw=True, batched=True,
                              timesteps=16, overlap=4, key=None):
    """JAX/Pallas equivalent of WaveRNNInferenceWrapper.forward."""
    if key is None:
        key = jax.random.PRNGKey(1234)
    q = pack_params(params)
    pad = (KERNEL_SIZE - 1) // 2
    x = specgram[None]                                  # (1, n_mels, time)
    x = _pad_tensor(x, pad, side='both')
    if batched:
        x = _fold_with_overlap(x, timesteps, overlap)   # (n_folds, n_mels, ts + 2*ov)
    output = wavernn_infer(x, q, key)                   # (n_folds, 1, seq_len) in [-1, 1]
    if mulaw:
        output = normalized_waveform_to_bits(output, N_BITS)
        output = mu_law_decoding(output, N_CLASSES)
    if batched:
        output = _xfade_and_unfold(output, overlap)     # (1, total_len)
    else:
        output = output[0]
    return output


# ----------------------------------------------------------------------------
# Parameter init (raw, torch-like) and packing into kernel-ready form
# ----------------------------------------------------------------------------
def init_params(key):
    keys = list(jax.random.split(key, 64))
    kit = iter(keys)

    def dense(shape):
        fan_in = shape[-2]
        return jax.random.normal(next(kit), shape, jnp.float32) / np.sqrt(max(fan_in, 1))

    def bias(shape):
        return 0.01 * jax.random.normal(next(kit), shape, jnp.float32)

    def bn(n):
        k1, k2, k3, k4 = jax.random.split(next(kit), 4)
        gamma = 1.0 + 0.1 * jax.random.normal(k1, (1, n), jnp.float32)
        beta = 0.1 * jax.random.normal(k2, (1, n), jnp.float32)
        mean = 0.1 * jax.random.normal(k3, (1, n), jnp.float32)
        var = 1.0 + 0.1 * jnp.abs(jax.random.normal(k4, (1, n), jnp.float32))
        scale = gamma * jax.lax.rsqrt(var + 1e-5)
        shift = beta - mean * scale
        return scale, shift

    p = {}
    # MelResNet
    p['res_conv_w'] = (jax.random.normal(next(kit), (KERNEL_SIZE, N_FREQ, N_HIDDEN), jnp.float32)
                       / np.sqrt(KERNEL_SIZE * N_FREQ))
    p['res_bn0_s'], p['res_bn0_b'] = bn(N_HIDDEN)
    rw1, rs1, rb1, rw2, rs2, rb2 = [], [], [], [], [], []
    for _ in range(N_RES_BLOCK):
        rw1.append(dense((N_HIDDEN, N_HIDDEN)))
        s, b = bn(N_HIDDEN); rs1.append(s); rb1.append(b)
        rw2.append(dense((N_HIDDEN, N_HIDDEN)))
        s, b = bn(N_HIDDEN); rs2.append(s); rb2.append(b)
    p['res_rw1'] = jnp.stack(rw1); p['res_rs1'] = jnp.stack(rs1); p['res_rb1'] = jnp.stack(rb1)
    p['res_rw2'] = jnp.stack(rw2); p['res_rs2'] = jnp.stack(rs2); p['res_rb2'] = jnp.stack(rb2)
    p['res_out_w'] = dense((N_HIDDEN, N_OUTPUT))
    p['res_out_b'] = bias((1, N_OUTPUT))
    # fc over cat([x(1), mel(N_FREQ), a1(N_AUX)]) -> split weight blocks
    p['fc_x'] = dense((1, N_RNN)); p['fc_m'] = dense((N_FREQ, N_RNN))
    p['fc_a'] = dense((N_AUX, N_RNN)); p['fc_b'] = bias((1, N_RNN))
    # GRU1 / GRU2 (gate order [r, z, n], weights stored pre-transposed as (in, 3H))
    p['g1_wih'] = dense((N_RNN, 3 * N_RNN)); p['g1_whh'] = dense((N_RNN, 3 * N_RNN))
    p['g1_bih'] = bias((1, 3 * N_RNN)); p['g1_bhh'] = bias((1, 3 * N_RNN))
    p['g2_wihx'] = dense((N_RNN, 3 * N_RNN)); p['g2_wiha'] = dense((N_AUX, 3 * N_RNN))
    p['g2_whh'] = dense((N_RNN, 3 * N_RNN))
    p['g2_bih'] = bias((1, 3 * N_RNN)); p['g2_bhh'] = bias((1, 3 * N_RNN))
    # fc1 / fc2 / fc3
    p['fc1_x'] = dense((N_RNN, N_FC)); p['fc1_a'] = dense((N_AUX, N_FC)); p['fc1_b'] = bias((1, N_FC))
    p['fc2_x'] = dense((N_FC, N_FC)); p['fc2_a'] = dense((N_AUX, N_FC)); p['fc2_b'] = bias((1, N_FC))
    p['fc3_w'] = dense((N_FC, N_CLASSES)); p['fc3_b'] = bias((1, N_CLASSES))
    return p


def _fuse_gru_weights(wih, whh, bih, bhh):
    """Pack GRU input+recurrent weights into one (in+H, 4H) matrix with columns
    [r_sum | z_sum | n_input | n_hidden] so one matmul per step suffices while
    preserving torch's n = tanh(W_in x + b_in + r * (W_hn h + b_hn)) semantics."""
    H = whh.shape[0]
    in_dim = wih.shape[0]
    w = jnp.zeros((in_dim + H, 4 * H), jnp.float32)
    w = w.at[:in_dim, :2 * H].set(wih[:, :2 * H])
    w = w.at[in_dim:, :2 * H].set(whh[:, :2 * H])
    w = w.at[:in_dim, 2 * H:3 * H].set(wih[:, 2 * H:])
    w = w.at[in_dim:, 3 * H:].set(whh[:, 2 * H:])
    b = jnp.concatenate([bih[:, :2 * H] + bhh[:, :2 * H],
                         bih[:, 2 * H:], bhh[:, 2 * H:]], axis=1)   # (1, 4H)
    return w, b


def pack_params(p):
    """Fold BN scales into conv/1x1 weights and fuse GRU weight matrices."""
    q = {}
    q['w5'] = p['res_conv_w'] * p['res_bn0_s']           # BN scale folded into columns
    q['b0'] = p['res_bn0_b']
    q['rw1'] = p['res_rw1'] * p['res_rs1']
    q['rb1'] = p['res_rb1']
    q['rw2'] = p['res_rw2'] * p['res_rs2']
    q['rb2'] = p['res_rb2']
    q['out_w'] = p['res_out_w']; q['out_b'] = p['res_out_b']
    q['fc_m'] = p['fc_m']; q['fc_a'] = p['fc_a']; q['fc_b'] = p['fc_b']
    q['fc_x'] = p['fc_x']
    q['g2_wiha'] = p['g2_wiha']
    q['fc1_a'] = p['fc1_a']; q['fc1_b'] = p['fc1_b']
    q['fc2_a'] = p['fc2_a']; q['fc2_b'] = p['fc2_b']
    q['fc1_x'] = p['fc1_x']; q['fc2_x'] = p['fc2_x']
    q['fc3_w'] = p['fc3_w']; q['fc3_b'] = p['fc3_b']
    q['g1_W'], q['g1_b'] = _fuse_gru_weights(p['g1_wih'], p['g1_whh'],
                                             p['g1_bih'], p['g1_bhh'])
    q['g2_W'], q['g2_b'] = _fuse_gru_weights(p['g2_wihx'], p['g2_whh'],
                                             p['g2_bih'], p['g2_bhh'])
    return q


if __name__ == "__main__":
    root = jax.random.PRNGKey(0)
    k_spec, k_params, k_sample = jax.random.split(root, 3)
    params = init_params(k_params)

    # specgram: (n_mels, n_time) = (32, 40); with timesteps=16, overlap=4 -> 2 folds of 24 frames,
    # seq_len per fold = (24 - 4) * 4 = 80 samples, unfolded waveform (1, 156).
    specgram = jax.random.uniform(k_spec, (N_FREQ, 40), jnp.float32, minval=-1.0, maxval=1.0)

    waveform = wavernn_inference_forward(specgram, params, mulaw=True, batched=True,
                                         timesteps=16, overlap=4, key=k_sample)
    waveform = jax.block_until_ready(waveform)

    assert waveform.ndim == 2 and waveform.shape[0] == 1
    assert bool(jnp.all(jnp.isfinite(waveform)))
    print("KERNEL_OK")
</pallas_src>

<mosaic_0001>
module attributes {stable_mosaic.version = 11 : i64} {
  func.func @_conditioning_kernel(%arg0: memref<2x24x32xf32, #tpu.memory_space<vmem>>, %arg1: memref<80x24xf32, #tpu.memory_space<vmem>>, %arg2: memref<80x20xf32, #tpu.memory_space<vmem>>, %arg3: memref<5x32x32xf32, #tpu.memory_space<vmem>>, %arg4: memref<1x32xf32, #tpu.memory_space<vmem>>, %arg5: memref<2x32x32xf32, #tpu.memory_space<vmem>>, %arg6: memref<2x1x32xf32, #tpu.memory_space<vmem>>, %arg7: memref<2x32x32xf32, #tpu.memory_space<vmem>>, %arg8: memref<2x1x32xf32, #tpu.memory_space<vmem>>, %arg9: memref<32x32xf32, #tpu.memory_space<vmem>>, %arg10: memref<1x32xf32, #tpu.memory_space<vmem>>, %arg11: memref<32x64xf32, #tpu.memory_space<vmem>>, %arg12: memref<8x64xf32, #tpu.memory_space<vmem>>, %arg13: memref<1x64xf32, #tpu.memory_space<vmem>>, %arg14: memref<8x192xf32, #tpu.memory_space<vmem>>, %arg15: memref<8x64xf32, #tpu.memory_space<vmem>>, %arg16: memref<1x64xf32, #tpu.memory_space<vmem>>, %arg17: memref<8x64xf32, #tpu.memory_space<vmem>>, %arg18: memref<1x64xf32, #tpu.memory_space<vmem>>, %arg19: memref<2x80x64xf32, #tpu.memory_space<vmem>>, %arg20: memref<2x80x192xf32, #tpu.memory_space<vmem>>, %arg21: memref<2x80x64xf32, #tpu.memory_space<vmem>>, %arg22: memref<2x80x64xf32, #tpu.memory_space<vmem>>) attributes {dimension_semantics = [], scalar_prefetch = 0 : i64, scratch_operands = 0 : i64, tpu.core_type = #tpu.core_type<tc>} {
    %c0 = arith.constant 0 : index
    %c0_0 = arith.constant 0 : index
    %0 = vector.load %arg1[%c0, %c0_0] : memref<80x24xf32, #tpu.memory_space<vmem>>, vector<80x24xf32>
    %c0_1 = arith.constant 0 : index
    %c0_2 = arith.constant 0 : index
    %1 = vector.load %arg2[%c0_1, %c0_2] : memref<80x20xf32, #tpu.memory_space<vmem>>, vector<80x20xf32>
    %c0_3 = arith.constant 0 : index
    %c0_4 = arith.constant 0 : index
    %c0_5 = arith.constant 0 : index
    %2 = vector.load %arg0[%c0_3, %c0_4, %c0_5] : memref<2x24x32xf32, #tpu.memory_space<vmem>>, vector<1x24x32xf32>
    %3 = vector.shape_cast %2 : vector<1x24x32xf32> to vector<24x32xf32>
    %cst = arith.constant 0.000000e+00 : f32
    %4 = vector.broadcast %cst : f32 to vector<20x32xf32>
    %5 = vector.extract_strided_slice %3 {offsets = [0, 0], sizes = [20, 32], strides = [1, 1]} : vector<24x32xf32> to vector<20x32xf32>
    %c0_6 = arith.constant 0 : index
    %c0_7 = arith.constant 0 : index
    %c0_8 = arith.constant 0 : index
    %6 = vector.load %arg3[%c0_6, %c0_7, %c0_8] : memref<5x32x32xf32, #tpu.memory_space<vmem>>, vector<1x32x32xf32>
    %7 = vector.shape_cast %6 : vector<1x32x32xf32> to vector<32x32xf32>
    %cst_9 = arith.constant dense<0.000000e+00> : vector<20x32xf32>
    %8 = tpu.matmul %5, %7, %cst_9 {dimension_numbers = #tpu.dot_dimension_numbers<[1], [0], [0], [1], [0, 0, 1, 1], [], []>} : vector<20x32xf32>, vector<32x32xf32>, vector<20x32xf32> -> vector<20x32xf32>
    %9 = arith.addf %4, %8 : vector<20x32xf32>
    %10 = vector.extract_strided_slice %3 {offsets = [1, 0], sizes = [20, 32], strides = [1, 1]} : vector<24x32xf32> to vector<20x32xf32>
    %c1 = arith.constant 1 : index
    %c0_10 = arith.constant 0 : index
    %c0_11 = arith.constant 0 : index
    %11 = vector.load %arg3[%c1, %c0_10, %c0_11] : memref<5x32x32xf32, #tpu.memory_space<vmem>>, vector<1x32x32xf32>
    %12 = vector.shape_cast %11 : vector<1x32x32xf32> to vector<32x32xf32>
    %cst_12 = arith.constant dense<0.000000e+00> : vector<20x32xf32>
    %13 = tpu.matmul %10, %12, %cst_12 {dimension_numbers = #tpu.dot_dimension_numbers<[1], [0], [0], [1], [0, 0, 1, 1], [], []>} : vector<20x32xf32>, vector<32x32xf32>, vector<20x32xf32> -> vector<20x32xf32>
    %14 = arith.addf %9, %13 : vector<20x32xf32>
    %15 = vector.extract_strided_slice %3 {offsets = [2, 0], sizes = [20, 32], strides = [1, 1]} : vector<24x32xf32> to vector<20x32xf32>
    %c2 = arith.constant 2 : index
    %c0_13 = arith.constant 0 : index
    %c0_14 = arith.constant 0 : index
    %16 = vector.load %arg3[%c2, %c0_13, %c0_14] : memref<5x32x32xf32, #tpu.memory_space<vmem>>, vector<1x32x32xf32>
    %17 = vector.shape_cast %16 : vector<1x32x32xf32> to vector<32x32xf32>
    %cst_15 = arith.constant dense<0.000000e+00> : vector<20x32xf32>
    %18 = tpu.matmul %15, %17, %cst_15 {dimension_numbers = #tpu.dot_dimension_numbers<[1], [0], [0], [1], [0, 0, 1, 1], [], []>} : vector<20x32xf32>, vector<32x32xf32>, vector<20x32xf32> -> vector<20x32xf32>
    %19 = arith.addf %14, %18 : vector<20x32xf32>
    %20 = vector.extract_strided_slice %3 {offsets = [3, 0], sizes = [20, 32], strides = [1, 1]} : vector<24x32xf32> to vector<20x32xf32>
    %c3 = arith.constant 3 : index
    %c0_16 = arith.constant 0 : index
    %c0_17 = arith.constant 0 : index
    %21 = vector.load %arg3[%c3, %c0_16, %c0_17] : memref<5x32x32xf32, #tpu.memory_space<vmem>>, vector<1x32x32xf32>
    %22 = vector.shape_cast %21 : vector<1x32x32xf32> to vector<32x32xf32>
    %cst_18 = arith.constant dense<0.000000e+00> : vector<20x32xf32>
    %23 = tpu.matmul %20, %22, %cst_18 {dimension_numbers = #tpu.dot_dimension_numbers<[1], [0], [0], [1], [0, 0, 1, 1], [], []>} : vector<20x32xf32>, vector<32x32xf32>, vector<20x32xf32> -> vector<20x32xf32>
    %24 = arith.addf %19, %23 : vector<20x32xf32>
    %25 = vector.extract_strided_slice %3 {offsets = [4, 0], sizes = [20, 32], strides = [1, 1]} : vector<24x32xf32> to vector<20x32xf32>
    %c4 = arith.constant 4 : index
    %c0_19 = arith.constant 0 : index
    %c0_20 = arith.constant 0 : index
    %26 = vector.load %arg3[%c4, %c0_19, %c0_20] : memref<5x32x32xf32, #tpu.memory_space<vmem>>, vector<1x32x32xf32>
    %27 = vector.shape_cast %26 : vector<1x32x32xf32> to vector<32x32xf32>
    %cst_21 = arith.constant dense<0.000000e+00> : vector<20x32xf32>
    %28 = tpu.matmul %25, %27, %cst_21 {dimension_numbers = #tpu.dot_dimension_numbers<[1], [0], [0], [1], [0, 0, 1, 1], [], []>} : vector<20x32xf32>, vector<32x32xf32>, vector<20x32xf32> -> vector<20x32xf32>
    %29 = arith.addf %24, %28 : vector<20x32xf32>
    %c0_22 = arith.constant 0 : index
    %c0_23 = arith.constant 0 : index
    %30 = vector.load %arg4[%c0_22, %c0_23] : memref<1x32xf32, #tpu.memory_space<vmem>>, vector<1x32xf32>
    %31 = vector.broadcast %30 : vector<1x32xf32> to vector<20x32xf32>
    %32 = arith.addf %29, %31 : vector<20x32xf32>
    %cst_24 = arith.constant 0.000000e+00 : f32
    %33 = vector.broadcast %cst_24 : f32 to vector<20x32xf32>
    %34 = arith.maximumf %32, %33 : vector<20x32xf32>
    %c0_25 = arith.constant 0 : index
    %c0_26 = arith.constant 0 : index
    %c0_27 = arith.constant 0 : index
    %35 = vector.load %arg5[%c0_25, %c0_26, %c0_27] : memref<2x32x32xf32, #tpu.memory_space<vmem>>, vector<1x32x32xf32>
    %36 = vector.shape_cast %35 : vector<1x32x32xf32> to vector<32x32xf32>
    %cst_28 = arith.constant dense<0.000000e+00> : vector<20x32xf32>
    %37 = tpu.matmul %34, %36, %cst_28 {dimension_numbers = #tpu.dot_dimension_numbers<[1], [0], [0], [1], [0, 0, 1, 1], [], []>} : vector<20x32xf32>, vector<32x32xf32>, vector<20x32xf32> -> vector<20x32xf32>
    %c0_29 = arith.constant 0 : index
    %c0_30 = arith.constant 0 : index
    %c0_31 = arith.constant 0 : index
    %38 = vector.load %arg6[%c0_29, %c0_30, %c0_31] : memref<2x1x32xf32, #tpu.memory_space<vmem>>, vector<1x1x32xf32>
    %39 = vector.shape_cast %38 : vector<1x1x32xf32> to vector<1x32xf32>
    %40 = vector.broadcast %39 : vector<1x32xf32> to vector<20x32xf32>
    %41 = arith.addf %37, %40 : vector<20x32xf32>
    %cst_32 = arith.constant 0.000000e+00 : f32
    %42 = vector.broadcast %cst_32 : f32 to vector<20x32xf32>
    %43 = arith.maximumf %41, %42 : vector<20x32xf32>
    %c0_33 = arith.constant 0 : index
    %c0_34 = arith.constant 0 : index
    %c0_35 = arith.constant 0 : index
    %44 = vector.load %arg7[%c0_33, %c0_34, %c0_35] : memref<2x32x32xf32, #tpu.memory_space<vmem>>, vector<1x32x32xf32>
    %45 = vector.shape_cast %44 : vector<1x32x32xf32> to vector<32x32xf32>
    %cst_36 = arith.constant dense<0.000000e+00> : vector<20x32xf32>
    %46 = tpu.matmul %43, %45, %cst_36 {dimension_numbers = #tpu.dot_dimension_numbers<[1], [0], [0], [1], [0, 0, 1, 1], [], []>} : vector<20x32xf32>, vector<32x32xf32>, vector<20x32xf32> -> vector<20x32xf32>
    %c0_37 = arith.constant 0 : index
    %c0_38 = arith.constant 0 : index
    %c0_39 = arith.constant 0 : index
    %47 = vector.load %arg8[%c0_37, %c0_38, %c0_39] : memref<2x1x32xf32, #tpu.memory_space<vmem>>, vector<1x1x32xf32>
    %48 = vector.shape_cast %47 : vector<1x1x32xf32> to vector<1x32xf32>
    %49 = vector.broadcast %48 : vector<1x32xf32> to vector<20x32xf32>
    %50 = arith.addf %46, %49 : vector<20x32xf32>
    %51 = arith.addf %34, %50 : vector<20x32xf32>
    %c1_40 = arith.constant 1 : index
    %c0_41 = arith.constant 0 : index
    %c0_42 = arith.constant 0 : index
    %52 = vector.load %arg5[%c1_40, %c0_41, %c0_42] : memref<2x32x32xf32, #tpu.memory_space<vmem>>, vector<1x32x32xf32>
    %53 = vector.shape_cast %52 : vector<1x32x32xf32> to vector<32x32xf32>
    %cst_43 = arith.constant dense<0.000000e+00> : vector<20x32xf32>
    %54 = tpu.matmul %51, %53, %cst_43 {dimension_numbers = #tpu.dot_dimension_numbers<[1], [0], [0], [1], [0, 0, 1, 1], [], []>} : vector<20x32xf32>, vector<32x32xf32>, vector<20x32xf32> -> vector<20x32xf32>
    %c1_44 = arith.constant 1 : index
    %c0_45 = arith.constant 0 : index
    %c0_46 = arith.constant 0 : index
    %55 = vector.load %arg6[%c1_44, %c0_45, %c0_46] : memref<2x1x32xf32, #tpu.memory_space<vmem>>, vector<1x1x32xf32>
    %56 = vector.shape_cast %55 : vector<1x1x32xf32> to vector<1x32xf32>
    %57 = vector.broadcast %56 : vector<1x32xf32> to vector<20x32xf32>
    %58 = arith.addf %54, %57 : vector<20x32xf32>
    %cst_47 = arith.constant 0.000000e+00 : f32
    %59 = vector.broadcast %cst_47 : f32 to vector<20x32xf32>
    %60 = arith.maximumf %58, %59 : vector<20x32xf32>
    %c1_48 = arith.constant 1 : index
    %c0_49 = arith.constant 0 : index
    %c0_50 = arith.constant 0 : index
    %61 = vector.load %arg7[%c1_48, %c0_49, %c0_50] : memref<2x32x32xf32, #tpu.memory_space<vmem>>, vector<1x32x32xf32>
    %62 = vector.shape_cast %61 : vector<1x32x32xf32> to vector<32x32xf32>
    %cst_51 = arith.constant dense<0.000000e+00> : vector<20x32xf32>
    %63 = tpu.matmul %60, %62, %cst_51 {dimension_numbers = #tpu.dot_dimension_numbers<[1], [0], [0], [1], [0, 0, 1, 1], [], []>} : vector<20x32xf32>, vector<32x32xf32>, vector<20x32xf32> -> vector<20x32xf32>
    %c1_52 = arith.constant 1 : index
    %c0_53 = arith.constant 0 : index
    %c0_54 = arith.constant 0 : index
    %64 = vector.load %arg8[%c1_52, %c0_53, %c0_54] : memref<2x1x32xf32, #tpu.memory_space<vmem>>, vector<1x1x32xf32>
    %65 = vector.shape_cast %64 : vector<1x1x32xf32> to vector<1x32xf32>
    %66 = vector.broadcast %65 : vector<1x32xf32> to vector<20x32xf32>
    %67 = arith.addf %63, %66 : vector<20x32xf32>
    %68 = arith.addf %51, %67 : vector<20x32xf32>
    %c0_55 = arith.constant 0 : index
    %c0_56 = arith.constant 0 : index
    %69 = vector.load %arg9[%c0_55, %c0_56] : memref<32x32xf32, #tpu.memory_space<vmem>>, vector<32x32xf32>
    %cst_57 = arith.constant dense<0.000000e+00> : vector<20x32xf32>
    %70 = tpu.matmul %68, %69, %cst_57 {dimension_numbers = #tpu.dot_dimension_numbers<[1], [0], [0], [1], [0, 0, 1, 1], [], []>} : vector<20x32xf32>, vector<32x32xf32>, vector<20x32xf32> -> vector<20x32xf32>
    %c0_58 = arith.constant 0 : index
    %c0_59 = arith.constant 0 : index
    %71 = vector.load %arg10[%c0_58, %c0_59] : memref<1x32xf32, #tpu.memory_space<vmem>>, vector<1x32xf32>
    %72 = vector.broadcast %71 : vector<1x32xf32> to vector<20x32xf32>
    %73 = arith.addf %70, %72 : vector<20x32xf32>
    %cst_60 = arith.constant dense<0.000000e+00> : vector<80x32xf32>
    %74 = tpu.matmul %0, %3, %cst_60 {dimension_numbers = #tpu.dot_dimension_numbers<[1], [0], [0], [1], [0, 0, 1, 1], [], []>} : vector<80x24xf32>, vector<24x32xf32>, vector<80x32xf32> -> vector<80x32xf32>
    %cst_61 = arith.constant dense<0.000000e+00> : vector<80x32xf32>
    %75 = tpu.matmul %1, %73, %cst_61 {dimension_numbers = #tpu.dot_dimension_numbers<[1], [0], [0], [1], [0, 0, 1, 1], [], []>} : vector<80x20xf32>, vector<20x32xf32>, vector<80x32xf32> -> vector<80x32xf32>
    %76 = vector.extract_strided_slice %75 {offsets = [0, 0], sizes = [80, 8], strides = [1, 1]} : vector<80x32xf32> to vector<80x8xf32>
    %77 = vector.extract_strided_slice %75 {offsets = [0, 8], sizes = [80, 8], strides = [1, 1]} : vector<80x32xf32> to vector<80x8xf32>
    %78 = vector.extract_strided_slice %75 {offsets = [0, 16], sizes = [80, 8], strides = [1, 1]} : vector<80x32xf32> to vector<80x8xf32>
    %79 = vector.extract_strided_slice %75 {offsets = [0, 24], sizes = [80, 8], strides = [1, 1]} : vector<80x32xf32> to vector<80x8xf32>
    %c0_62 = arith.constant 0 : index
    %c0_63 = arith.constant 0 : index
    %80 = vector.load %arg11[%c0_62, %c0_63] : memref<32x64xf32, #tpu.memory_space<vmem>>, vector<32x64xf32>
    %cst_64 = arith.constant dense<0.000000e+00> : vector<80x64xf32>
    %81 = tpu.matmul %74, %80, %cst_64 {dimension_numbers = #tpu.dot_dimension_numbers<[1], [0], [0], [1], [0, 0, 1, 1], [], []>} : vector<80x32xf32>, vector<32x64xf32>, vector<80x64xf32> -> vector<80x64xf32>
    %c0_65 = arith.constant 0 : index
    %c0_66 = arith.constant 0 : index
    %82 = vector.load %arg12[%c0_65, %c0_66] : memref<8x64xf32, #tpu.memory_space<vmem>>, vector<8x64xf32>
    %cst_67 = arith.constant dense<0.000000e+00> : vector<80x64xf32>
    %83 = tpu.matmul %76, %82, %cst_67 {dimension_numbers = #tpu.dot_dimension_numbers<[1], [0], [0], [1], [0, 0, 1, 1], [], []>} : vector<80x8xf32>, vector<8x64xf32>, vector<80x64xf32> -> vector<80x64xf32>
    %84 = arith.addf %81, %83 : vector<80x64xf32>
    %c0_68 = arith.constant 0 : index
    %c0_69 = arith.constant 0 : index
    %85 = vector.load %arg13[%c0_68, %c0_69] : memref<1x64xf32, #tpu.memory_space<vmem>>, vector<1x64xf32>
    %86 = vector.broadcast %85 : vector<1x64xf32> to vector<80x64xf32>
    %87 = arith.addf %84, %86 : vector<80x64xf32>
    %c0_70 = arith.constant 0 : index
    %c0_71 = arith.constant 0 : index
    %c0_72 = arith.constant 0 : index
    %88 = vector.load %arg19[%c0_70, %c0_71, %c0_72] : memref<2x80x64xf32, #tpu.memory_space<vmem>>, vector<1x80x64xf32>
    %89 = vector.shape_cast %88 : vector<1x80x64xf32> to vector<80x64xf32>
    %90 = vector.shape_cast %87 : vector<80x64xf32> to vector<1x80x64xf32>
    tpu.vector_store %arg19[%c0_70, %c0_71, %c0_72], %90 {strides = array<i32>} : memref<2x80x64xf32, #tpu.memory_space<vmem>>, vector<1x80x64xf32>,
    %c0_73 = arith.constant 0 : index
    %c0_74 = arith.constant 0 : index
    %91 = vector.load %arg14[%c0_73, %c0_74] : memref<8x192xf32, #tpu.memory_space<vmem>>, vector<8x192xf32>
    %cst_75 = arith.constant dense<0.000000e+00> : vector<80x192xf32>
    %92 = tpu.matmul %77, %91, %cst_75 {dimension_numbers = #tpu.dot_dimension_numbers<[1], [0], [0], [1], [0, 0, 1, 1], [], []>} : vector<80x8xf32>, vector<8x192xf32>, vector<80x192xf32> -> vector<80x192xf32>
    %c0_76 = arith.constant 0 : index
    %c0_77 = arith.constant 0 : index
    %c0_78 = arith.constant 0 : index
    %93 = vector.load %arg20[%c0_76, %c0_77, %c0_78] : memref<2x80x192xf32, #tpu.memory_space<vmem>>, vector<1x80x192xf32>
    %94 = vector.shape_cast %93 : vector<1x80x192xf32> to vector<80x192xf32>
    %95 = vector.shape_cast %92 : vector<80x192xf32> to vector<1x80x192xf32>
    tpu.vector_store %arg20[%c0_76, %c0_77, %c0_78], %95 {strides = array<i32>} : memref<2x80x192xf32, #tpu.memory_space<vmem>>, vector<1x80x192xf32>,
    %c0_79 = arith.constant 0 : index
    %c0_80 = arith.constant 0 : index
    %96 = vector.load %arg15[%c0_79, %c0_80] : memref<8x64xf32, #tpu.memory_space<vmem>>, vector<8x64xf32>
    %cst_81 = arith.constant dense<0.000000e+00> : vector<80x64xf32>
    %97 = tpu.matmul %78, %96, %cst_81 {dimension_numbers = #tpu.dot_dimension_numbers<[1], [0], [0], [1], [0, 0, 1, 1], [], []>} : vector<80x8xf32>, vector<8x64xf32>, vector<80x64xf32> -> vector<80x64xf32>
    %c0_82 = arith.constant 0 : index
    %c0_83 = arith.constant 0 : index
    %98 = vector.load %arg16[%c0_82, %c0_83] : memref<1x64xf32, #tpu.memory_space<vmem>>, vector<1x64xf32>
    %99 = vector.broadcast %98 : vector<1x64xf32> to vector<80x64xf32>
    %100 = arith.addf %97, %99 : vector<80x64xf32>
    %c0_84 = arith.constant 0 : index
    %c0_85 = arith.constant 0 : index
    %c0_86 = arith.constant 0 : index
    %101 = vector.load %arg21[%c0_84, %c0_85, %c0_86] : memref<2x80x64xf32, #tpu.memory_space<vmem>>, vector<1x80x64xf32>
    %102 = vector.shape_cast %101 : vector<1x80x64xf32> to vector<80x64xf32>
    %103 = vector.shape_cast %100 : vector<80x64xf32> to vector<1x80x64xf32>
    tpu.vector_store %arg21[%c0_84, %c0_85, %c0_86], %103 {strides = array<i32>} : memref<2x80x64xf32, #tpu.memory_space<vmem>>, vector<1x80x64xf32>,
    %c0_87 = arith.constant 0 : index
    %c0_88 = arith.constant 0 : index
    %104 = vector.load %arg17[%c0_87, %c0_88] : memref<8x64xf32, #tpu.memory_space<vmem>>, vector<8x64xf32>
    %cst_89 = arith.constant dense<0.000000e+00> : vector<80x64xf32>
    %105 = tpu.matmul %79, %104, %cst_89 {dimension_numbers = #tpu.dot_dimension_numbers<[1], [0], [0], [1], [0, 0, 1, 1], [], []>} : vector<80x8xf32>, vector<8x64xf32>, vector<80x64xf32> -> vector<80x64xf32>
    %c0_90 = arith.constant 0 : index
    %c0_91 = arith.constant 0 : index
    %106 = vector.load %arg18[%c0_90, %c0_91] : memref<1x64xf32, #tpu.memory_space<vmem>>, vector<1x64xf32>
    %107 = vector.broadcast %106 : vector<1x64xf32> to vector<80x64xf32>
    %108 = arith.addf %105, %107 : vector<80x64xf32>
    %c0_92 = arith.constant 0 : index
    %c0_93 = arith.constant 0 : index
    %c0_94 = arith.constant 0 : index
    %109 = vector.load %arg22[%c0_92, %c0_93, %c0_94] : memref<2x80x64xf32, #tpu.memory_space<vmem>>, vector<1x80x64xf32>
    %110 = vector.shape_cast %109 : vector<1x80x64xf32> to vector<80x64xf32>
    %111 = vector.shape_cast %108 : vector<80x64xf32> to vector<1x80x64xf32>
    tpu.vector_store %arg22[%c0_92, %c0_93, %c0_94], %111 {strides = array<i32>} : memref<2x80x64xf32, #tpu.memory_space<vmem>>, vector<1x80x64xf32>,
    %c1_95 = arith.constant 1 : index
    %c0_96 = arith.constant 0 : index
    %c0_97 = arith.constant 0 : index
    %112 = vector.load %arg0[%c1_95, %c0_96, %c0_97] : memref<2x24x32xf32, #tpu.memory_space<vmem>>, vector<1x24x32xf32>
    %113 = vector.shape_cast %112 : vector<1x24x32xf32> to vector<24x32xf32>
    %cst_98 = arith.constant 0.000000e+00 : f32
    %114 = vector.broadcast %cst_98 : f32 to vector<20x32xf32>
    %115 = vector.extract_strided_slice %113 {offsets = [0, 0], sizes = [20, 32], strides = [1, 1]} : vector<24x32xf32> to vector<20x32xf32>
    %c0_99 = arith.constant 0 : index
    %c0_100 = arith.constant 0 : index
    %c0_101 = arith.constant 0 : index
    %116 = vector.load %arg3[%c0_99, %c0_100, %c0_101] : memref<5x32x32xf32, #tpu.memory_space<vmem>>, vector<1x32x32xf32>
    %117 = vector.shape_cast %116 : vector<1x32x32xf32> to vector<32x32xf32>
    %cst_102 = arith.constant dense<0.000000e+00> : vector<20x32xf32>
    %118 = tpu.matmul %115, %117, %cst_102 {dimension_numbers = #tpu.dot_dimension_numbers<[1], [0], [0], [1], [0, 0, 1, 1], [], []>} : vector<20x32xf32>, vector<32x32xf32>, vector<20x32xf32> -> vector<20x32xf32>
    %119 = arith.addf %114, %118 : vector<20x32xf32>
    %120 = vector.extract_strided_slice %113 {offsets = [1, 0], sizes = [20, 32], strides = [1, 1]} : vector<24x32xf32> to vector<20x32xf32>
    %c1_103 = arith.constant 1 : index
    %c0_104 = arith.constant 0 : index
    %c0_105 = arith.constant 0 : index
    %121 = vector.load %arg3[%c1_103, %c0_104, %c0_105] : memref<5x32x32xf32, #tpu.memory_space<vmem>>, vector<1x32x32xf32>
    %122 = vector.shape_cast %121 : vector<1x32x32xf32> to vector<32x32xf32>
    %cst_106 = arith.constant dense<0.000000e+00> : vector<20x32xf32>
    %123 = tpu.matmul %120, %122, %cst_106 {dimension_numbers = #tpu.dot_dimension_numbers<[1], [0], [0], [1], [0, 0, 1, 1], [], []>} : vector<20x32xf32>, vector<32x32xf32>, vector<20x32xf32> -> vector<20x32xf32>
    %124 = arith.addf %119, %123 : vector<20x32xf32>
    %125 = vector.extract_strided_slice %113 {offsets = [2, 0], sizes = [20, 32], strides = [1, 1]} : vector<24x32xf32> to vector<20x32xf32>
    %c2_107 = arith.constant 2 : index
    %c0_108 = arith.constant 0 : index
    %c0_109 = arith.constant 0 : index
    %126 = vector.load %arg3[%c2_107, %c0_108, %c0_109] : memref<5x32x32xf32, #tpu.memory_space<vmem>>, vector<1x32x32xf32>
    %127 = vector.shape_cast %126 : vector<1x32x32xf32> to vector<32x32xf32>
    %cst_110 = arith.constant dense<0.000000e+00> : vector<20x32xf32>
    %128 = tpu.matmul %125, %127, %cst_110 {dimension_numbers = #tpu.dot_dimension_numbers<[1], [0], [0], [1], [0, 0, 1, 1], [], []>} : vector<20x32xf32>, vector<32x32xf32>, vector<20x32xf32> -> vector<20x32xf32>
    %129 = arith.addf %124, %128 : vector<20x32xf32>
    %130 = vector.extract_strided_slice %113 {offsets = [3, 0], sizes = [20, 32], strides = [1, 1]} : vector<24x32xf32> to vector<20x32xf32>
    %c3_111 = arith.constant 3 : index
    %c0_112 = arith.constant 0 : index
    %c0_113 = arith.constant 0 : index
    %131 = vector.load %arg3[%c3_111, %c0_112, %c0_113] : memref<5x32x32xf32, #tpu.memory_space<vmem>>, vector<1x32x32xf32>
    %132 = vector.shape_cast %131 : vector<1x32x32xf32> to vector<32x32xf32>
    %cst_114 = arith.constant dense<0.000000e+00> : vector<20x32xf32>
    %133 = tpu.matmul %130, %132, %cst_114 {dimension_numbers = #tpu.dot_dimension_numbers<[1], [0], [0], [1], [0, 0, 1, 1], [], []>} : vector<20x32xf32>, vector<32x32xf32>, vector<20x32xf32> -> vector<20x32xf32>
    %134 = arith.addf %129, %133 : vector<20x32xf32>
    %135 = vector.extract_strided_slice %113 {offsets = [4, 0], sizes = [20, 32], strides = [1, 1]} : vector<24x32xf32> to vector<20x32xf32>
    %c4_115 = arith.constant 4 : index
    %c0_116 = arith.constant 0 : index
    %c0_117 = arith.constant 0 : index
    %136 = vector.load %arg3[%c4_115, %c0_116, %c0_117] : memref<5x32x32xf32, #tpu.memory_space<vmem>>, vector<1x32x32xf32>
    %137 = vector.shape_cast %136 : vector<1x32x32xf32> to vector<32x32xf32>
    %cst_118 = arith.constant dense<0.000000e+00> : vector<20x32xf32>
    %138 = tpu.matmul %135, %137, %cst_118 {dimension_numbers = #tpu.dot_dimension_numbers<[1], [0], [0], [1], [0, 0, 1, 1], [], []>} : vector<20x32xf32>, vector<32x32xf32>, vector<20x32xf32> -> vector<20x32xf32>
    %139 = arith.addf %134, %138 : vector<20x32xf32>
    %c0_119 = arith.constant 0 : index
    %c0_120 = arith.constant 0 : index
    %140 = vector.load %arg4[%c0_119, %c0_120] : memref<1x32xf32, #tpu.memory_space<vmem>>, vector<1x32xf32>
    %141 = vector.broadcast %140 : vector<1x32xf32> to vector<20x32xf32>
    %142 = arith.addf %139, %141 : vector<20x32xf32>
    %cst_121 = arith.constant 0.000000e+00 : f32
    %143 = vector.broadcast %cst_121 : f32 to vector<20x32xf32>
    %144 = arith.maximumf %142, %143 : vector<20x32xf32>
    %c0_122 = arith.constant 0 : index
    %c0_123 = arith.constant 0 : index
    %c0_124 = arith.constant 0 : index
    %145 = vector.load %arg5[%c0_122, %c0_123, %c0_124] : memref<2x32x32xf32, #tpu.memory_space<vmem>>, vector<1x32x32xf32>
    %146 = vector.shape_cast %145 : vector<1x32x32xf32> to vector<32x32xf32>
    %cst_125 = arith.constant dense<0.000000e+00> : vector<20x32xf32>
    %147 = tpu.matmul %144, %146, %cst_125 {dimension_numbers = #tpu.dot_dimension_numbers<[1], [0], [0], [1], [0, 0, 1, 1], [], []>} : vector<20x32xf32>, vector<32x32xf32>, vector<20x32xf32> -> vector<20x32xf32>
    %c0_126 = arith.constant 0 : index
    %c0_127 = arith.constant 0 : index
    %c0_128 = arith.constant 0 : index
    %148 = vector.load %arg6[%c0_126, %c0_127, %c0_128] : memref<2x1x32xf32, #tpu.memory_space<vmem>>, vector<1x1x32xf32>
    %149 = vector.shape_cast %148 : vector<1x1x32xf32> to vector<1x32xf32>
    %150 = vector.broadcast %149 : vector<1x32xf32> to vector<20x32xf32>
    %151 = arith.addf %147, %150 : vector<20x32xf32>
    %cst_129 = arith.constant 0.000000e+00 : f32
    %152 = vector.broadcast %cst_129 : f32 to vector<20x32xf32>
    %153 = arith.maximumf %151, %152 : vector<20x32xf32>
    %c0_130 = arith.constant 0 : index
    %c0_131 = arith.constant 0 : index
    %c0_132 = arith.constant 0 : index
    %154 = vector.load %arg7[%c0_130, %c0_131, %c0_132] : memref<2x32x32xf32, #tpu.memory_space<vmem>>, vector<1x32x32xf32>
    %155 = vector.shape_cast %154 : vector<1x32x32xf32> to vector<32x32xf32>
    %cst_133 = arith.constant dense<0.000000e+00> : vector<20x32xf32>
    %156 = tpu.matmul %153, %155, %cst_133 {dimension_numbers = #tpu.dot_dimension_numbers<[1], [0], [0], [1], [0, 0, 1, 1], [], []>} : vector<20x32xf32>, vector<32x32xf32>, vector<20x32xf32> -> vector<20x32xf32>
    %c0_134 = arith.constant 0 : index
    %c0_135 = arith.constant 0 : index
    %c0_136 = arith.constant 0 : index
    %157 = vector.load %arg8[%c0_134, %c0_135, %c0_136] : memref<2x1x32xf32, #tpu.memory_space<vmem>>, vector<1x1x32xf32>
    %158 = vector.shape_cast %157 : vector<1x1x32xf32> to vector<1x32xf32>
    %159 = vector.broadcast %158 : vector<1x32xf32> to vector<20x32xf32>
    %160 = arith.addf %156, %159 : vector<20x32xf32>
    %161 = arith.addf %144, %160 : vector<20x32xf32>
    %c1_137 = arith.constant 1 : index
    %c0_138 = arith.constant 0 : index
    %c0_139 = arith.constant 0 : index
    %162 = vector.load %arg5[%c1_137, %c0_138, %c0_139] : memref<2x32x32xf32, #tpu.memory_space<vmem>>, vector<1x32x32xf32>
    %163 = vector.shape_cast %162 : vector<1x32x32xf32> to vector<32x32xf32>
    %cst_140 = arith.constant dense<0.000000e+00> : vector<20x32xf32>
    %164 = tpu.matmul %161, %163, %cst_140 {dimension_numbers = #tpu.dot_dimension_numbers<[1], [0], [0], [1], [0, 0, 1, 1], [], []>} : vector<20x32xf32>, vector<32x32xf32>, vector<20x32xf32> -> vector<20x32xf32>
    %c1_141 = arith.constant 1 : index
    %c0_142 = arith.constant 0 : index
    %c0_143 = arith.constant 0 : index
    %165 = vector.load %arg6[%c1_141, %c0_142, %c0_143] : memref<2x1x32xf32, #tpu.memory_space<vmem>>, vector<1x1x32xf32>
    %166 = vector.shape_cast %165 : vector<1x1x32xf32> to vector<1x32xf32>
    %167 = vector.broadcast %166 : vector<1x32xf32> to vector<20x32xf32>
    %168 = arith.addf %164, %167 : vector<20x32xf32>
    %cst_144 = arith.constant 0.000000e+00 : f32
    %169 = vector.broadcast %cst_144 : f32 to vector<20x32xf32>
    %170 = arith.maximumf %168, %169 : vector<20x32xf32>
    %c1_145 = arith.constant 1 : index
    %c0_146 = arith.constant 0 : index
    %c0_147 = arith.constant 0 : index
    %171 = vector.load %arg7[%c1_145, %c0_146, %c0_147] : memref<2x32x32xf32, #tpu.memory_space<vmem>>, vector<1x32x32xf32>
    %172 = vector.shape_cast %171 : vector<1x32x32xf32> to vector<32x32xf32>
    %cst_148 = arith.constant dense<0.000000e+00> : vector<20x32xf32>
    %173 = tpu.matmul %170, %172, %cst_148 {dimension_numbers = #tpu.dot_dimension_numbers<[1], [0], [0], [1], [0, 0, 1, 1], [], []>} : vector<20x32xf32>, vector<32x32xf32>, vector<20x32xf32> -> vector<20x32xf32>
    %c1_149 = arith.constant 1 : index
    %c0_150 = arith.constant 0 : index
    %c0_151 = arith.constant 0 : index
    %174 = vector.load %arg8[%c1_149, %c0_150, %c0_151] : memref<2x1x32xf32, #tpu.memory_space<vmem>>, vector<1x1x32xf32>
    %175 = vector.shape_cast %174 : vector<1x1x32xf32> to vector<1x32xf32>
    %176 = vector.broadcast %175 : vector<1x32xf32> to vector<20x32xf32>
    %177 = arith.addf %173, %176 : vector<20x32xf32>
    %178 = arith.addf %161, %177 : vector<20x32xf32>
    %c0_152 = arith.constant 0 : index
    %c0_153 = arith.constant 0 : index
    %179 = vector.load %arg9[%c0_152, %c0_153] : memref<32x32xf32, #tpu.memory_space<vmem>>, vector<32x32xf32>
    %cst_154 = arith.constant dense<0.000000e+00> : vector<20x32xf32>
    %180 = tpu.matmul %178, %179, %cst_154 {dimension_numbers = #tpu.dot_dimension_numbers<[1], [0], [0], [1], [0, 0, 1, 1], [], []>} : vector<20x32xf32>, vector<32x32xf32>, vector<20x32xf32> -> vector<20x32xf32>
    %c0_155 = arith.constant 0 : index
    %c0_156 = arith.constant 0 : index
    %181 = vector.load %arg10[%c0_155, %c0_156] : memref<1x32xf32, #tpu.memory_space<vmem>>, vector<1x32xf32>
    %182 = vector.broadcast %181 : vector<1x32xf32> to vector<20x32xf32>
    %183 = arith.addf %180, %182 : vector<20x32xf32>
    %cst_157 = arith.constant dense<0.000000e+00> : vector<80x32xf32>
    %184 = tpu.matmul %0, %113, %cst_157 {dimension_numbers = #tpu.dot_dimension_numbers<[1], [0], [0], [1], [0, 0, 1, 1], [], []>} : vector<80x24xf32>, vector<24x32xf32>, vector<80x32xf32> -> vector<80x32xf32>
    %cst_158 = arith.constant dense<0.000000e+00> : vector<80x32xf32>
    %185 = tpu.matmul %1, %183, %cst_158 {dimension_numbers = #tpu.dot_dimension_numbers<[1], [0], [0], [1], [0, 0, 1, 1], [], []>} : vector<80x20xf32>, vector<20x32xf32>, vector<80x32xf32> -> vector<80x32xf32>
    %186 = vector.extract_strided_slice %185 {offsets = [0, 0], sizes = [80, 8], strides = [1, 1]} : vector<80x32xf32> to vector<80x8xf32>
    %187 = vector.extract_strided_slice %185 {offsets = [0, 8], sizes = [80, 8], strides = [1, 1]} : vector<80x32xf32> to vector<80x8xf32>
    %188 = vector.extract_strided_slice %185 {offsets = [0, 16], sizes = [80, 8], strides = [1, 1]} : vector<80x32xf32> to vector<80x8xf32>
    %189 = vector.extract_strided_slice %185 {offsets = [0, 24], sizes = [80, 8], strides = [1, 1]} : vector<80x32xf32> to vector<80x8xf32>
    %c0_159 = arith.constant 0 : index
    %c0_160 = arith.constant 0 : index
    %190 = vector.load %arg11[%c0_159, %c0_160] : memref<32x64xf32, #tpu.memory_space<vmem>>, vector<32x64xf32>
    %cst_161 = arith.constant dense<0.000000e+00> : vector<80x64xf32>
    %191 = tpu.matmul %184, %190, %cst_161 {dimension_numbers = #tpu.dot_dimension_numbers<[1], [0], [0], [1], [0, 0, 1, 1], [], []>} : vector<80x32xf32>, vector<32x64xf32>, vector<80x64xf32> -> vector<80x64xf32>
    %c0_162 = arith.constant 0 : index
    %c0_163 = arith.constant 0 : index
    %192 = vector.load %arg12[%c0_162, %c0_163] : memref<8x64xf32, #tpu.memory_space<vmem>>, vector<8x64xf32>
    %cst_164 = arith.constant dense<0.000000e+00> : vector<80x64xf32>
    %193 = tpu.matmul %186, %192, %cst_164 {dimension_numbers = #tpu.dot_dimension_numbers<[1], [0], [0], [1], [0, 0, 1, 1], [], []>} : vector<80x8xf32>, vector<8x64xf32>, vector<80x64xf32> -> vector<80x64xf32>
    %194 = arith.addf %191, %193 : vector<80x64xf32>
    %c0_165 = arith.constant 0 : index
    %c0_166 = arith.constant 0 : index
    %195 = vector.load %arg13[%c0_165, %c0_166] : memref<1x64xf32, #tpu.memory_space<vmem>>, vector<1x64xf32>
    %196 = vector.broadcast %195 : vector<1x64xf32> to vector<80x64xf32>
    %197 = arith.addf %194, %196 : vector<80x64xf32>
    %c1_167 = arith.constant 1 : index
    %c0_168 = arith.constant 0 : index
    %c0_169 = arith.constant 0 : index
    %198 = vector.load %arg19[%c1_167, %c0_168, %c0_169] : memref<2x80x64xf32, #tpu.memory_space<vmem>>, vector<1x80x64xf32>
    %199 = vector.shape_cast %198 : vector<1x80x64xf32> to vector<80x64xf32>
    %200 = vector.shape_cast %197 : vector<80x64xf32> to vector<1x80x64xf32>
    tpu.vector_store %arg19[%c1_167, %c0_168, %c0_169], %200 {strides = array<i32>} : memref<2x80x64xf32, #tpu.memory_space<vmem>>, vector<1x80x64xf32>,
    %c0_170 = arith.constant 0 : index
    %c0_171 = arith.constant 0 : index
    %201 = vector.load %arg14[%c0_170, %c0_171] : memref<8x192xf32, #tpu.memory_space<vmem>>, vector<8x192xf32>
    %cst_172 = arith.constant dense<0.000000e+00> : vector<80x192xf32>
    %202 = tpu.matmul %187, %201, %cst_172 {dimension_numbers = #tpu.dot_dimension_numbers<[1], [0], [0], [1], [0, 0, 1, 1], [], []>} : vector<80x8xf32>, vector<8x192xf32>, vector<80x192xf32> -> vector<80x192xf32>
    %c1_173 = arith.constant 1 : index
    %c0_174 = arith.constant 0 : index
    %c0_175 = arith.constant 0 : index
    %203 = vector.load %arg20[%c1_173, %c0_174, %c0_175] : memref<2x80x192xf32, #tpu.memory_space<vmem>>, vector<1x80x192xf32>
    %204 = vector.shape_cast %203 : vector<1x80x192xf32> to vector<80x192xf32>
    %205 = vector.shape_cast %202 : vector<80x192xf32> to vector<1x80x192xf32>
    tpu.vector_store %arg20[%c1_173, %c0_174, %c0_175], %205 {strides = array<i32>} : memref<2x80x192xf32, #tpu.memory_space<vmem>>, vector<1x80x192xf32>,
    %c0_176 = arith.constant 0 : index
    %c0_177 = arith.constant 0 : index
    %206 = vector.load %arg15[%c0_176, %c0_177] : memref<8x64xf32, #tpu.memory_space<vmem>>, vector<8x64xf32>
    %cst_178 = arith.constant dense<0.000000e+00> : vector<80x64xf32>
    %207 = tpu.matmul %188, %206, %cst_178 {dimension_numbers = #tpu.dot_dimension_numbers<[1], [0], [0], [1], [0, 0, 1, 1], [], []>} : vector<80x8xf32>, vector<8x64xf32>, vector<80x64xf32> -> vector<80x64xf32>
    %c0_179 = arith.constant 0 : index
    %c0_180 = arith.constant 0 : index
    %208 = vector.load %arg16[%c0_179, %c0_180] : memref<1x64xf32, #tpu.memory_space<vmem>>, vector<1x64xf32>
    %209 = vector.broadcast %208 : vector<1x64xf32> to vector<80x64xf32>
    %210 = arith.addf %207, %209 : vector<80x64xf32>
    %c1_181 = arith.constant 1 : index
    %c0_182 = arith.constant 0 : index
    %c0_183 = arith.constant 0 : index
    %211 = vector.load %arg21[%c1_181, %c0_182, %c0_183] : memref<2x80x64xf32, #tpu.memory_space<vmem>>, vector<1x80x64xf32>
    %212 = vector.shape_cast %211 : vector<1x80x64xf32> to vector<80x64xf32>
    %213 = vector.shape_cast %210 : vector<80x64xf32> to vector<1x80x64xf32>
    tpu.vector_store %arg21[%c1_181, %c0_182, %c0_183], %213 {strides = array<i32>} : memref<2x80x64xf32, #tpu.memory_space<vmem>>, vector<1x80x64xf32>,
    %c0_184 = arith.constant 0 : index
    %c0_185 = arith.constant 0 : index
    %214 = vector.load %arg17[%c0_184, %c0_185] : memref<8x64xf32, #tpu.memory_space<vmem>>, vector<8x64xf32>
    %cst_186 = arith.constant dense<0.000000e+00> : vector<80x64xf32>
    %215 = tpu.matmul %189, %214, %cst_186 {dimension_numbers = #tpu.dot_dimension_numbers<[1], [0], [0], [1], [0, 0, 1, 1], [], []>} : vector<80x8xf32>, vector<8x64xf32>, vector<80x64xf32> -> vector<80x64xf32>
    %c0_187 = arith.constant 0 : index
    %c0_188 = arith.constant 0 : index
    %216 = vector.load %arg18[%c0_187, %c0_188] : memref<1x64xf32, #tpu.memory_space<vmem>>, vector<1x64xf32>
    %217 = vector.broadcast %216 : vector<1x64xf32> to vector<80x64xf32>
    %218 = arith.addf %215, %217 : vector<80x64xf32>
    %c1_189 = arith.constant 1 : index
    %c0_190 = arith.constant 0 : index
    %c0_191 = arith.constant 0 : index
    %219 = vector.load %arg22[%c1_189, %c0_190, %c0_191] : memref<2x80x64xf32, #tpu.memory_space<vmem>>, vector<1x80x64xf32>
    %220 = vector.shape_cast %219 : vector<1x80x64xf32> to vector<80x64xf32>
    %221 = vector.shape_cast %218 : vector<80x64xf32> to vector<1x80x64xf32>
    tpu.vector_store %arg22[%c1_189, %c0_190, %c0_191], %221 {strides = array<i32>} : memref<2x80x64xf32, #tpu.memory_space<vmem>>, vector<1x80x64xf32>,
    return
  }
}

</mosaic_0001>

<bundles_post_ra>
// kernel: tpu_custom_call.1
= control target key start
LH: loop header
LB: loop body
LE: loop exit
PB: predicated region body
PF: predicated region fallthrough
CT: control target
= control target key end

     0   :  { %s7279_s0 = inlined_call_operand.vmem [shape: f32[2,24,32], index: 0, kind: input, shape index: {}]   ;;  %s7280_s1 = inlined_call_operand.vmem [shape: f32[80,24], index: 1, kind: input, shape index: {}]   ;;  %s7281_s2 = inlined_call_operand.vmem [shape: f32[80,20], index: 2, kind: input, shape index: {}]   ;;  %s7282_s3 = inlined_call_operand.vmem [shape: f32[5,32,32], index: 3, kind: input, shape index: {}]   ;;  %s7283_s4 = inlined_call_operand.vmem [shape: f32[1,32], index: 4, kind: input, shape index: {}]   ;;  %s7284_s5 = inlined_call_operand.hbm [shape: f32[2,32,32], index: 5, kind: input, shape index: {}]   ;;  %s7285_s6 = inlined_call_operand.hbm [shape: f32[2,1,32], index: 6, kind: input, shape index: {}]   ;;  %s7286_s7 = inlined_call_operand.hbm [shape: f32[2,32,32], index: 7, kind: input, shape index: {}]   ;;  %s7287_s8 = inlined_call_operand.hbm [shape: f32[2,1,32], index: 8, kind: input, shape index: {}]   ;;  %s7288_s9 = inlined_call_operand.hbm [shape: f32[32,32], index: 9, kind: input, shape index: {}]   ;;  %s7289_s10 = inlined_call_operand.hbm [shape: f32[1,32], index: 10, kind: input, shape index: {}]   ;;  %s7290_s11 = inlined_call_operand.hbm [shape: f32[32,64], index: 11, kind: input, shape index: {}]   ;;  %s7291_s12 = inlined_call_operand.hbm [shape: f32[8,64], index: 12, kind: input, shape index: {}]   ;;  %s7292_s13 = inlined_call_operand.hbm [shape: f32[1,64], index: 13, kind: input, shape index: {}]   ;;  %s7293_s14 = inlined_call_operand.vmem [shape: f32[8,192], index: 14, kind: input, shape index: {}]   ;;  %s7294_s15 = inlined_call_operand.vmem [shape: f32[8,64], index: 15, kind: input, shape index: {}]   ;;  %s7295_s16 = inlined_call_operand.vmem [shape: f32[1,64], index: 16, kind: input, shape index: {}]   ;;  %s7296_s17 = inlined_call_operand.hbm [shape: f32[8,64], index: 17, kind: input, shape index: {}]   ;;  %s7297_s18 = inlined_call_operand.vmem [shape: f32[1,64], index: 18, kind: input, shape index: {}]   ;;  %s7298_s19 = inlined_call_operand.vmem [shape: f32[2,80,64], index: 19, kind: output, shape index: {0}]   ;;  %s7299_s20 = inlined_call_operand.hbm [shape: f32[2,80,192], index: 20, kind: output, shape index: {1}]   ;;  %s7300_s21 = inlined_call_operand.vmem [shape: f32[2,80,64], index: 21, kind: output, shape index: {2}]   ;;  %s7301_s22 = inlined_call_operand.vmem [shape: f32[2,80,64], index: 22, kind: output, shape index: {3}]  }
   0x1   :  { %7307 = sst [smem:[#allocation27_spill]] %s7279_s0 }
   0x2   :  { %7308 = sst [smem:[#allocation28_spill]] %s7280_s1 }
   0x3   :  { %7309 = sst [smem:[#allocation29_spill]] %s7281_s2 }
   0x4   :  { %7310 = sst [smem:[#allocation30_spill]] %s7282_s3 }
   0x5   :  { %7311 = sst [smem:[#allocation31_spill]] %s7283_s4 }
   0x6   :  { %7312 = sst [smem:[#allocation32_spill]] %s7284_s5 }
   0x7   :  { %7313 = sst [smem:[#allocation33_spill]] %s7285_s6 }
   0x8   :  { %28 = vsyncpa [#allocation3], 0 }
   0x9   :  { %29 = vsyncpa [#allocation6], 0 }
   0xa   :  { %30 = vsyncpa [#allocation9], 0 }
   0xb   :  { %31 = vsyncpa [#allocation12], 0 }
   0xc   :  { %32 = vsyncpa [#allocation15], 0 }
   0xd   :  { %33 = vsyncpa [#allocation18], 0 }
   0xe   :  { %34 = vsyncpa [#allocation4], 0  ;;  %s5945_s3 = smov [#allocation5]  }
   0xf   :  { %s62_s28 = sshll.u32 %s5945_s3, 4  ;;  %s63_s28 = int_to_ptr.vmem [resolvable:$true] %s62_s28 }
  0x10   :  { %s5719_s29 = scalar_lea.vmem %s63_s28, 32  ;;  %p5724_p1 = scmp.lt.s32.totalorder %s63_s28, %s63_s28 }
  0x11   :  { %p5720_p0 = scmp.ne.s32.totalorder %s63_s28, %s5719_s29  ;;  %p5725_p2 = scmp.lt.s32.totalorder %s5719_s29, %s5719_s29 }
  0x13   :  { %p5726_p3 = por %p5725_p2, %p5724_p1 }
  0x15   :  { %p5727_p4 = pnand %p5726_p3, %p5720_p0 }
  0x17   :  { %5730 = shalt.err (!%p5727_p4)
}
  0x18   :  { %s5946_s30 = smov 16   ;;  %s5947_s4 = smov 1  }
  0x19   :  { %s7314_s1 = sld [smem:[#allocation33_spill]]  ;;  %s5948_s5 = smov [#allocation8]  }
  0x1a   :  { %s86_s24 = sshll.u32 %s5948_s5, 4  ;;  %s5949_s6 = smov [#allocation11]   ;;  %s87_s24 = int_to_ptr.vmem [resolvable:$true] %s86_s24 }
  0x1b   :  { %s111_s25 = sshll.u32 %s5949_s6, 4  ;;  %s5739_s26 = scalar_lea.vmem %s87_s24, 32  ;;  %s112_s25 = int_to_ptr.vmem [resolvable:$true] %s111_s25 }
  0x1c   :  { %p5740_p5 = scmp.ne.s32.totalorder %s87_s24, %s5739_s26  ;;  %p5744_p6 = scmp.lt.s32.totalorder %s87_s24, %s87_s24 }
  0x1d   :  { %p5745_p7 = scmp.lt.s32.totalorder %s5739_s26, %s5739_s26 }
  0x1f   :  { %68 = dma.hbm_to_vmem [thread:$0]  %s7314_s1, 32, %s63_s28, [#allocation6], %s5946_s30, %s5946_s30, %s5947_s4  }
  0x20   :  { %p5746_p8 = por %p5745_p7, %p5744_p6 }
  0x22   :  { %p5747_p9 = pnand %p5746_p8, %p5740_p5 }
  0x24   :  { %5750 = shalt.err (!%p5747_p9)
}
  0x25   :  { %92 = dma.hbm_to_vmem [thread:$0]  %s7287_s8, 32, %s87_s24, [#allocation9], %s5946_s30, %s5946_s30, %s5947_s4  }
  0x26   :  { %s5759_s3 = scalar_lea.vmem %s112_s25, 16  ;;  %s5763_s28 = scalar_lea.vmem %s112_s25, 32 }
  0x27   :  { %p5760_p10 = scmp.ne.s32.totalorder %s112_s25, %s5759_s3  ;;  %p5764_p11 = scmp.lt.s32.totalorder %s112_s25, %s112_s25 }
  0x28   :  { %p5765_p12 = scmp.lt.s32.totalorder %s5763_s28, %s5759_s3 }
  0x2a   :  { %p5766_p13 = por %p5765_p12, %p5764_p11 }
  0x2c   :  { %p5767_p0 = pnand %p5766_p13, %p5760_p10 }
  0x2e   :  { %5770 = shalt.err (!%p5767_p0)
}
  0x2f   :  { %114 = dma.hbm_to_vmem [thread:$0]  %s7289_s10, 16, %s112_s25, [#allocation12]  }
  0x30   :  { %s5950_s23 = smov [#allocation14]   ;;  %s5951_s5 = smov [#allocation2]  }
  0x31   :  { %s133_s1 = sshll.u32 %s5950_s23, 4  ;;  %s50_s6 = sshll.u32 %s5951_s5, 4  ;;  %s134_s1 = int_to_ptr.vmem [resolvable:$true] %s133_s1  ;;  %s51_s6 = int_to_ptr.vmem [resolvable:$true] %s50_s6 }
  0x32   :  { %s5779_s26 = scalar_lea.vmem %s134_s1, 128  ;;  %p5784_p2 = scmp.lt.s32.totalorder %s134_s1, %s134_s1 }
  0x33   :  { %p5780_p1 = scmp.ne.s32.totalorder %s134_s1, %s5779_s26  ;;  %p5785_p3 = scmp.lt.s32.totalorder %s5779_s26, %s5779_s26 }
  0x35   :  { %p5786_p4 = por %p5785_p3, %p5784_p2 }
  0x37   :  { %p5787_p5 = pnand %p5786_p4, %p5780_p1 }
  0x39   :  { %5790 = shalt.err (!%p5787_p5)
}
  0x3a   :  { %136 = dma.hbm_to_vmem [thread:$0]  %s7291_s12, 128, %s134_s1, [#allocation15]  }
  0x3b   :  { %s5799_s24 = scalar_lea.vmem %s51_s6, 1024  ;;  %p5804_p7 = scmp.lt.s32.totalorder %s51_s6, %s51_s6 }
  0x3c   :  { %p5800_p6 = scmp.ne.s32.totalorder %s51_s6, %s5799_s24  ;;  %p5805_p8 = scmp.lt.s32.totalorder %s5799_s24, %s5799_s24 }
  0x3e   :  { %p5806_p9 = por %p5805_p8, %p5804_p7 }
  0x40   :  { %p5807_p10 = pnand %p5806_p9, %p5800_p6 }
  0x42   :  { %5810 = shalt.err (!%p5807_p10)
}
  0x43   :  { %s5952_s10 = smov 128   ;;  %s5953_s25 = smov 8  }
  0x44   :  { %s7315_s3 = sld [smem:[#allocation32_spill]]  ;;  %s5954_s28 = smov [#allocation7]  }
  0x45   :  { %s74_s29 = sshll.u32 %s5954_s28, 4  ;;  %s5955_s12 = smov [#allocation10]   ;;  %s75_s29 = int_to_ptr.vmem [resolvable:$true] %s74_s29 }
  0x46   :  { %s98_s0 = sshll.u32 %s5955_s12, 4  ;;  %s5819_s23 = scalar_lea.vmem %s75_s29, 1024  ;;  %s99_s0 = int_to_ptr.vmem [resolvable:$true] %s98_s0 }
  0x47   :  { %p5820_p11 = scmp.ne.s32.totalorder %s75_s29, %s5819_s23  ;;  %p5824_p12 = scmp.lt.s32.totalorder %s75_s29, %s75_s29 }
  0x48   :  { %p5825_p13 = scmp.lt.s32.totalorder %s5819_s23, %s5819_s23 }
  0x4a   :  { %56 = dma.hbm_to_vmem [thread:$0]  %s7315_s3, 1024, %s51_s6, [#allocation3], %s5952_s10, %s5952_s10, %s5953_s25  }
  0x4b   :  { %p5826_p0 = por %p5825_p13, %p5824_p12 }
  0x4d   :  { %p5827_p1 = pnand %p5826_p0, %p5820_p11 }
  0x4f   :  { %5830 = shalt.err (!%p5827_p1)
}
  0x50   :  { %80 = dma.hbm_to_vmem [thread:$0]  %s7286_s7, 1024, %s75_s29, [#allocation6], %s5952_s10, %s5952_s10, %s5953_s25  }
  0x51   :  { %s5839_s6 = scalar_lea.vmem %s99_s0, 512  ;;  %p5844_p3 = scmp.lt.s32.totalorder %s99_s0, %s99_s0 }
  0x52   :  { %p5840_p2 = scmp.ne.s32.totalorder %s99_s0, %s5839_s6  ;;  %p5845_p4 = scmp.lt.s32.totalorder %s5839_s6, %s5839_s6 }
  0x54   :  { %p5846_p5 = por %p5845_p4, %p5844_p3 }
  0x56   :  { %p5847_p6 = pnand %p5846_p5, %p5840_p2 }
  0x58   :  { %5850 = shalt.err (!%p5847_p6)
}
  0x59   :  { %104 = dma.hbm_to_vmem [thread:$0]  %s7288_s9, 512, %s99_s0, [#allocation9], %s5952_s10, %s5952_s10, %s5953_s25  }
  0x5a   :  { %s5956_s4 = smov [#allocation13]   ;;  %s5957_s2 = smov [#allocation16]  }
  0x5b   :  { %s120_s24 = sshll.u32 %s5956_s4, 4  ;;  %s143_s7 = sshll.u32 %s5957_s2, 4  ;;  %s121_s24 = int_to_ptr.vmem [resolvable:$true] %s120_s24  ;;  %s144_s7 = int_to_ptr.vmem [resolvable:$true] %s143_s7 }
  0x5c   :  { %s5859_s27 = scalar_lea.vmem %s121_s24, 512  ;;  %p5864_p8 = scmp.lt.s32.totalorder %s121_s24, %s121_s24 }
  0x5d   :  { %p5860_p7 = scmp.ne.s32.totalorder %s121_s24, %s5859_s27  ;;  %p5865_p9 = scmp.lt.s32.totalorder %s5859_s27, %s5859_s27 }
  0x5f   :  { %p5866_p10 = por %p5865_p9, %p5864_p8 }
  0x61   :  { %p5867_p11 = pnand %p5866_p10, %p5860_p7 }
  0x63   :  { %5870 = shalt.err (!%p5867_p11)
}
  0x64   :  { %126 = dma.hbm_to_vmem [thread:$0]  %s7290_s11, 512, %s121_s24, [#allocation12], %s5952_s10, %s5952_s10, %s5953_s25  }
  0x65   :  { %s5879_s9 = scalar_lea.vmem %s144_s7, 16  ;;  %s5883_s29 = scalar_lea.vmem %s144_s7, 32 }
  0x66   :  { %p5880_p12 = scmp.ne.s32.totalorder %s144_s7, %s5879_s9  ;;  %p5884_p13 = scmp.lt.s32.totalorder %s144_s7, %s144_s7 }
  0x67   :  { %p5885_p0 = scmp.lt.s32.totalorder %s5883_s29, %s5879_s9 }
  0x69   :  { %p5886_p1 = por %p5885_p0, %p5884_p13 }
  0x6b   :  { %p5887_p2 = pnand %p5886_p1, %p5880_p12 }
  0x6d   :  { %5890 = shalt.err (!%p5887_p2)
}
  0x6e   :  { %146 = dma.hbm_to_vmem [thread:$0]  %s7292_s13, 16, %s144_s7, [#allocation15]  }
  0x6f   :  { %s5958_s23 = smov [#allocation17]  }
  0x70   :  { %s159_s1 = sshll.u32 %s5958_s23, 4  ;;  %s160_s1 = int_to_ptr.vmem [resolvable:$true] %s159_s1 }
  0x71   :  { %s5899_s5 = scalar_lea.vmem %s160_s1, 128  ;;  %p5904_p4 = scmp.lt.s32.totalorder %s160_s1, %s160_s1 }
  0x72   :  { %p5900_p3 = scmp.ne.s32.totalorder %s160_s1, %s5899_s5  ;;  %p5905_p5 = scmp.lt.s32.totalorder %s5899_s5, %s5899_s5 }
  0x74   :  { %p5906_p6 = por %p5905_p5, %p5904_p4 }
  0x76   :  { %p5907_p7 = pnand %p5906_p6, %p5900_p3 }
  0x78   :  { %5910 = shalt.err (!%p5907_p7)
}
  0x79   :  { %162 = dma.hbm_to_vmem [thread:$0]  %s7296_s17, 128, %s160_s1, [#allocation18]  }
  0x7a   :  { %5931 = dma.done.wait [#allocation3], 1024  }
  0x7b   :  { %5932 = vsyncadd [#allocation3], 4294966272 }
  0x7c   :  { %5933 = dma.done.wait [#allocation6], 1056  }
  0x7d   :  { %5934 = vsyncadd [#allocation6], 4294966240 }
  0x7e   :  { %5935 = dma.done.wait [#allocation9], 544  }
  0x7f   :  { %5936 = vsyncadd [#allocation9], 4294966752 }
  0x80   :  { %5937 = dma.done.wait [#allocation12], 528  }
  0x81   :  { %5938 = vsyncadd [#allocation12], 4294966768 }
  0x82   :  { %5939 = dma.done.wait [#allocation15], 144  }
  0x83   :  { %5940 = vsyncadd [#allocation15], 4294967152 }
  0x84   :  { %5941 = dma.done.wait [#allocation18], 128  }
  0x85   :  { %5942 = vsyncadd [#allocation18], 4294967168  ;;  %v5959_v0 = vmov 0.0   ;;  %vm5960_vm0 = vmmov 0   ;;  %s7316_s25 = sld [smem:[#allocation30_spill]]  ;;  %vm230_vm1 = vcmask 1046528  }
  0x86   :  { %5098 = vmatprep.subr.mxu0 %v5959_v0  ;;  %5115 = vmatprep.subr.mxu1 %v5959_v0  ;;  %s7317_s12 = sld [smem:[#allocation27_spill]]  ;;  %vm236_vm2 = vcmask 261120   ;;  %vm414_vm3 = vcmask 1045504   ;;  %vm514_vm4 = vcmask 1044480   ;;  %vm614_vm5 = vcmask 1043456   ;;  %v725_v44 = vld [vmem:[#allocation2 + $0x18] sm:$0xff] }
  0x87   :  { %5106 = vmatprep.mubr.msk.f32.mxu0 %vm5960_vm0, %v5959_v0  ;;  %5123 = vmatprep.mubr.msk.f32.mxu1 %vm5960_vm0, %v5959_v0  ;;  %v724_v45 = vld [vmem:[#allocation2 + $0x10] sm:$0xff]  ;;  %v723_v46 = vld [vmem:[#allocation2 + $0x8] sm:$0xff]  ;;  %v722_v47 = vld [vmem:[#allocation2] sm:$0xff]  ;;  %s7318_s7 = sld [smem:[#allocation31_spill]]  ;;  %vm1238_vm6 = vcmask 195584   ;;  %vm1384_vm7 = vcmask 162816  }
  0x88   :  { %v828_v48 = vld [vmem:[#allocation7 + $0x18] sm:$0xff]  ;;  %s7319_s28 = sld [smem:[#allocation28_spill]]  ;;  %vm1538_vm8 = vcmask 64512   ;;  %s5961_s17 = smov 120   ;;  %vm1846_vm9 = vcmask 523264  }
  0x89   :  { %s7320_s0 = sld [smem:[#allocation29_spill]]  ;;  %s5962_s8 = smov 112  }
  0x8a   :  { %s5963_s4 = smov 104   ;;  %s5964_s1 = smov [#allocation19]  }
  0x8b   :  { %v6136_v1 = vld [vmem:[%s7316_s25 + $0x38] sm:$0xff]  ;;  %v6144_v3 = vld [vmem:[%s7316_s25 + $0x30] sm:$0xff]  ;;  %v4528_v5 = vld [vmem:[%s7316_s25 + $0x28] sm:$0xff]  ;;  %s4500_s5 = sshll.u32 %s5964_s1, 4  ;;  %s4501_s5 = int_to_ptr.vmem [resolvable:$true] %s4500_s5 }
  0x8c   :  { %v221_v2 = vld [vmem:[%s7316_s25 + $0x18] sm:$0xff]  ;;  %5099 = vmatpush3.msra.mxu0 %v6136_v1  ;;  %v220_v4 = vld [vmem:[%s7316_s25 + $0x10] sm:$0xff]  ;;  %v219_v6 = vld [vmem:[%s7316_s25 + $0x8] sm:$0xff]  ;;  %s5911_s13 = scalar_lea.vmem %s4501_s5, 5120  ;;  %p5916_p9 = scmp.lt.s32.totalorder %s4501_s5, %s4501_s5 }
  0x8d   :  { %5116 = vmatpush3.msra.mxu1 %v221_v2  ;;  %5100 = vmatprep.subr.mxu0 %v5959_v0  ;;  %v6161_v7 = vld [vmem:[%s7317_s12] sm:$0xff]  ;;  %v6167_v8 = vld [vmem:[%s7317_s12 + $0x8] sm:$0xff]  ;;  %v6173_v10 = vld [vmem:[%s7317_s12 + $0x10] sm:$0xff]  ;;  %p5912_p8 = scmp.ne.s32.totalorder %s4501_s5, %s5911_s13  ;;  %p5917_p10 = scmp.lt.s32.totalorder %s5911_s13, %s5911_s13 }
  0x8e   :  { %5117 = vmatprep.subr.mxu1 %v5959_v0  ;;  %5101 = vmatpush3.msra.mxu0 %v6144_v3  ;;  %v231_v9 = vrot.slane %v6161_v7, 1  ;;  %v4527_v11 = vld [vmem:[%s7316_s25 + $0x20] sm:$0xff]  ;;  %v232_v13 = vrot.slane %v6167_v8, 1  ;;  %v234_v14 = vrot.slane %v6173_v10, 1  ;;  %v4540_v16 = vld [vmem:[%s7316_s25 + $0x58] sm:$0xff]  ;;  %v4539_v19 = vld [vmem:[%s7316_s25 + $0x50] sm:$0xff] }
  0x8f   :  { %5118 = vmatpush3.msra.mxu1 %v220_v4  ;;  %5102 = vmatprep.subr.mxu0 %v5959_v0  ;;  %v218_v12 = vld [vmem:[%s7316_s25] sm:$0xff]  ;;  %v4547_v17 = vld [vmem:[%s7316_s25 + $0x78] sm:$0xff]  ;;  %v415_v20 = vrot.slane %v6161_v7, 2  ;;  %v416_v21 = vrot.slane %v6167_v8, 2  ;;  %v4538_v22 = vld [vmem:[%s7316_s25 + $0x48] sm:$0xff]  ;;  %v515_v25 = vrot.slane %v6161_v7, 3  ;;  %p5918_p11 = por %p5917_p10, %p5916_p9 }
  0x90   :  { %5119 = vmatprep.subr.mxu1 %v5959_v0  ;;  %5103 = vmatpush3.msra.mxu0 %v4528_v5  ;;  %v233_v15 = vsel %vm230_vm1, %v231_v9, %v232_v13  ;;  %v235_v18 = vsel %vm230_vm1, %v232_v13, %v234_v14  ;;  %v4546_v23 = vld [vmem:[%s7316_s25 + $0x70] sm:$0xff]  ;;  %v4537_v24 = vld [vmem:[%s7316_s25 + $0x40] sm:$0xff]  ;;  %v516_v26 = vrot.slane %v6167_v8, 3  ;;  %v4545_v27 = vld [vmem:[%s7316_s25 + $0x68] sm:$0xff]  ;;  %v418_v29 = vrot.slane %v6173_v10, 2 }
  0x91   :  { %5120 = vmatpush3.msra.mxu1 %v219_v6  ;;  %5104 = vmatprep.subr.mxu0 %v5959_v0  ;;  %v417_v28 = vsel %vm414_vm3, %v415_v20, %v416_v21  ;;  %v4544_v30 = vld [vmem:[%s7316_s25 + $0x60] sm:$0xff]  ;;  %v518_v32 = vrot.slane %v6173_v10, 3  ;;  %v4554_v34 = vld [vmem:[%s7316_s25 + $0x98] sm:$0xff]  ;;  %v4553_v36 = vld [vmem:[%s7316_s25 + $0x90] sm:$0xff]  ;;  %v615_v37 = vrot.slane %v6161_v7, 4  ;;  %v616_v38 = vrot.slane %v6167_v8, 4  ;;  %p5919_p12 = pnand %p5918_p11, %p5912_p8 }
  0x92   :  { %5121 = vmatprep.subr.mxu1 %v5959_v0  ;;  %5105 = vmatpush3.msra.mxu0 %v4527_v11  ;;  %v517_v31 = vsel %vm514_vm4, %v515_v25, %v516_v26  ;;  %v419_v33 = vsel %vm414_vm3, %v416_v21, %v418_v29  ;;  %v4552_v39 = vld [vmem:[%s7316_s25 + $0x88] sm:$0xff]  ;;  %v4551_v40 = vld [vmem:[%s7316_s25 + $0x80] sm:$0xff]  ;;  %v618_v42 = vrot.slane %v6173_v10, 4 }
  0x93   :  { %5122 = vmatpush3.msra.mxu1 %v218_v12  ;;  %5107 = vmatmul.mubr.msk.f32.vlgmr.msra.gmra.mxu0 %vm236_vm2, %v233_v15  ;;  %v519_v35 = vsel %vm514_vm4, %v516_v26, %v518_v32  ;;  %v617_v41 = vsel %vm614_vm5, %v615_v37, %v616_v38  ;;  %v4558_v20 = vld [vmem:[%s7318_s7] ss:$0 sm:$0xff] }
  0x94   :  { %5124 = vmatmul.mubr.msk.f32.vlgmr.msra.gmra.mxu1 %vm236_vm2, %v6161_v7  ;;  %5109 = vmatprep.mubr.msk.f32.mxu0 %vm5960_vm0, %v5959_v0  ;;  %v619_v43 = vsel %vm614_vm5, %v616_v38, %v618_v42 }
  0x95   :  { %5126 = vmatprep.mubr.msk.f32.mxu1 %vm5960_vm0, %v5959_v0  ;;  %5132 = vmatprep.subr.mxu0 %v5959_v0 }
  0x96   :  { %5149 = vmatprep.subr.mxu1 %v5959_v0  ;;  %5133 = vmatpush3.msra.mxu0 %v4540_v16 }
  0x97   :  { %5150 = vmatpush3.msra.mxu1 %v4547_v17  ;;  %5110 = vmatmul.mubr.msk.f32.gmra.mxu0 %vm236_vm2, %v235_v18 }
  0x98   :  { %5127 = vmatmul.mubr.msk.f32.gmra.mxu1 %vm236_vm2, %v6167_v8  ;;  %5134 = vmatprep.subr.mxu0 %v5959_v0 }
  0x99   :  { %5112 = vmatprep.mubr.msk.f32.mxu0 %vm5960_vm0, %v5959_v0  ;;  %5129 = vmatprep.mubr.msk.f32.mxu1 %vm5960_vm0, %v5959_v0 }
  0x9a   :  { %5135 = vmatpush3.msra.mxu0 %v4539_v19  ;;  %5151 = vmatprep.subr.mxu1 %v5959_v0 }
  0x9b   :  { %5136 = vmatprep.subr.mxu0 %v5959_v0  ;;  %5113 = vmatmul.mubr.msk.f32.gmra.mxu0 %vm236_vm2, %v234_v14 }
  0x9c   :  { %5130 = vmatmul.mubr.msk.f32.gmra.mxu1 %vm236_vm2, %v6173_v10  ;;  %5137 = vmatpush3.msra.mxu0 %v4538_v22 }
  0x9d   :  { %5152 = vmatpush3.msra.mxu1 %v4546_v23  ;;  %5138 = vmatprep.subr.mxu0 %v5959_v0 }
  0x9e   :  { %5153 = vmatprep.subr.mxu1 %v5959_v0  ;;  %5139 = vmatpush3.msra.mxu0 %v4537_v24 }
  0x9f   :  { %5140 = vmatprep.mubr.msk.f32.mxu0 %vm5960_vm0, %v5959_v0  ;;  %5154 = vmatpush3.msra.mxu1 %v4545_v27 }
  0xa0   :  { %5141 = vmatmul.mubr.msk.f32.vlgmr.msra.gmra.mxu0 %vm236_vm2, %v417_v28  ;;  %5155 = vmatprep.subr.mxu1 %v5959_v0 }
  0xa1   :  { %5157 = vmatprep.mubr.msk.f32.mxu1 %vm5960_vm0, %v5959_v0  ;;  %5156 = vmatpush3.msra.mxu1 %v4544_v30 }
  0xa2   :  { %5143 = vmatprep.mubr.msk.f32.mxu0 %vm5960_vm0, %v5959_v0  ;;  %5158 = vmatmul.mubr.msk.f32.vlgmr.msra.gmra.mxu1 %vm236_vm2, %v517_v31 }
  0xa3   :  { %5166 = vmatprep.subr.mxu0 %v5959_v0  ;;  %5160 = vmatprep.mubr.msk.f32.mxu1 %vm5960_vm0, %v5959_v0 }
  0xa4   :  { %5144 = vmatmul.mubr.msk.f32.gmra.mxu0 %vm236_vm2, %v419_v33  ;;  %5183 = vmatprep.subr.mxu1 %v5959_v0 }
  0xa5   :  { %5167 = vmatpush3.msra.mxu0 %v4554_v34  ;;  %5146 = vmatprep.mubr.msk.f32.mxu0 %vm5960_vm0, %v5959_v0 }
  0xa6   :  { %5168 = vmatprep.subr.mxu0 %v5959_v0  ;;  %5161 = vmatmul.mubr.msk.f32.gmra.mxu1 %vm236_vm2, %v519_v35 }
  0xa7   :  { %5169 = vmatpush3.msra.mxu0 %v4553_v36  ;;  %5163 = vmatprep.mubr.msk.f32.mxu1 %vm5960_vm0, %v5959_v0 }
  0xa8   :  { %5147 = vmatmul.mubr.msk.f32.gmra.mxu0 %vm236_vm2, %v418_v29  ;;  %5170 = vmatprep.subr.mxu0 %v5959_v0 }
  0xa9   :  { %5171 = vmatpush3.msra.mxu0 %v4552_v39  ;;  %5174 = vmatprep.mubr.msk.f32.mxu0 %vm5960_vm0, %v5959_v0 }
  0xaa   :  { %5172 = vmatprep.subr.mxu0 %v5959_v0  ;;  %5164 = vmatmul.mubr.msk.f32.gmra.mxu1 %vm236_vm2, %v518_v32 }
  0xab   :  { %5173 = vmatpush3.msra.mxu0 %v4551_v40  ;;  %5191 = vmatprep.mubr.msk.f32.mxu1 %vm5960_vm0, %v5959_v0  ;;  %v827_v40 = vld [vmem:[#allocation7 + $0x10] sm:$0xff] }
  0xac   :  { %5175 = vmatmul.mubr.msk.f32.vlgmr.msra.gmra.mxu0 %vm236_vm2, %v617_v41  ;;  %5200 = vmatprep.subr.mxu0 %v5959_v0  ;;  %v826_v41 = vld [vmem:[#allocation7 + $0x8] sm:$0xff] }
  0xad   :  { %5177 = vmatprep.mubr.msk.f32.mxu0 %vm5960_vm0, %v5959_v0  ;;  %5184 = vmatpush3.msra.mxu1 %v725_v44  ;;  %v4559_v44 = vld [vmem:[#allocation5] ss:$0 sm:$0xff] }
  0xae   :  { %5185 = vmatprep.subr.mxu1 %v5959_v0  ;;  %5201 = vmatpush3.msra.mxu0 %v828_v48 }
  0xaf   :  { %5186 = vmatpush3.msra.mxu1 %v724_v45  ;;  %5202 = vmatprep.subr.mxu0 %v5959_v0 }
  0xb0   :  { %5178 = vmatmul.mubr.msk.f32.gmra.mxu0 %vm236_vm2, %v619_v43  ;;  %5187 = vmatprep.subr.mxu1 %v5959_v0  ;;  %v932_v43 = vld [vmem:[#allocation2 + $0x38] sm:$0xff] }
  0xb1   :  { %5180 = vmatprep.mubr.msk.f32.mxu0 %vm5960_vm0, %v5959_v0  ;;  %5188 = vmatpush3.msra.mxu1 %v723_v46 }
  0xb2   :  { %5189 = vmatprep.subr.mxu1 %v5959_v0  ;;  %5203 = vmatpush3.msra.mxu0 %v827_v40 }
  0xb3   :  { %5190 = vmatpush3.msra.mxu1 %v722_v47  ;;  %5204 = vmatprep.subr.mxu0 %v5959_v0 }
  0xb4   :  { %5181 = vmatmul.mubr.msk.f32.gmra.mxu0 %vm236_vm2, %v618_v42  ;;  %5217 = vmatprep.subr.mxu1 %v5959_v0  ;;  %v825_v42 = vld [vmem:[#allocation7] sm:$0xff] }
  0xb5   :  { %5208 = vmatprep.mubr.msk.f32.mxu0 %vm5960_vm0, %v5959_v0  ;;  %5205 = vmatpush3.msra.mxu0 %v826_v41 }
  0xb6   :  { %5206 = vmatprep.subr.mxu0 %v5959_v0 }
  0xb7   :  { %5207 = vmatpush3.msra.mxu0 %v825_v42 }
  0xb8   :  { %5234 = vmatprep.subr.mxu0 %v5959_v0 }
 0x153   :  { %v309_v49 = vpop.f32.mrf.mxu0 }
 0x154   :  { %v395_v50 = vpop.f32.mrf.mxu1 }
 0x155   :  { %v5108_v51 = vpop.f32.mrf.mxu0  ;;  %v396_v4 = vadd.f32 %v395_v50, %v309_v49 }
 0x156   :  { %v5125_v52 = vpop.f32.mrf.mxu1 }
 0x157   :  { %v314_v53 = vpop.f32.mrf.mxu0 }
 0x158   :  { %v400_v54 = vpop.f32.mrf.mxu1 }
 0x159   :  { %v5111_v55 = vpop.f32.mrf.mxu0  ;;  %v401_v13 = vadd.f32 %v400_v54, %v314_v53 }
 0x15a   :  { %v5128_v56 = vpop.f32.mrf.mxu1 }
 0x15b   :  { %v319_v57 = vpop.f32.mrf.mxu0 }
 0x15c   :  { %v405_v58 = vpop.f32.mrf.mxu1 }
 0x15d   :  { %v5114_v59 = vpop.f32.mrf.mxu0  ;;  %v406_v21 = vadd.f32 %v405_v58, %v319_v57  ;;  %v931_v57 = vld [vmem:[#allocation2 + $0x30] sm:$0xff]  ;;  %v930_v58 = vld [vmem:[#allocation2 + $0x28] sm:$0xff] }
 0x15e   :  { %v5131_v60 = vpop.f32.mrf.mxu1  ;;  %v929_v59 = vld [vmem:[#allocation2 + $0x20] sm:$0xff] }
 0x15f   :  { %v1037_v60 = vld [vmem:[#allocation7 + $0x38] sm:$0xff] }
 0x160   :  { %v492_v61 = vpop.f32.mrf.mxu0 }
 0x161   :  { %v506_v9 = vadd.f32 %v492_v61, %v396_v4  ;;  %v4563_v61 = vld [vmem:[#allocation8] ss:$0 sm:$0xff] }
 0x162   :  { %v5142_v62 = vpop.f32.mrf.mxu0  ;;  %v592_v63 = vpop.f32.mrf.mxu1 }
 0x163   :  { %v606_v16 = vadd.f32 %v592_v63, %v506_v9 }
 0x164   :  { %v497_v2 = vpop.f32.mrf.mxu0  ;;  %v5159_v5 = vpop.f32.mrf.mxu1 }
 0x165   :  { %v507_v17 = vadd.f32 %v497_v2, %v401_v13 }
 0x166   :  { %v5145_v6 = vpop.f32.mrf.mxu0  ;;  %v597_v11 = vpop.f32.mrf.mxu1 }
 0x167   :  { %v607_v25 = vadd.f32 %v597_v11, %v507_v17  ;;  %v1035_v17 = vld [vmem:[#allocation7 + $0x28] sm:$0xff] }
 0x168   :  { %v502_v12 = vpop.f32.mrf.mxu0  ;;  %v5162_v14 = vpop.f32.mrf.mxu1 }
 0x169   :  { %v508_v26 = vadd.f32 %v502_v12, %v406_v21 }
 0x16a   :  { %v5148_v15 = vpop.f32.mrf.mxu0  ;;  %v602_v18 = vpop.f32.mrf.mxu1 }
 0x16b   :  { %v608_v32 = vadd.f32 %v602_v18, %v508_v26  ;;  %v1034_v18 = vld [vmem:[#allocation7 + $0x20] sm:$0xff] }
 0x16c   :  { %v692_v19 = vpop.f32.mrf.mxu0  ;;  %v5165_v23 = vpop.f32.mrf.mxu1 }
 0x16d   :  { %v706_v22 = vadd.f32 %v692_v19, %v606_v16  ;;  %v1036_v16 = vld [vmem:[#allocation7 + $0x30] sm:$0xff]  ;;  %v1141_v19 = vld [vmem:[#allocation10 + $0x18] sm:$0xff] }
 0x16e   :  { %v5176_v24 = vpop.f32.mrf.mxu0 }
 0x16f   :  { %v6310_v27 = vadd.f32 %v4558_v20, %v706_v22 }
 0x170   :  { %v697_v28 = vpop.f32.mrf.mxu0 }
 0x171   :  { %v719_v29 = vmax.f32 %v6310_v27, 0.0  ;;  %v707_v30 = vadd.f32 %v697_v28, %v607_v25 }
 0x172   :  { %v5179_v31 = vpop.f32.mrf.mxu0 }
 0x173   :  { %v6313_v33 = vadd.f32 %v4558_v20, %v707_v30  ;;  %5192 = vmatmul.mubr.msk.f32.vlgmr.msra.gmra.mxu1 %vm236_vm2, %v719_v29 }
 0x174   :  { %v702_v34 = vpop.f32.mrf.mxu0  ;;  %5194 = vmatprep.mubr.msk.f32.mxu1 %vm5960_vm0, %v5959_v0  ;;  %5218 = vmatpush3.msra.mxu1 %v932_v43 }
 0x175   :  { %v720_v35 = vmax.f32 %v6313_v33, 0.0  ;;  %v708_v36 = vadd.f32 %v702_v34, %v608_v32  ;;  %5219 = vmatprep.subr.mxu1 %v5959_v0  ;;  %v1139_v33 = vld [vmem:[#allocation10 + $0x8] sm:$0xff]  ;;  %v4571_v34 = vld [vmem:[#allocation8 + $0x1] ss:$0 sm:$0xff] }
 0x176   :  { %v5182_v37 = vpop.f32.mrf.mxu0  ;;  %5220 = vmatpush3.msra.mxu1 %v931_v57 }
 0x177   :  { %v6321_v38 = vadd.f32 %v4558_v20, %v708_v36  ;;  %5195 = vmatmul.mubr.msk.f32.gmra.mxu1 %vm236_vm2, %v720_v35  ;;  %5221 = vmatprep.subr.mxu1 %v5959_v0  ;;  %v4567_v20 = vld [vmem:[#allocation5 + $0x1] ss:$0 sm:$0xff] }
 0x178   :  { %5197 = vmatprep.mubr.msk.f32.mxu1 %vm5960_vm0, %v5959_v0  ;;  %5222 = vmatpush3.msra.mxu1 %v930_v58 }
 0x179   :  { %v721_v39 = vmax.f32 %v6321_v38, 0.0  ;;  %5223 = vmatprep.subr.mxu1 %v5959_v0 }
 0x17a   :  { %5224 = vmatpush3.msra.mxu1 %v929_v59 }
 0x17b   :  { %5198 = vmatmul.mubr.msk.f32.gmra.mxu1 %vm236_vm2, %v721_v39  ;;  %5251 = vmatprep.subr.mxu1 %v5959_v0 }
 0x17c   :  { %5225 = vmatprep.mubr.msk.f32.mxu1 %vm5960_vm0, %v5959_v0 }
 0x233   :  { %v808_v45 = vpop.f32.mrf.mxu1 }
 0x234   :  { %v809_v46 = vadd.f32 %v4559_v44, %v808_v45 }
 0x235   :  { %v5193_v47 = vpop.f32.mrf.mxu1 }
 0x236   :  { %v822_v48 = vmax.f32 %v809_v46, 0.0  ;;  %v195_v46 = vld [vmem:[%s7319_s28] sm:$0xff] }
 0x237   :  { %v813_v49 = vpop.f32.mrf.mxu1  ;;  %v205_v47 = vld [vmem:[%s7320_s0] sm:$0xff] }
 0x238   :  { %v814_v50 = vadd.f32 %v4559_v44, %v813_v49  ;;  %5209 = vmatmul.mubr.msk.f32.vlgmr.msra.gmra.mxu0 %vm236_vm2, %v822_v48  ;;  %v196_v48 = vld [vmem:[%s7319_s28 + $0x8] sm:$0xff]  ;;  %v197_v49 = vld [vmem:[%s7319_s28 + $0x10] sm:$0xff] }
 0x239   :  { %v5196_v51 = vpop.f32.mrf.mxu1  ;;  %5211 = vmatprep.mubr.msk.f32.mxu0 %vm5960_vm0, %v5959_v0  ;;  %5235 = vmatpush3.msra.mxu0 %v1037_v60 }
 0x23a   :  { %v823_v52 = vmax.f32 %v814_v50, 0.0  ;;  %5236 = vmatprep.subr.mxu0 %v5959_v0  ;;  %v198_v50 = vld [vmem:[%s7319_s28 + $0x18] sm:$0xff]  ;;  %v199_v51 = vld [vmem:[%s7319_s28 + $0x20] sm:$0xff] }
 0x23b   :  { %v818_v53 = vpop.f32.mrf.mxu1  ;;  %5237 = vmatpush3.msra.mxu0 %v1036_v16  ;;  %v211_v16 = vld [vmem:[%s7320_s0 + $0x30] sm:$0xff] }
 0x23c   :  { %v819_v54 = vadd.f32 %v4559_v44, %v818_v53  ;;  %5212 = vmatmul.mubr.msk.f32.gmra.mxu0 %vm236_vm2, %v823_v52  ;;  %5238 = vmatprep.subr.mxu0 %v5959_v0  ;;  %v200_v52 = vld [vmem:[%s7319_s28 + $0x28] sm:$0xff]  ;;  %v201_v53 = vld [vmem:[%s7319_s28 + $0x30] sm:$0xff] }
 0x23d   :  { %v5199_v55 = vpop.f32.mrf.mxu1  ;;  %5214 = vmatprep.mubr.msk.f32.mxu0 %vm5960_vm0, %v5959_v0  ;;  %5239 = vmatpush3.msra.mxu0 %v1035_v17  ;;  %v212_v17 = vld [vmem:[%s7320_s0 + $0x38] sm:$0xff] }
 0x23e   :  { %v824_v56 = vmax.f32 %v819_v54, 0.0  ;;  %5240 = vmatprep.subr.mxu0 %v5959_v0  ;;  %v202_v54 = vld [vmem:[%s7319_s28 + $0x38] sm:$0xff]  ;;  %v203_v55 = vld [vmem:[%s7319_s28 + $0x40] sm:$0xff] }
 0x23f   :  { %5241 = vmatpush3.msra.mxu0 %v1034_v18  ;;  %v213_v18 = vld [vmem:[%s7320_s0 + $0x40] sm:$0xff] }
 0x240   :  { %5215 = vmatmul.mubr.msk.f32.gmra.mxu0 %vm236_vm2, %v824_v56  ;;  %5268 = vmatprep.subr.mxu0 %v6173_v10  ;;  %v204_v56 = vld [vmem:[%s7319_s28 + $0x48] sm:$0xff] }
 0x241   :  { %5242 = vmatprep.mubr.msk.f32.mxu0 %vm5960_vm0, %v5959_v0 }
 0x2f8   :  { %v911_v62 = vpop.f32.mrf.mxu0 }
 0x2f9   :  { %v912_v63 = vadd.f32 %v4563_v61, %v911_v62 }
 0x2fa   :  { %v5210_v2 = vpop.f32.mrf.mxu0 }
 0x2fb   :  { %v925_v4 = vadd.f32 %v912_v63, %v719_v29 }
 0x2fc   :  { %v916_v5 = vpop.f32.mrf.mxu0 }
 0x2fd   :  { %v917_v6 = vadd.f32 %v4563_v61, %v916_v5  ;;  %5226 = vmatmul.mubr.msk.f32.vlgmr.msra.gmra.mxu1 %vm236_vm2, %v925_v4 }
 0x2fe   :  { %v5213_v9 = vpop.f32.mrf.mxu0  ;;  %5228 = vmatprep.mubr.msk.f32.mxu1 %vm5960_vm0, %v5959_v0  ;;  %5252 = vmatpush3.msra.mxu1 %v1141_v19  ;;  %v214_v19 = vld [vmem:[%s7320_s0 + $0x48] sm:$0xff] }
 0x2ff   :  { %v926_v11 = vadd.f32 %v917_v6, %v720_v35  ;;  %5253 = vmatprep.subr.mxu1 %v5959_v0  ;;  %v206_v6 = vld [vmem:[%s7320_s0 + $0x8] sm:$0xff]  ;;  %v1536_v9 = vld [vmem:[#allocation13 + $0x18] sm:$0xff] }
 0x300   :  { %v921_v12 = vpop.f32.mrf.mxu0 }
 0x301   :  { %v922_v13 = vadd.f32 %v4563_v61, %v921_v12  ;;  %5229 = vmatmul.mubr.msk.f32.gmra.mxu1 %vm236_vm2, %v926_v11  ;;  %v4575_v61 = vld [vmem:[#allocation11] ss:$0 sm:$0xff]  ;;  %v1535_v12 = vld [vmem:[#allocation13 + $0x10] sm:$0xff] }
 0x302   :  { %v5216_v14 = vpop.f32.mrf.mxu0  ;;  %5231 = vmatprep.mubr.msk.f32.mxu1 %vm5960_vm0, %v5959_v0 }
 0x303   :  { %v927_v15 = vadd.f32 %v922_v13, %v721_v39  ;;  %v208_v13 = vld [vmem:[%s7320_s0 + $0x18] sm:$0xff]  ;;  %v209_v14 = vld [vmem:[%s7320_s0 + $0x20] sm:$0xff] }
 0x305   :  { %5232 = vmatmul.mubr.msk.f32.gmra.mxu1 %vm236_vm2, %v927_v15 }
 0x306   :  { %5259 = vmatprep.mubr.msk.f32.mxu1 %vm5960_vm0, %v5959_v0 }
 0x3bd   :  { %v1016_v21 = vpop.f32.mrf.mxu1 }
 0x3be   :  { %v1017_v22 = vadd.f32 %v4567_v20, %v1016_v21  ;;  %v1534_v21 = vld [vmem:[#allocation13 + $0x8] sm:$0xff] }
 0x3bf   :  { %v5227_v23 = vpop.f32.mrf.mxu1 }
 0x3c0   :  { %v1030_v24 = vmax.f32 %v1017_v22, 0.0  ;;  %v1537_v23 = vld [vmem:[#allocation14] sm:$0xff] }
 0x3c1   :  { %v1021_v25 = vpop.f32.mrf.mxu1 }
 0x3c2   :  { %v1022_v26 = vadd.f32 %v4567_v20, %v1021_v25  ;;  %5243 = vmatmul.mubr.msk.f32.vlgmr.msra.gmra.mxu0 %vm236_vm2, %v1030_v24  ;;  %v1533_v24 = vld [vmem:[#allocation13] sm:$0xff] }
 0x3c3   :  { %v5230_v27 = vpop.f32.mrf.mxu1  ;;  %5245 = vmatprep.mubr.msk.f32.mxu0 %vm5960_vm0, %v5959_v0  ;;  %5269 = vmatpush3.msra.mxu0 %v6173_v10  ;;  %v1140_v10 = vld [vmem:[#allocation10 + $0x10] sm:$0xff] }
 0x3c4   :  { %v1031_v28 = vmax.f32 %v1022_v26, 0.0  ;;  %5270 = vmatprep.subr.mxu0 %v6167_v8  ;;  %5254 = vmatpush3.msra.mxu1 %v1140_v10  ;;  %v1858_v10 = vld [vmem:[%s7293_s14 + $0x8] sm:$0xff] }
 0x3c5   :  { %v1026_v29 = vpop.f32.mrf.mxu1  ;;  %5271 = vmatpush3.msra.mxu0 %v6167_v8  ;;  %5255 = vmatprep.subr.mxu1 %v5959_v0  ;;  %v1138_v8 = vld [vmem:[#allocation10] sm:$0xff] }
 0x3c6   :  { %v1027_v30 = vadd.f32 %v4567_v20, %v1026_v29  ;;  %5246 = vmatmul.mubr.msk.f32.gmra.mxu0 %vm236_vm2, %v1031_v28  ;;  %5272 = vmatprep.subr.mxu0 %v6161_v7 }
 0x3c7   :  { %v5233_v31 = vpop.f32.mrf.mxu1  ;;  %5248 = vmatprep.mubr.msk.f32.mxu0 %vm5960_vm0, %v5959_v0  ;;  %5273 = vmatpush3.msra.mxu0 %v6161_v7 }
 0x3c8   :  { %v1032_v32 = vmax.f32 %v1027_v30, 0.0  ;;  %5256 = vmatpush3.msra.mxu1 %v1139_v33  ;;  %5310 = vmatprep.subr.mxu0 %v1537_v23  ;;  %v2044_v33 = vld [vmem:[%s7294_s15] sm:$0xff] }
 0x3c9   :  { %5257 = vmatprep.subr.mxu1 %v5959_v0 }
 0x3ca   :  { %5249 = vmatmul.mubr.msk.f32.gmra.mxu0 %vm236_vm2, %v1032_v32  ;;  %5258 = vmatpush3.msra.mxu1 %v1138_v8 }
 0x3cb   :  { %5274 = vmatprep.mubr.msk.f32.mxu0 %vm1238_vm6, %v195_v46 }
 0x3ce   :  { %5275 = vmatmul.mubr.msk.f32.vlgmr.msra.gmra.mxu0 %vm1238_vm6, %v196_v48 }
 0x3cf   :  { %5277 = vmatprep.mubr.msk.f32.mxu0 %vm1238_vm6, %v197_v49  ;;  %5311 = vmatpush3.msra.mxu0 %v1537_v23 }
 0x3d0   :  { %1929 = vmatprep.subr.mxu0 %v1858_v10 }
 0x3d2   :  { %5278 = vmatmul.mubr.msk.f32.gmra.mxu0 %vm1238_vm6, %v198_v50  ;;  %v4657_v50 = vld [vmem:[%s7316_s25 + $0x28] sm:$0xff] }
 0x3d3   :  { %5280 = vmatprep.mubr.msk.f32.mxu0 %vm1238_vm6, %v199_v51 }
 0x3d6   :  { %5281 = vmatmul.mubr.msk.f32.gmra.mxu0 %vm1238_vm6, %v200_v52  ;;  %v4656_v52 = vld [vmem:[%s7316_s25 + $0x20] sm:$0xff] }
 0x3d7   :  { %5283 = vmatprep.mubr.msk.f32.mxu0 %vm1238_vm6, %v201_v53 }
 0x3da   :  { %5284 = vmatmul.mubr.msk.f32.gmra.mxu0 %vm1238_vm6, %v202_v54 }
 0x3db   :  { %5286 = vmatprep.mubr.msk.f32.mxu0 %vm1238_vm6, %v203_v55 }
 0x3de   :  { %5287 = vmatmul.mubr.msk.f32.gmra.mxu0 %vm1238_vm6, %v204_v56 }
 0x482   :  { %v1121_v35 = vpop.f32.mrf.mxu0 }
 0x483   :  { %v1122_v36 = vadd.f32 %v4571_v34, %v1121_v35  ;;  %v1857_v35 = vld [vmem:[%s7293_s14] sm:$0xff] }
 0x484   :  { %v5244_v37 = vpop.f32.mrf.mxu0 }
 0x485   :  { %v1135_v38 = vadd.f32 %v1122_v36, %v925_v4 }
 0x486   :  { %v1126_v39 = vpop.f32.mrf.mxu0 }
 0x487   :  { %v1127_v7 = vadd.f32 %v4571_v34, %v1126_v39  ;;  %5260 = vmatmul.mubr.msk.f32.vlgmr.msra.gmra.mxu1 %vm236_vm2, %v1135_v38 }
 0x488   :  { %v5247_v40 = vpop.f32.mrf.mxu0  ;;  %5262 = vmatprep.mubr.msk.f32.mxu1 %vm5960_vm0, %v5959_v0 }
 0x489   :  { %v1136_v41 = vadd.f32 %v1127_v7, %v926_v11  ;;  %v207_v11 = vld [vmem:[%s7320_s0 + $0x10] sm:$0xff] }
 0x48a   :  { %v1131_v42 = vpop.f32.mrf.mxu0 }
 0x48b   :  { %v1132_v43 = vadd.f32 %v4571_v34, %v1131_v42  ;;  %5263 = vmatmul.mubr.msk.f32.gmra.mxu1 %vm236_vm2, %v1136_v41  ;;  %v2217_v42 = vld [vmem:[#allocation17] sm:$0xff] }
 0x48c   :  { %v5250_v44 = vpop.f32.mrf.mxu0  ;;  %5265 = vmatprep.mubr.msk.f32.mxu1 %vm5960_vm0, %v5959_v0 }
 0x48d   :  { %v1137_v45 = vadd.f32 %v1132_v43, %v927_v15  ;;  %v210_v15 = vld [vmem:[%s7320_s0 + $0x28] sm:$0xff] }
 0x48e   :  { %v5276_v20 = vpop.f32.mrf.mxu0 }
 0x48f   :  { %5266 = vmatmul.mubr.msk.f32.gmra.mxu1 %vm236_vm2, %v1137_v45 }
 0x490   :  { %5295 = vmatprep.mubr.msk.f32.mxu1 %vm1384_vm7, %v205_v47  ;;  %v1335_v22 = vpop.f32.mrf.mxu0 }
 0x492   :  { %v5279_v25 = vpop.f32.mrf.mxu0 }
 0x494   :  { %v1345_v26 = vpop.f32.mrf.mxu0 }
 0x496   :  { %v5282_v27 = vpop.f32.mrf.mxu0 }
 0x498   :  { %v1355_v28 = vpop.f32.mrf.mxu0 }
 0x49a   :  { %v5285_v29 = vpop.f32.mrf.mxu0 }
 0x49c   :  { %v1365_v30 = vpop.f32.mrf.mxu0 }
 0x49e   :  { %v5288_v31 = vpop.f32.mrf.mxu0 }
 0x4a0   :  { %v1375_v32 = vpop.f32.mrf.mxu0 }
 0x547   :  { %v1224_v57 = vpop.f32.mrf.mxu1 }
 0x548   :  { %v1225_v5 = vadd.f32 %v4575_v61, %v1224_v57 }
 0x549   :  { %v5261_v58 = vpop.f32.mrf.mxu1 }
 0x54b   :  { %v1229_v59 = vpop.f32.mrf.mxu1 }
 0x54c   :  { %v1230_v4 = vadd.f32 %v4575_v61, %v1229_v59 }
 0x54d   :  { %v5264_v60 = vpop.f32.mrf.mxu1 }
 0x54f   :  { %v1234_v62 = vpop.f32.mrf.mxu1 }
 0x550   :  { %v1235_v63 = vadd.f32 %v4575_v61, %v1234_v62 }
 0x551   :  { %v5267_v2 = vpop.f32.mrf.mxu1 }
 0x552   :  { %5289 = vmatprep.subr.msk.mxu1 %vm614_vm5, %v1235_v63  ;;  %v2397_v2 = vld [vmem:[%s7316_s25 + $0x18] sm:$0xff] }
 0x553   :  { %5290 = vmatpush3.msk.msra.mxu1 %vm614_vm5, %v1235_v63 }
 0x554   :  { %5291 = vmatprep.subr.mxu1 %v1230_v4 }
 0x555   :  { %5292 = vmatpush3.msra.mxu1 %v1230_v4 }
 0x556   :  { %5293 = vmatprep.subr.mxu1 %v1225_v5 }
 0x557   :  { %5294 = vmatpush3.msra.mxu1 %v1225_v5  ;;  %v6574_v5 = vld [vmem:[%s7317_s12 + $0x18] sm:$0xff] }
 0x558   :  { %5296 = vmatmul.mubr.msk.f32.vlgmr.msra.gmra.mxu1 %vm1384_vm7, %v206_v6  ;;  %5327 = vmatprep.subr.mxu1 %v1536_v9  ;;  %v6579_v6 = vld [vmem:[%s7317_s12 + $0x20] sm:$0xff] }
 0x559   :  { %5298 = vmatprep.mubr.msk.f32.mxu1 %vm1384_vm7, %v207_v11  ;;  %5328 = vmatpush3.msra.mxu1 %v1536_v9  ;;  %v2396_v9 = vld [vmem:[%s7316_s25 + $0x10] sm:$0xff] }
 0x55a   :  { %5329 = vmatprep.subr.mxu1 %v1535_v12 }
 0x55b   :  { %5330 = vmatpush3.msra.mxu1 %v1535_v12  ;;  %v2395_v12 = vld [vmem:[%s7316_s25 + $0x8] sm:$0xff] }
 0x55c   :  { %5299 = vmatmul.mubr.msk.f32.gmra.mxu1 %vm1384_vm7, %v208_v13  ;;  %5331 = vmatprep.subr.mxu1 %v1534_v21 }
 0x55d   :  { %5301 = vmatprep.mubr.msk.f32.mxu1 %vm1384_vm7, %v209_v14  ;;  %5332 = vmatpush3.msra.mxu1 %v1534_v21  ;;  %v2405_v14 = vrot.slane %v6574_v5, 1 }
 0x55e   :  { %5333 = vmatprep.subr.mxu1 %v1533_v24 }
 0x55f   :  { %5334 = vmatpush3.msra.mxu1 %v1533_v24  ;;  %v4668_v24 = vld [vmem:[%s7316_s25 + $0x50] sm:$0xff] }
 0x560   :  { %5302 = vmatmul.mubr.msk.f32.gmra.mxu1 %vm1384_vm7, %v210_v15  ;;  %5350 = vmatprep.subr.mxu1 %v2044_v33  ;;  %v2406_v15 = vrot.slane %v6579_v6, 1 }
 0x561   :  { %5304 = vmatprep.mubr.msk.f32.mxu1 %vm1384_vm7, %v211_v16  ;;  %v6596_v16 = vld [vmem:[%s7317_s12 + $0x28] sm:$0xff] }
 0x562   :  { %v2408_v21 = vrot.slane %v6596_v16, 1 }
 0x564   :  { %5305 = vmatmul.mubr.msk.f32.gmra.mxu1 %vm1384_vm7, %v212_v17  ;;  %v2394_v17 = vld [vmem:[%s7316_s25] sm:$0xff] }
 0x565   :  { %5307 = vmatprep.mubr.msk.f32.mxu1 %vm1384_vm7, %v213_v18 }
 0x568   :  { %5308 = vmatmul.mubr.msk.f32.gmra.mxu1 %vm1384_vm7, %v214_v19 }
 0x569   :  { %5335 = vmatprep.mubr.msk.f32.mxu1 %vm236_vm2, %v1335_v22  ;;  %v4669_v22 = vld [vmem:[%s7316_s25 + $0x58] sm:$0xff] }
 0x56c   :  { %5336 = vmatmul.mubr.msk.f32.vlgmr.msra.gmra.mxu1 %vm236_vm2, %v5276_v20  ;;  %v2407_v20 = vsel %vm230_vm1, %v2405_v14, %v2406_v15 }
 0x56d   :  { %5338 = vmatprep.mubr.msk.f32.mxu1 %vm236_vm2, %v1345_v26  ;;  %5351 = vmatpush3.msra.mxu1 %v2044_v33  ;;  %v2409_v26 = vsel %vm230_vm1, %v2406_v15, %v2408_v21 }
 0x56e   :  { %5367 = vmatprep.subr.mxu1 %v2217_v42 }
 0x570   :  { %5339 = vmatmul.mubr.msk.f32.gmra.mxu1 %vm236_vm2, %v5279_v25 }
 0x571   :  { %5341 = vmatprep.mubr.msk.f32.mxu1 %vm236_vm2, %v1355_v28  ;;  %v4667_v28 = vld [vmem:[%s7316_s25 + $0x48] sm:$0xff] }
 0x574   :  { %5342 = vmatmul.mubr.msk.f32.gmra.mxu1 %vm236_vm2, %v5282_v27 }
 0x575   :  { %5344 = vmatprep.mubr.msk.f32.mxu1 %vm236_vm2, %v1365_v30  ;;  %v2586_v30 = vrot.slane %v6574_v5, 2 }
 0x578   :  { %5345 = vmatmul.mubr.msk.f32.gmra.mxu1 %vm236_vm2, %v5285_v29 }
 0x579   :  { %5347 = vmatprep.mubr.msk.f32.mxu1 %vm236_vm2, %v1375_v32  ;;  %v4666_v32 = vld [vmem:[%s7316_s25 + $0x40] sm:$0xff] }
 0x57c   :  { %5348 = vmatmul.mubr.msk.f32.gmra.mxu1 %vm236_vm2, %v5288_v31  ;;  %v2587_v31 = vrot.slane %v6579_v6, 2 }
 0x57e   :  { %v2588_v33 = vsel %vm414_vm3, %v2586_v30, %v2587_v31 }
 0x618   :  { %v5297_v8 = vpop.f32.mrf.mxu1 }
 0x619   :  { %1861 = vrot.lane.b32.xlu0 %v5297_v8, %s5961_s17 }
 0x61a   :  { %v1484_v34 = vpop.f32.mrf.mxu1 }
 0x61b   :  { %2052 = vrot.lane.b32.xlu1 %v1484_v34, %s5962_s8  ;;  %5312 = vmatprep.mubr.msk.f32.mxu0 %vm1538_vm8, %v1484_v34 }
 0x61c   :  { %v5300_v36 = vpop.f32.mrf.mxu1  ;;  %5313 = vmatmul.mubr.msk.f32.vlgmr.msra.gmra.mxu0 %vm1538_vm8, %v5297_v8 }
 0x61d   :  { %2054 = vrot.lane.b32.xlu0 %v5297_v8, %s5962_s8  ;;  %1930 = vmatpush1.msra.mxu0 %v1857_v35  ;;  %v4683_v35 = vld [vmem:[%s7316_s25 + $0x98] sm:$0xff] }
 0x61e   :  { %v1494_v37 = vpop.f32.mrf.mxu1  ;;  %5384 = vmatprep.subr.mxu0 %v5959_v0 }
 0x61f   :  { %1865 = vrot.lane.b32.xlu1 %v5300_v36, %s5961_s17  ;;  %5315 = vmatprep.mubr.msk.f32.mxu0 %vm1538_vm8, %v1494_v37 }
 0x620   :  { %5316 = vmatmul.mubr.msk.f32.gmra.mxu0 %vm1538_vm8, %v5300_v36  ;;  %v5303_v38 = vpop.f32.mrf.mxu1 }
 0x621   :  { %1859 = vrot.lane.b32.xlu0 %v1484_v34, %s5961_s17 }
 0x622   :  { %v1504_v39 = vpop.f32.mrf.mxu1 }
 0x623   :  { %2058 = vrot.lane.b32.xlu1 %v5300_v36, %s5962_s8  ;;  %5318 = vmatprep.mubr.msk.f32.mxu0 %vm1538_vm8, %v1504_v39 }
 0x624   :  { %5319 = vmatmul.mubr.msk.f32.gmra.mxu0 %vm1538_vm8, %v5303_v38  ;;  %v5306_v7 = vpop.f32.mrf.mxu1 }
 0x625   :  { %2225 = vrot.lane.b32.xlu0 %v1484_v34, %s5963_s4  ;;  %v4676_v34 = vld [vmem:[%s7316_s25 + $0x78] sm:$0xff] }
 0x626   :  { %v1514_v40 = vpop.f32.mrf.mxu1 }
 0x627   :  { %1863 = vrot.lane.b32.xlu1 %v1494_v37, %s5961_s17  ;;  %5321 = vmatprep.mubr.msk.f32.mxu0 %vm1538_vm8, %v1514_v40 }
 0x628   :  { %5322 = vmatmul.mubr.msk.f32.gmra.mxu0 %vm1538_vm8, %v5306_v7  ;;  %v5309_v41 = vpop.f32.mrf.mxu1 }
 0x629   :  { %2056 = vrot.lane.b32.xlu0 %v1494_v37, %s5962_s8 }
 0x62a   :  { %v1524_v43 = vpop.f32.mrf.mxu1 }
 0x62b   :  { %1869 = vrot.lane.b32.xlu1 %v5303_v38, %s5961_s17  ;;  %5324 = vmatprep.mubr.msk.f32.mxu0 %vm1538_vm8, %v1524_v43 }
 0x62c   :  { %5325 = vmatmul.mubr.msk.f32.gmra.mxu0 %vm1538_vm8, %v5309_v41 }
 0x62d   :  { %2062 = vrot.lane.b32.xlu0 %v5303_v38, %s5962_s8  ;;  %1963 = vmatprep.mubr.f32.mxu0 %v5959_v0 }
 0x62f   :  { %2060 = vrot.lane.b32.xlu1 %v1504_v39, %s5962_s8 }
 0x631   :  { %1867 = vrot.lane.b32.xlu0 %v1504_v39, %s5961_s17 }
 0x633   :  { %2066 = vrot.lane.b32.xlu1 %v5306_v7, %s5962_s8 }
 0x635   :  { %2064 = vrot.lane.b32.xlu0 %v1514_v40, %s5962_s8 }
 0x637   :  { %1873 = vrot.lane.b32.xlu1 %v5306_v7, %s5961_s17 }
 0x639   :  { %1871 = vrot.lane.b32.xlu0 %v1514_v40, %s5961_s17 }
 0x63b   :  { %2068 = vrot.lane.b32.xlu1 %v1524_v43, %s5962_s8 }
 0x63d   :  { %2070 = vrot.lane.b32.xlu0 %v5309_v41, %s5962_s8 }
 0x63f   :  { %2227 = vrot.lane.b32.xlu1 %v5297_v8, %s5963_s4  ;;  %v2589_v8 = vrot.slane %v6596_v16, 2 }
 0x641   :  { %1875 = vrot.lane.b32.xlu0 %v1524_v43, %s5961_s17 }
 0x643   :  { %2229 = vrot.lane.b32.xlu1 %v1494_v37, %s5963_s4  ;;  %v4675_v37 = vld [vmem:[%s7316_s25 + $0x70] sm:$0xff] }
 0x645   :  { %2231 = vrot.lane.b32.xlu0 %v5300_v36, %s5963_s4  ;;  %v2590_v36 = vsel %vm414_vm3, %v2587_v31, %v2589_v8 }
 0x647   :  { %1877 = vrot.lane.b32.xlu1 %v5309_v41, %s5961_s17 }
 0x649   :  { %2233 = vrot.lane.b32.xlu0 %v1504_v39, %s5963_s4  ;;  %v5337_v39 = vpop.f32.mrf.mxu1 }
 0x64b   :  { %2235 = vrot.lane.b32.xlu1 %v5303_v38, %s5963_s4  ;;  %v4682_v38 = vld [vmem:[%s7316_s25 + $0x90] sm:$0xff] }
 0x64d   :  { %2237 = vrot.lane.b32.xlu0 %v1514_v40, %s5963_s4  ;;  %v4681_v40 = vld [vmem:[%s7316_s25 + $0x88] sm:$0xff] }
 0x64f   :  { %2239 = vrot.lane.b32.xlu1 %v5306_v7, %s5963_s4  ;;  %v4674_v7 = vld [vmem:[%s7316_s25 + $0x68] sm:$0xff] }
 0x651   :  { %2241 = vrot.lane.b32.xlu0 %v1524_v43, %s5963_s4  ;;  %v2782_v43 = vrot.slane %v6574_v5, 4 }
 0x653   :  { %2243 = vrot.lane.b32.xlu1 %v5309_v41, %s5963_s4  ;;  %v2684_v41 = vrot.slane %v6574_v5, 3 }
 0x68b   :  { %v1862_v44 = vpop.permute.xlu0 %1861 }
 0x68d   :  { %v2053_v45 = vpop.permute.xlu1 %2052 }
 0x68e   :  { %5352 = vmatprep.mubr.msk.f32.mxu1 %vm1538_vm8, %v2053_v45  ;;  %v4673_v45 = vld [vmem:[%s7316_s25 + $0x60] sm:$0xff] }
 0x68f   :  { %v2055_v46 = vpop.permute.xlu0 %2054 }
 0x690   :  { %5353 = vmatmul.mubr.msk.f32.vlgmr.msra.gmra.mxu1 %vm1538_vm8, %v2055_v46  ;;  %v1780_v46 = vpop.f32.mrf.mxu1 }
 0x691   :  { %v1866_v47 = vpop.permute.xlu1 %1865  ;;  %5368 = vmatpush3.msra.mxu1 %v2217_v42  ;;  %v2685_v42 = vrot.slane %v6579_v6, 3 }
 0x692   :  { %5401 = vmatprep.subr.mxu1 %v5959_v0 }
 0x693   :  { %v1860_v48 = vpop.permute.xlu0 %1859 }
 0x694   :  { %4621 = vmatmul.mubr.msk.f32.vlgmr.msra.gmra.mxu0 %vm1538_vm8, %v1860_v48  ;;  %v2686_v48 = vsel %vm514_vm4, %v2684_v41, %v2685_v42 }
 0x695   :  { %v2059_v49 = vpop.permute.xlu1 %2058  ;;  %1969 = vmatprep.mubr.f32.mxu0 %v5959_v0  ;;  %5385 = vmatpush3.msra.mxu0 %v6136_v1 }
 0x696   :  { %5386 = vmatprep.subr.mxu0 %v5959_v0 }
 0x697   :  { %v2226_v51 = vpop.permute.xlu0 %2225  ;;  %5387 = vmatpush3.msra.mxu0 %v6144_v3 }
 0x698   :  { %4622 = vmatmul.mubr.msk.f32.gmra.mxu0 %vm1538_vm8, %v1862_v44  ;;  %5388 = vmatprep.subr.mxu0 %v5959_v0  ;;  %v2783_v44 = vrot.slane %v6579_v6, 4 }
 0x699   :  { %v1864_v53 = vpop.permute.xlu1 %1863  ;;  %1975 = vmatprep.mubr.f32.mxu0 %v5959_v0  ;;  %5389 = vmatpush3.msra.mxu0 %v4657_v50  ;;  %v2687_v50 = vrot.slane %v6596_v16, 3 }
 0x69a   :  { %5390 = vmatprep.subr.mxu0 %v5959_v0 }
 0x69b   :  { %v2057_v1 = vpop.permute.xlu0 %2056  ;;  %5391 = vmatpush3.msra.mxu0 %v4656_v52  ;;  %v5340_v52 = vpop.f32.mrf.mxu1 }
 0x69c   :  { %4623 = vmatmul.mubr.msk.f32.gmra.mxu0 %vm1538_vm8, %v1864_v53  ;;  %5355 = vmatprep.mubr.msk.f32.mxu1 %vm1538_vm8, %v2057_v1  ;;  %v2688_v53 = vsel %vm514_vm4, %v2685_v42, %v2687_v50 }
 0x69d   :  { %v1870_v3 = vpop.permute.xlu1 %1869  ;;  %5356 = vmatmul.mubr.msk.f32.gmra.mxu1 %vm1538_vm8, %v2059_v49  ;;  %1981 = vmatprep.mubr.f32.mxu0 %v5959_v0  ;;  %v2784_v49 = vsel %vm614_vm5, %v2782_v43, %v2783_v44 }
 0x69e   :  { %5418 = vmatprep.subr.mxu0 %v5959_v0 }
 0x69f   :  { %v2063_v54 = vpop.permute.xlu0 %2062 }
 0x6a0   :  { %4624 = vmatmul.mubr.msk.f32.gmra.mxu0 %vm1538_vm8, %v1866_v47  ;;  %v4680_v47 = vld [vmem:[%s7316_s25 + $0x80] sm:$0xff] }
 0x6a1   :  { %v2061_v55 = vpop.permute.xlu1 %2060  ;;  %1987 = vmatprep.mubr.f32.mxu0 %v5959_v0 }
 0x6a2   :  { %5358 = vmatprep.mubr.msk.f32.mxu1 %vm1538_vm8, %v2061_v55  ;;  %v4620_v55 = vld [vmem:[#allocation16] ss:$0 sm:$0xff] }
 0x6a3   :  { %v1868_v56 = vpop.permute.xlu0 %1867  ;;  %5359 = vmatmul.mubr.msk.f32.gmra.mxu1 %vm1538_vm8, %v2063_v54 }
 0x6a4   :  { %4625 = vmatmul.mubr.msk.f32.gmra.mxu0 %vm1538_vm8, %v1868_v56 }
 0x6a5   :  { %v2067_v57 = vpop.permute.xlu1 %2066  ;;  %1993 = vmatprep.mubr.f32.mxu0 %v5959_v0 }
 0x6a7   :  { %v2065_v58 = vpop.permute.xlu0 %2064 }
 0x6a8   :  { %4626 = vmatmul.mubr.msk.f32.gmra.mxu0 %vm1538_vm8, %v1870_v3  ;;  %5361 = vmatprep.mubr.msk.f32.mxu1 %vm1538_vm8, %v2065_v58  ;;  %v1790_v3 = vpop.f32.mrf.mxu1 }
 0x6a9   :  { %v1874_v59 = vpop.permute.xlu1 %1873  ;;  %5362 = vmatmul.mubr.msk.f32.gmra.mxu1 %vm1538_vm8, %v2067_v57  ;;  %1999 = vmatprep.mubr.f32.mxu0 %v5959_v0 }
 0x6aa   :  { %v5343_v56 = vpop.f32.mrf.mxu1 }
 0x6ab   :  { %v1872_v60 = vpop.permute.xlu0 %1871 }
 0x6ac   :  { %4627 = vmatmul.mubr.msk.f32.gmra.mxu0 %vm1538_vm8, %v1872_v60 }
 0x6ad   :  { %v2069_v61 = vpop.permute.xlu1 %2068  ;;  %2005 = vmatprep.mubr.f32.mxu0 %v5959_v0 }
 0x6ae   :  { %5364 = vmatprep.mubr.msk.f32.mxu1 %vm1538_vm8, %v2069_v61 }
 0x6af   :  { %v2071_v62 = vpop.permute.xlu0 %2070 }
 0x6b0   :  { %4628 = vmatmul.mubr.msk.f32.gmra.mxu0 %vm1538_vm8, %v1874_v59  ;;  %5365 = vmatmul.mubr.msk.f32.gmra.mxu1 %vm1538_vm8, %v2071_v62  ;;  %v1800_v62 = vpop.f32.mrf.mxu1 }
 0x6b1   :  { %v2228_v63 = vpop.permute.xlu1 %2227  ;;  %5369 = vmatprep.mubr.msk.f32.mxu1 %vm1538_vm8, %v2226_v51  ;;  %2011 = vmatprep.mubr.f32.mxu0 %v5959_v0  ;;  %v2785_v51 = vrot.slane %v6596_v16, 4 }
 0x6b3   :  { %v1876_v4 = vpop.permute.xlu0 %1875  ;;  %v2786_v1 = vsel %vm614_vm5, %v2783_v44, %v2785_v51 }
 0x6b4   :  { %4629 = vmatmul.mubr.msk.f32.gmra.mxu0 %vm1538_vm8, %v1876_v4  ;;  %5370 = vmatmul.mubr.msk.f32.vlgmr.msra.gmra.mxu1 %vm1538_vm8, %v2228_v63 }
 0x6b5   :  { %v2230_v11 = vpop.permute.xlu1 %2229  ;;  %2017 = vmatprep.mubr.f32.mxu0 %v5959_v0  ;;  %5402 = vmatpush3.msra.mxu1 %v2397_v2 }
 0x6b6   :  { %5372 = vmatprep.mubr.msk.f32.mxu1 %vm1538_vm8, %v2230_v11  ;;  %5403 = vmatprep.subr.mxu1 %v5959_v0 }
 0x6b7   :  { %v2232_v13 = vpop.permute.xlu0 %2231  ;;  %5404 = vmatpush3.msra.mxu1 %v2396_v9  ;;  %v5346_v9 = vpop.f32.mrf.mxu1 }
 0x6b8   :  { %5373 = vmatmul.mubr.msk.f32.gmra.mxu1 %vm1538_vm8, %v2232_v13  ;;  %5405 = vmatprep.subr.mxu1 %v5959_v0 }
 0x6b9   :  { %v1878_v18 = vpop.permute.xlu1 %1877  ;;  %5406 = vmatpush3.msra.mxu1 %v2395_v12 }
 0x6ba   :  { %4630 = vmatmul.mubr.msk.f32.gmra.mxu0 %vm1538_vm8, %v1878_v18  ;;  %5407 = vmatprep.subr.mxu1 %v5959_v0  ;;  %v1810_v18 = vpop.f32.mrf.mxu1 }
 0x6bb   :  { %v2234_v19 = vpop.permute.xlu0 %2233  ;;  %5392 = vmatprep.mubr.msk.f32.mxu0 %vm5960_vm0, %v5959_v0  ;;  %5408 = vmatpush3.msra.mxu1 %v2394_v17 }
 0x6bc   :  { %5375 = vmatprep.mubr.msk.f32.mxu1 %vm1538_vm8, %v2234_v19  ;;  %5435 = vmatprep.subr.mxu1 %v5959_v0 }
 0x6bd   :  { %v2236_v23 = vpop.permute.xlu1 %2235 }
 0x6be   :  { %5376 = vmatmul.mubr.msk.f32.gmra.mxu1 %vm1538_vm8, %v2236_v23  ;;  %5393 = vmatmul.mubr.msk.f32.vlgmr.msra.gmra.mxu0 %vm236_vm2, %v2407_v20 }
 0x6bf   :  { %v2238_v25 = vpop.permute.xlu0 %2237  ;;  %5395 = vmatprep.mubr.msk.f32.mxu0 %vm5960_vm0, %v5959_v0  ;;  %5419 = vmatpush3.msra.mxu0 %v4669_v22  ;;  %v5349_v22 = vpop.f32.mrf.mxu1 }
 0x6c0   :  { %5378 = vmatprep.mubr.msk.f32.mxu1 %vm1538_vm8, %v2238_v25  ;;  %5420 = vmatprep.subr.mxu0 %v5959_v0 }
 0x6c1   :  { %v2240_v27 = vpop.permute.xlu1 %2239  ;;  %5421 = vmatpush3.msra.mxu0 %v4668_v24 }
 0x6c2   :  { %5379 = vmatmul.mubr.msk.f32.gmra.mxu1 %vm1538_vm8, %v2240_v27  ;;  %5396 = vmatmul.mubr.msk.f32.gmra.mxu0 %vm236_vm2, %v2409_v26 }
 0x6c3   :  { %v2242_v29 = vpop.permute.xlu0 %2241  ;;  %5398 = vmatprep.mubr.msk.f32.mxu0 %vm5960_vm0, %v5959_v0  ;;  %5422 = vmatprep.subr.mxu0 %v5959_v0 }
 0x6c4   :  { %5381 = vmatprep.mubr.msk.f32.mxu1 %vm1538_vm8, %v2242_v29  ;;  %5423 = vmatpush3.msra.mxu0 %v4667_v28  ;;  %v1820_v29 = vpop.f32.mrf.mxu1 }
 0x6c5   :  { %v2244_v10 = vpop.permute.xlu1 %2243  ;;  %5424 = vmatprep.subr.mxu0 %v5959_v0 }
 0x6c6   :  { %5382 = vmatmul.mubr.msk.f32.gmra.mxu1 %vm1538_vm8, %v2244_v10  ;;  %5399 = vmatmul.mubr.msk.f32.gmra.mxu0 %vm236_vm2, %v2408_v21 }
 0x6c7   :  { %5409 = vmatprep.mubr.msk.f32.mxu1 %vm5960_vm0, %v5959_v0  ;;  %5425 = vmatpush3.msra.mxu0 %v4666_v32 }
 0x6c8   :  { %5426 = vmatprep.mubr.msk.f32.mxu0 %vm5960_vm0, %v5959_v0  ;;  %5452 = vmatprep.subr.mxu0 %v5959_v0 }
 0x6ca   :  { %5410 = vmatmul.mubr.msk.f32.vlgmr.msra.gmra.mxu1 %vm236_vm2, %v6574_v5  ;;  %5427 = vmatmul.mubr.msk.f32.vlgmr.msra.gmra.mxu0 %vm236_vm2, %v2588_v33 }
 0x6cb   :  { %5412 = vmatprep.mubr.msk.f32.mxu1 %vm5960_vm0, %v5959_v0  ;;  %5429 = vmatprep.mubr.msk.f32.mxu0 %vm5960_vm0, %v5959_v0 }
 0x6cc   :  { %5436 = vmatpush3.msra.mxu1 %v4676_v34  ;;  %5453 = vmatpush3.msra.mxu0 %v4683_v35  ;;  %v2892_v34 = vld [vmem:[#allocation2 + $0x18] sm:$0xff]  ;;  %v2891_v35 = vld [vmem:[#allocation2 + $0x10] sm:$0xff] }
 0x6cd   :  { %5437 = vmatprep.subr.mxu1 %v5959_v0  ;;  %5454 = vmatprep.subr.mxu0 %v5959_v0 }
 0x6ce   :  { %5413 = vmatmul.mubr.msk.f32.gmra.mxu1 %vm236_vm2, %v6579_v6  ;;  %5430 = vmatmul.mubr.msk.f32.gmra.mxu0 %vm236_vm2, %v2590_v36  ;;  %v2890_v36 = vld [vmem:[#allocation2 + $0x8] sm:$0xff] }
 0x6cf   :  { %5415 = vmatprep.mubr.msk.f32.mxu1 %vm5960_vm0, %v5959_v0  ;;  %5432 = vmatprep.mubr.msk.f32.mxu0 %vm5960_vm0, %v5959_v0 }
 0x6d0   :  { %5438 = vmatpush3.msra.mxu1 %v4675_v37  ;;  %5455 = vmatpush3.msra.mxu0 %v4682_v38  ;;  %v2889_v37 = vld [vmem:[#allocation2] sm:$0xff] }
 0x6d1   :  { %5439 = vmatprep.subr.mxu1 %v5959_v0  ;;  %5456 = vmatprep.subr.mxu0 %v5959_v0  ;;  %v2995_v38 = vld [vmem:[#allocation7 + $0x18] sm:$0xff] }
 0x6d2   :  { %5416 = vmatmul.mubr.msk.f32.gmra.mxu1 %vm236_vm2, %v6596_v16  ;;  %5433 = vmatmul.mubr.msk.f32.gmra.mxu0 %vm236_vm2, %v2589_v8 }
 0x6d3   :  { %5440 = vmatpush3.msra.mxu1 %v4674_v7  ;;  %5457 = vmatpush3.msra.mxu0 %v4681_v40 }
 0x6d4   :  { %5441 = vmatprep.subr.mxu1 %v5959_v0  ;;  %5458 = vmatprep.subr.mxu0 %v5959_v0 }
 0x6d5   :  { %5442 = vmatpush3.msra.mxu1 %v4673_v45  ;;  %5443 = vmatprep.mubr.msk.f32.mxu1 %vm5960_vm0, %v5959_v0 }
 0x6d6   :  { %5459 = vmatpush3.msra.mxu0 %v4680_v47  ;;  %5460 = vmatprep.mubr.msk.f32.mxu0 %vm5960_vm0, %v5959_v0 }
 0x6d7   :  { %5444 = vmatmul.mubr.msk.f32.vlgmr.msra.gmra.mxu1 %vm236_vm2, %v2686_v48  ;;  %5461 = vmatmul.mubr.msk.f32.vlgmr.msra.gmra.mxu0 %vm236_vm2, %v2784_v49 }
 0x6d8   :  { %5446 = vmatprep.mubr.msk.f32.mxu1 %vm5960_vm0, %v5959_v0  ;;  %5463 = vmatprep.mubr.msk.f32.mxu0 %vm5960_vm0, %v5959_v0 }
 0x6d9   :  { %5469 = vmatprep.subr.mxu1 %v5959_v0  ;;  %5486 = vmatprep.subr.mxu0 %v5959_v0 }
 0x6da   :  { %5470 = vmatpush3.msra.mxu1 %v2892_v34  ;;  %5487 = vmatpush3.msra.mxu0 %v2995_v38 }
 0x6db   :  { %5447 = vmatmul.mubr.msk.f32.gmra.mxu1 %vm236_vm2, %v2688_v53  ;;  %5464 = vmatmul.mubr.msk.f32.gmra.mxu0 %vm236_vm2, %v2786_v1 }
 0x6dc   :  { %v5314_v54 = vpop.f32.mrf.mxu0  ;;  %5449 = vmatprep.mubr.msk.f32.mxu1 %vm5960_vm0, %v5959_v0  ;;  %5466 = vmatprep.mubr.msk.f32.mxu0 %vm5960_vm0, %v5959_v0 }
 0x6dd   :  { %v1786_v57 = vadd.f32 %v5337_v39, %v5314_v54  ;;  %5471 = vmatprep.subr.mxu1 %v5959_v0  ;;  %5488 = vmatprep.subr.mxu0 %v5959_v0  ;;  %v4631_v39 = vld [vmem:[%s7295_s16] ss:$0 sm:$0xff] }
 0x6de   :  { %v1635_v58 = vpop.f32.mrf.mxu0  ;;  %5472 = vmatpush3.msra.mxu1 %v2891_v35 }
 0x6df   :  { %v1837_v59 = vadd.f32 %v4620_v55, %v1786_v57  ;;  %v1781_v60 = vadd.f32 %v1780_v46, %v1635_v58  ;;  %5450 = vmatmul.mubr.msk.f32.gmra.mxu1 %vm236_vm2, %v2687_v50  ;;  %5467 = vmatmul.mubr.msk.f32.gmra.mxu0 %vm236_vm2, %v2785_v51 }
 0x6e0   :  { %v5317_v61 = vpop.f32.mrf.mxu0  ;;  %5477 = vmatprep.mubr.msk.f32.mxu1 %vm5960_vm0, %v5959_v0  ;;  %5494 = vmatprep.mubr.msk.f32.mxu0 %vm5960_vm0, %v5959_v0 }
 0x6e1   :  { %1848 = vst.msk [vmem:[%s7298_s19 + $0x8] sm:$0xff] %vm1846_vm9, %v1837_v59  ;;  %v1836_v63 = vadd.f32 %v4620_v55, %v1781_v60  ;;  %v1796_v2 = vadd.f32 %v5340_v52, %v5317_v61  ;;  %5473 = vmatprep.subr.mxu1 %v5959_v0 }
 0x6e2   :  { %v1645_v4 = vpop.f32.mrf.mxu0  ;;  %5474 = vmatpush3.msra.mxu1 %v2890_v36 }
 0x6e3   :  { %1847 = vst.msk [vmem:[%s7298_s19] sm:$0xff] %vm1846_vm9, %v1836_v63  ;;  %v1839_v11 = vadd.f32 %v4620_v55, %v1796_v2  ;;  %v1791_v12 = vadd.f32 %v1790_v3, %v1645_v4  ;;  %5475 = vmatprep.subr.mxu1 %v5959_v0 }
 0x6e4   :  { %v5320_v13 = vpop.f32.mrf.mxu0  ;;  %5476 = vmatpush3.msra.mxu1 %v2889_v37 }
 0x6e5   :  { %1850 = vst.msk [vmem:[%s7298_s19 + $0x18] sm:$0xff] %vm1846_vm9, %v1839_v11  ;;  %v1838_v14 = vadd.f32 %v4620_v55, %v1791_v12  ;;  %v1806_v15 = vadd.f32 %v5343_v56, %v5320_v13  ;;  %5503 = vmatprep.subr.mxu1 %v5959_v0 }
 0x6e6   :  { %v1655_v17 = vpop.f32.mrf.mxu0 }
 0x6e7   :  { %1849 = vst.msk [vmem:[%s7298_s19 + $0x10] sm:$0xff] %vm1846_vm9, %v1838_v14  ;;  %v1841_v19 = vadd.f32 %v4620_v55, %v1806_v15  ;;  %v1801_v20 = vadd.f32 %v1800_v62, %v1655_v17  ;;  %v4642_v17 = vld [vmem:[%s7297_s18] ss:$0 sm:$0xff] }
 0x6e8   :  { %v5323_v21 = vpop.f32.mrf.mxu0 }
 0x6e9   :  { %1852 = vst.msk [vmem:[%s7298_s19 + $0x28] sm:$0xff] %vm1846_vm9, %v1841_v19  ;;  %v1840_v23 = vadd.f32 %v4620_v55, %v1801_v20  ;;  %v1816_v24 = vadd.f32 %v5346_v9, %v5323_v21 }
 0x6ea   :  { %v1665_v25 = vpop.f32.mrf.mxu0 }
 0x6eb   :  { %1851 = vst.msk [vmem:[%s7298_s19 + $0x20] sm:$0xff] %vm1846_vm9, %v1840_v23  ;;  %v1843_v26 = vadd.f32 %v4620_v55, %v1816_v24  ;;  %v1811_v27 = vadd.f32 %v1810_v18, %v1665_v25 }
 0x6ec   :  { %v5326_v28 = vpop.f32.mrf.mxu0 }
 0x6ed   :  { %1854 = vst.msk [vmem:[%s7298_s19 + $0x38] sm:$0xff] %vm1846_vm9, %v1843_v26  ;;  %v1842_v30 = vadd.f32 %v4620_v55, %v1811_v27  ;;  %v1826_v31 = vadd.f32 %v5349_v22, %v5326_v28 }
 0x6ee   :  { %v1675_v32 = vpop.f32.mrf.mxu0 }
 0x6ef   :  { %1853 = vst.msk [vmem:[%s7298_s19 + $0x30] sm:$0xff] %vm1846_vm9, %v1842_v30  ;;  %v1845_v10 = vadd.f32 %v4620_v55, %v1826_v31  ;;  %v1821_v33 = vadd.f32 %v1820_v29, %v1675_v32 }
 0x6f1   :  { %1856 = vst.msk [vmem:[%s7298_s19 + $0x48] sm:$0xff] %vm1846_vm9, %v1845_v10  ;;  %v1844_v8 = vadd.f32 %v4620_v55, %v1821_v33 }
 0x6f3   :  { %1855 = vst.msk [vmem:[%s7298_s19 + $0x40] sm:$0xff] %vm1846_vm9, %v1844_v8 }
 0x750   :  { %v5354_v7 = vpop.f32.mrf.mxu1 }
 0x751   :  { %v2164_v40 = vadd.f32 %v5354_v7, %v4631_v39 }
 0x752   :  { %v2158_v41 = vpop.f32.mrf.mxu1 }
 0x753   :  { %2208 = vst.msk [vmem:[%s7300_s21 + $0x8] sm:$0xff] %vm1846_vm9, %v2164_v40  ;;  %v2159_v42 = vadd.f32 %v4631_v39, %v2158_v41 }
 0x754   :  { %v1965_v43 = vpop.f32.mrf.mxu0 }
 0x755   :  { %2207 = vst.msk [vmem:[%s7300_s21] sm:$0xff] %vm1846_vm9, %v2159_v42  ;;  %2024 = vst [vmem:[#allocation19] sm:$0xff] %v1965_v43 }
 0x756   :  { %v1967_v44 = vpop.f32.mrf.mxu0 }
 0x757   :  { %2025 = vst.msk [vmem:[#allocation19 + $0x8] sm:$0xff] %vm1846_vm9, %v1967_v44 }
 0x758   :  { %v1971_v45 = vpop.f32.mrf.mxu0 }
 0x759   :  { %2026 = vst [vmem:[#allocation19 + $0x10] sm:$0xff] %v1971_v45 }
 0x75a   :  { %v1973_v46 = vpop.f32.mrf.mxu0 }
 0x75b   :  { %2027 = vst.msk [vmem:[#allocation19 + $0x18] sm:$0xff] %vm1846_vm9, %v1973_v46 }
 0x75c   :  { %v1977_v47 = vpop.f32.mrf.mxu0 }
 0x75d   :  { %2028 = vst [vmem:[#allocation19 + $0x20] sm:$0xff] %v1977_v47  ;;  %v5357_v48 = vpop.f32.mrf.mxu1 }
 0x75e   :  { %v2174_v49 = vadd.f32 %v5357_v48, %v4631_v39  ;;  %v1979_v50 = vpop.f32.mrf.mxu0 }
 0x75f   :  { %2029 = vst.msk [vmem:[#allocation19 + $0x28] sm:$0xff] %vm1846_vm9, %v1979_v50  ;;  %v2168_v51 = vpop.f32.mrf.mxu1 }
 0x760   :  { %2210 = vst.msk [vmem:[%s7300_s21 + $0x18] sm:$0xff] %vm1846_vm9, %v2174_v49  ;;  %v2169_v52 = vadd.f32 %v4631_v39, %v2168_v51  ;;  %v1983_v53 = vpop.f32.mrf.mxu0 }
 0x761   :  { %2030 = vst [vmem:[#allocation19 + $0x30] sm:$0xff] %v1983_v53 }
 0x762   :  { %2209 = vst.msk [vmem:[%s7300_s21 + $0x10] sm:$0xff] %vm1846_vm9, %v2169_v52  ;;  %v1985_v1 = vpop.f32.mrf.mxu0 }
 0x763   :  { %2031 = vst.msk [vmem:[#allocation19 + $0x38] sm:$0xff] %vm1846_vm9, %v1985_v1  ;;  %v5360_v3 = vpop.f32.mrf.mxu1 }
 0x764   :  { %v2184_v54 = vadd.f32 %v5360_v3, %v4631_v39  ;;  %v1989_v55 = vpop.f32.mrf.mxu0 }
 0x765   :  { %2032 = vst [vmem:[#allocation19 + $0x40] sm:$0xff] %v1989_v55  ;;  %v2178_v56 = vpop.f32.mrf.mxu1 }
 0x766   :  { %2212 = vst.msk [vmem:[%s7300_s21 + $0x28] sm:$0xff] %vm1846_vm9, %v2184_v54  ;;  %v2179_v57 = vadd.f32 %v4631_v39, %v2178_v56  ;;  %v1991_v58 = vpop.f32.mrf.mxu0 }
 0x767   :  { %2033 = vst.msk [vmem:[#allocation19 + $0x48] sm:$0xff] %vm1846_vm9, %v1991_v58 }
 0x768   :  { %2211 = vst.msk [vmem:[%s7300_s21 + $0x20] sm:$0xff] %vm1846_vm9, %v2179_v57  ;;  %v1995_v59 = vpop.f32.mrf.mxu0 }
 0x769   :  { %2034 = vst [vmem:[#allocation19 + $0x50] sm:$0xff] %v1995_v59  ;;  %v5363_v60 = vpop.f32.mrf.mxu1 }
 0x76a   :  { %v2194_v61 = vadd.f32 %v5363_v60, %v4631_v39  ;;  %v1997_v62 = vpop.f32.mrf.mxu0 }
 0x76b   :  { %2035 = vst.msk [vmem:[#allocation19 + $0x58] sm:$0xff] %vm1846_vm9, %v1997_v62  ;;  %v2188_v63 = vpop.f32.mrf.mxu1  ;;  %v4687_v62 = vld [vmem:[%s7318_s7] ss:$0 sm:$0xff] }
 0x76c   :  { %2214 = vst.msk [vmem:[%s7300_s21 + $0x38] sm:$0xff] %vm1846_vm9, %v2194_v61  ;;  %v2189_v2 = vadd.f32 %v4631_v39, %v2188_v63  ;;  %v2001_v4 = vpop.f32.mrf.mxu0 }
 0x76d   :  { %2036 = vst [vmem:[#allocation19 + $0x60] sm:$0xff] %v2001_v4 }
 0x76e   :  { %2213 = vst.msk [vmem:[%s7300_s21 + $0x30] sm:$0xff] %vm1846_vm9, %v2189_v2  ;;  %v2003_v9 = vpop.f32.mrf.mxu0 }
 0x76f   :  { %2037 = vst.msk [vmem:[#allocation19 + $0x68] sm:$0xff] %vm1846_vm9, %v2003_v9 }
 0x770   :  { %v2007_v11 = vpop.f32.mrf.mxu0  ;;  %v5366_v12 = vpop.f32.mrf.mxu1 }
 0x771   :  { %2038 = vst [vmem:[#allocation19 + $0x70] sm:$0xff] %v2007_v11  ;;  %v2204_v13 = vadd.f32 %v5366_v12, %v4631_v39 }
 0x772   :  { %v2009_v14 = vpop.f32.mrf.mxu0  ;;  %v2198_v15 = vpop.f32.mrf.mxu1 }
 0x773   :  { %2216 = vst.msk [vmem:[%s7300_s21 + $0x48] sm:$0xff] %vm1846_vm9, %v2204_v13  ;;  %2039 = vst.msk [vmem:[#allocation19 + $0x78] sm:$0xff] %vm1846_vm9, %v2009_v14  ;;  %v2199_v18 = vadd.f32 %v4631_v39, %v2198_v15 }
 0x774   :  { %v2013_v19 = vpop.f32.mrf.mxu0  ;;  %v5371_v20 = vpop.f32.mrf.mxu1 }
 0x775   :  { %2215 = vst.msk [vmem:[%s7300_s21 + $0x40] sm:$0xff] %vm1846_vm9, %v2199_v18  ;;  %2040 = vst [vmem:[#allocation19 + $0x80] sm:$0xff] %v2013_v19  ;;  %v2337_v21 = vadd.f32 %v5371_v20, %v4642_v17 }
 0x776   :  { %v2015_v22 = vpop.f32.mrf.mxu0  ;;  %v2331_v23 = vpop.f32.mrf.mxu1 }
 0x777   :  { %2381 = vst.msk [vmem:[%s7301_s22 + $0x8] sm:$0xff] %vm1846_vm9, %v2337_v21  ;;  %2041 = vst.msk [vmem:[#allocation19 + $0x88] sm:$0xff] %vm1846_vm9, %v2015_v22  ;;  %v2332_v24 = vadd.f32 %v4642_v17, %v2331_v23 }
 0x778   :  { %v5374_v25 = vpop.f32.mrf.mxu1 }
 0x779   :  { %2380 = vst.msk [vmem:[%s7301_s22] sm:$0xff] %vm1846_vm9, %v2332_v24  ;;  %v2347_v26 = vadd.f32 %v5374_v25, %v4642_v17 }
 0x77a   :  { %v2019_v27 = vpop.f32.mrf.mxu0  ;;  %v2341_v28 = vpop.f32.mrf.mxu1 }
 0x77b   :  { %2383 = vst.msk [vmem:[%s7301_s22 + $0x18] sm:$0xff] %vm1846_vm9, %v2347_v26  ;;  %2042 = vst [vmem:[#allocation19 + $0x90] sm:$0xff] %v2019_v27  ;;  %v2342_v29 = vadd.f32 %v4642_v17, %v2341_v28 }
 0x77c   :  { %v2021_v30 = vpop.f32.mrf.mxu0 }
 0x77d   :  { %2382 = vst.msk [vmem:[%s7301_s22 + $0x10] sm:$0xff] %vm1846_vm9, %v2342_v29  ;;  %2043 = vst.msk [vmem:[#allocation19 + $0x98] sm:$0xff] %vm1846_vm9, %v2021_v30 }
 0x77e   :  { %v5377_v31 = vpop.f32.mrf.mxu1  ;;  %v2482_v32 = vpop.f32.mrf.mxu0 }
 0x77f   :  { %v2357_v10 = vadd.f32 %v5377_v31, %v4642_v17 }
 0x780   :  { %v2351_v33 = vpop.f32.mrf.mxu1  ;;  %v5394_v8 = vpop.f32.mrf.mxu0 }
 0x781   :  { %2385 = vst.msk [vmem:[%s7301_s22 + $0x28] sm:$0xff] %vm1846_vm9, %v2357_v10  ;;  %v2352_v34 = vadd.f32 %v4642_v17, %v2351_v33  ;;  %v2993_v10 = vld [vmem:[#allocation7 + $0x8] sm:$0xff]  ;;  %v2992_v33 = vld [vmem:[#allocation7] sm:$0xff]  ;;  %v3098_v8 = vld [vmem:[#allocation2 + $0x38] sm:$0xff] }
 0x782   :  { %v5380_v35 = vpop.f32.mrf.mxu1  ;;  %v2487_v36 = vpop.f32.mrf.mxu0 }
 0x783   :  { %2384 = vst.msk [vmem:[%s7301_s22 + $0x20] sm:$0xff] %vm1846_vm9, %v2352_v34  ;;  %v2367_v37 = vadd.f32 %v5380_v35, %v4642_v17  ;;  %v4688_v34 = vld [vmem:[#allocation5] ss:$0 sm:$0xff] }
 0x784   :  { %v2361_v38 = vpop.f32.mrf.mxu1  ;;  %v5397_v39 = vpop.f32.mrf.mxu0 }
 0x785   :  { %2387 = vst.msk [vmem:[%s7301_s22 + $0x38] sm:$0xff] %vm1846_vm9, %v2367_v37  ;;  %v2362_v7 = vadd.f32 %v4642_v17, %v2361_v38 }
 0x786   :  { %v5383_v40 = vpop.f32.mrf.mxu1  ;;  %v2492_v41 = vpop.f32.mrf.mxu0 }
 0x787   :  { %2386 = vst.msk [vmem:[%s7301_s22 + $0x30] sm:$0xff] %vm1846_vm9, %v2362_v7  ;;  %v2377_v42 = vadd.f32 %v5383_v40, %v4642_v17 }
 0x788   :  { %v2371_v43 = vpop.f32.mrf.mxu1  ;;  %v5400_v44 = vpop.f32.mrf.mxu0 }
 0x789   :  { %2389 = vst.msk [vmem:[%s7301_s22 + $0x48] sm:$0xff] %vm1846_vm9, %v2377_v42  ;;  %v2372_v45 = vadd.f32 %v4642_v17, %v2371_v43 }
 0x78a   :  { %v2568_v46 = vpop.f32.mrf.mxu1  ;;  %v2663_v47 = vpop.f32.mrf.mxu0 }
 0x78b   :  { %2388 = vst.msk [vmem:[%s7301_s22 + $0x40] sm:$0xff] %vm1846_vm9, %v2372_v45  ;;  %v2569_v1 = vadd.f32 %v2568_v46, %v2482_v32  ;;  %v2994_v32 = vld [vmem:[#allocation7 + $0x10] sm:$0xff] }
 0x78c   :  { %v5411_v48 = vpop.f32.mrf.mxu1  ;;  %v5428_v49 = vpop.f32.mrf.mxu0  ;;  %5489 = vmatpush3.msra.mxu0 %v2994_v32  ;;  %v3097_v46 = vld [vmem:[#allocation2 + $0x30] sm:$0xff]  ;;  %v3301_v32 = vld [vmem:[#allocation10] sm:$0xff] }
 0x78d   :  { %v2677_v57 = vadd.f32 %v2663_v47, %v2569_v1  ;;  %5490 = vmatprep.subr.mxu0 %v5959_v0  ;;  %v3096_v47 = vld [vmem:[#allocation2 + $0x28] sm:$0xff]  ;;  %v3095_v48 = vld [vmem:[#allocation2 + $0x20] sm:$0xff] }
 0x78e   :  { %v2573_v50 = vpop.f32.mrf.mxu1  ;;  %v2668_v51 = vpop.f32.mrf.mxu0  ;;  %5491 = vmatpush3.msra.mxu0 %v2993_v10  ;;  %v3201_v49 = vld [vmem:[#allocation7 + $0x38] sm:$0xff]  ;;  %v4700_v10 = vld [vmem:[#allocation8 + $0x1] ss:$0 sm:$0xff] }
 0x78f   :  { %v2574_v58 = vadd.f32 %v2573_v50, %v2487_v36  ;;  %5492 = vmatprep.subr.mxu0 %v5959_v0  ;;  %v4692_v50 = vld [vmem:[#allocation8] ss:$0 sm:$0xff] }
 0x790   :  { %v5414_v52 = vpop.f32.mrf.mxu1  ;;  %v5431_v53 = vpop.f32.mrf.mxu0  ;;  %5493 = vmatpush3.msra.mxu0 %v2992_v33 }
 0x791   :  { %v2678_v4 = vadd.f32 %v2668_v51, %v2574_v58  ;;  %5520 = vmatprep.subr.mxu0 %v5959_v0 }
 0x792   :  { %v2578_v3 = vpop.f32.mrf.mxu1  ;;  %v2673_v54 = vpop.f32.mrf.mxu0 }
 0x793   :  { %v2579_v9 = vadd.f32 %v2578_v3, %v2492_v41 }
 0x794   :  { %v5417_v55 = vpop.f32.mrf.mxu1  ;;  %v5434_v56 = vpop.f32.mrf.mxu0 }
 0x795   :  { %v2679_v19 = vadd.f32 %v2673_v54, %v2579_v9 }
 0x797   :  { %v2761_v59 = vpop.f32.mrf.mxu1  ;;  %v2859_v60 = vpop.f32.mrf.mxu0 }
 0x798   :  { %v2775_v61 = vadd.f32 %v2761_v59, %v2677_v57 }
 0x799   :  { %v5445_v63 = vpop.f32.mrf.mxu1  ;;  %v5462_v2 = vpop.f32.mrf.mxu0 }
 0x79a   :  { %v2873_v11 = vadd.f32 %v2859_v60, %v2775_v61  ;;  %v3200_v61 = vld [vmem:[#allocation7 + $0x30] sm:$0xff]  ;;  %v3198_v63 = vld [vmem:[#allocation7 + $0x20] sm:$0xff] }
 0x79b   :  { %v2766_v12 = vpop.f32.mrf.mxu1  ;;  %v2864_v13 = vpop.f32.mrf.mxu0  ;;  %v3304_v2 = vld [vmem:[#allocation10 + $0x18] sm:$0xff] }
 0x79c   :  { %v6873_v14 = vadd.f32 %v4687_v62, %v2873_v11  ;;  %v2776_v15 = vadd.f32 %v2766_v12, %v2678_v4  ;;  %v4696_v4 = vld [vmem:[#allocation5 + $0x1] ss:$0 sm:$0xff] }
 0x79d   :  { %v5448_v17 = vpop.f32.mrf.mxu1  ;;  %v5465_v18 = vpop.f32.mrf.mxu0 }
 0x79e   :  { %v2886_v20 = vmax.f32 %v6873_v14, 0.0  ;;  %v2874_v21 = vadd.f32 %v2864_v13, %v2776_v15 }
 0x79f   :  { %v2771_v22 = vpop.f32.mrf.mxu1  ;;  %v2869_v23 = vpop.f32.mrf.mxu0 }
 0x7a0   :  { %v6876_v24 = vadd.f32 %v4687_v62, %v2874_v21  ;;  %v2777_v25 = vadd.f32 %v2771_v22, %v2679_v19  ;;  %5478 = vmatmul.mubr.msk.f32.vlgmr.msra.gmra.mxu1 %vm236_vm2, %v2886_v20 }
 0x7a1   :  { %v5451_v26 = vpop.f32.mrf.mxu1  ;;  %v5468_v27 = vpop.f32.mrf.mxu0  ;;  %5480 = vmatprep.mubr.msk.f32.mxu1 %vm5960_vm0, %v5959_v0  ;;  %5504 = vmatpush3.msra.mxu1 %v3098_v8 }
 0x7a2   :  { %v2887_v28 = vmax.f32 %v6876_v24, 0.0  ;;  %v2875_v29 = vadd.f32 %v2869_v23, %v2777_v25  ;;  %5505 = vmatprep.subr.mxu1 %v5959_v0  ;;  %v5693_v23 = vld [vmem:[%s7319_s28 + $0x10] sm:$0xff]  ;;  %v5695_v24 = vld [vmem:[%s7319_s28 + $0x20] sm:$0xff]  ;;  %v5696_v25 = vld [vmem:[%s7319_s28 + $0x28] sm:$0xff] }
 0x7a3   :  { %5506 = vmatpush3.msra.mxu1 %v3097_v46  ;;  %v5697_v26 = vld [vmem:[%s7319_s28 + $0x30] sm:$0xff]  ;;  %v5698_v27 = vld [vmem:[%s7319_s28 + $0x38] sm:$0xff] }
 0x7a4   :  { %v6884_v30 = vadd.f32 %v4687_v62, %v2875_v29  ;;  %5481 = vmatmul.mubr.msk.f32.gmra.mxu1 %vm236_vm2, %v2887_v28  ;;  %5507 = vmatprep.subr.mxu1 %v5959_v0  ;;  %v3199_v62 = vld [vmem:[#allocation7 + $0x28] sm:$0xff] }
 0x7a5   :  { %5483 = vmatprep.mubr.msk.f32.mxu1 %vm5960_vm0, %v5959_v0  ;;  %5508 = vmatpush3.msra.mxu1 %v3096_v47  ;;  %v5700_v29 = vld [vmem:[%s7319_s28 + $0x48] sm:$0xff] }
 0x7a6   :  { %v2888_v31 = vmax.f32 %v6884_v30, 0.0  ;;  %5509 = vmatprep.subr.mxu1 %v5959_v0  ;;  %v3303_v30 = vld [vmem:[#allocation10 + $0x10] sm:$0xff] }
 0x7a7   :  { %5510 = vmatpush3.msra.mxu1 %v3095_v48  ;;  %v4704_v48 = vld [vmem:[#allocation11] ss:$0 sm:$0xff] }
 0x7a8   :  { %5484 = vmatmul.mubr.msk.f32.gmra.mxu1 %vm236_vm2, %v2888_v31  ;;  %5537 = vmatprep.subr.mxu1 %v5959_v0 }
 0x7a9   :  { %5511 = vmatprep.mubr.msk.f32.mxu1 %vm5960_vm0, %v5959_v0 }
 0x860   :  { %v2975_v35 = vpop.f32.mrf.mxu1 }
 0x861   :  { %v2976_v36 = vadd.f32 %v4688_v34, %v2975_v35 }
 0x862   :  { %v5479_v37 = vpop.f32.mrf.mxu1 }
 0x863   :  { %v2989_v38 = vmax.f32 %v2976_v36, 0.0 }
 0x864   :  { %v2980_v39 = vpop.f32.mrf.mxu1 }
 0x865   :  { %v2981_v7 = vadd.f32 %v4688_v34, %v2980_v39  ;;  %5495 = vmatmul.mubr.msk.f32.vlgmr.msra.gmra.mxu0 %vm236_vm2, %v2989_v38 }
 0x866   :  { %v5482_v40 = vpop.f32.mrf.mxu1  ;;  %5497 = vmatprep.mubr.msk.f32.mxu0 %vm5960_vm0, %v5959_v0  ;;  %5521 = vmatpush3.msra.mxu0 %v3201_v49 }
 0x867   :  { %v2990_v41 = vmax.f32 %v2981_v7, 0.0  ;;  %5522 = vmatprep.subr.mxu0 %v5959_v0 }
 0x868   :  { %v2985_v42 = vpop.f32.mrf.mxu1  ;;  %5523 = vmatpush3.msra.mxu0 %v3200_v61  ;;  %v5710_v61 = vld [vmem:[%s7320_s0 + $0x48] sm:$0xff] }
 0x869   :  { %v2986_v43 = vadd.f32 %v4688_v34, %v2985_v42  ;;  %5498 = vmatmul.mubr.msk.f32.gmra.mxu0 %vm236_vm2, %v2990_v41  ;;  %5524 = vmatprep.subr.mxu0 %v5959_v0 }
 0x86a   :  { %v5485_v44 = vpop.f32.mrf.mxu1  ;;  %5500 = vmatprep.mubr.msk.f32.mxu0 %vm5960_vm0, %v5959_v0  ;;  %5525 = vmatpush3.msra.mxu0 %v3199_v62  ;;  %v3636_v62 = vld [vmem:[#allocation13 + $0x10] sm:$0xff] }
 0x86b   :  { %v2991_v45 = vmax.f32 %v2986_v43, 0.0  ;;  %5526 = vmatprep.subr.mxu0 %v5959_v0  ;;  %v5701_v43 = vld [vmem:[%s7320_s0] sm:$0xff] }
 0x86c   :  { %5527 = vmatpush3.msra.mxu0 %v3198_v63  ;;  %v3635_v63 = vld [vmem:[#allocation13 + $0x8] sm:$0xff] }
 0x86d   :  { %5501 = vmatmul.mubr.msk.f32.gmra.mxu0 %vm236_vm2, %v2991_v45  ;;  %5554 = vmatprep.subr.mxu0 %v6596_v16 }
 0x86e   :  { %5528 = vmatprep.mubr.msk.f32.mxu0 %vm5960_vm0, %v5959_v0 }
 0x925   :  { %v3078_v51 = vpop.f32.mrf.mxu0 }
 0x926   :  { %v3079_v52 = vadd.f32 %v4692_v50, %v3078_v51 }
 0x927   :  { %v5496_v53 = vpop.f32.mrf.mxu0 }
 0x928   :  { %v6912_v1 = vadd.f32 %v3079_v52, %v2886_v20 }
 0x929   :  { %v3083_v3 = vpop.f32.mrf.mxu0 }
 0x92a   :  { %v3084_v54 = vadd.f32 %v4692_v50, %v3083_v3  ;;  %5512 = vmatmul.mubr.msk.f32.vlgmr.msra.gmra.mxu1 %vm236_vm2, %v6912_v1  ;;  %v5702_v3 = vld [vmem:[%s7320_s0 + $0x8] sm:$0xff] }
 0x92b   :  { %v5499_v55 = vpop.f32.mrf.mxu0  ;;  %5514 = vmatprep.mubr.msk.f32.mxu1 %vm5960_vm0, %v5959_v0  ;;  %5538 = vmatpush3.msra.mxu1 %v3304_v2 }
 0x92c   :  { %v6918_v56 = vadd.f32 %v3084_v54, %v2887_v28  ;;  %5539 = vmatprep.subr.mxu1 %v5959_v0  ;;  %v5699_v28 = vld [vmem:[%s7319_s28 + $0x40] sm:$0xff]  ;;  %v5703_v54 = vld [vmem:[%s7320_s0 + $0x10] sm:$0xff]  ;;  %v5704_v55 = vld [vmem:[%s7320_s0 + $0x18] sm:$0xff] }
 0x92d   :  { %v3088_v57 = vpop.f32.mrf.mxu0  ;;  %5540 = vmatpush3.msra.mxu1 %v3303_v30 }
 0x92e   :  { %v3089_v58 = vadd.f32 %v4692_v50, %v3088_v57  ;;  %5515 = vmatmul.mubr.msk.f32.gmra.mxu1 %vm236_vm2, %v6918_v56  ;;  %5541 = vmatprep.subr.mxu1 %v5959_v0  ;;  %v5706_v57 = vld [vmem:[%s7320_s0 + $0x28] sm:$0xff] }
 0x92f   :  { %v5502_v59 = vpop.f32.mrf.mxu0  ;;  %5517 = vmatprep.mubr.msk.f32.mxu1 %vm5960_vm0, %v5959_v0 }
 0x930   :  { %v6924_v60 = vadd.f32 %v3089_v58, %v2888_v31  ;;  %v3302_v31 = vld [vmem:[#allocation10 + $0x8] sm:$0xff]  ;;  %v5708_v59 = vld [vmem:[%s7320_s0 + $0x38] sm:$0xff] }
 0x931   :  { %5542 = vmatpush3.msra.mxu1 %v3302_v31  ;;  %v5707_v58 = vld [vmem:[%s7320_s0 + $0x30] sm:$0xff] }
 0x932   :  { %5518 = vmatmul.mubr.msk.f32.gmra.mxu1 %vm236_vm2, %v6924_v60  ;;  %5543 = vmatprep.subr.mxu1 %v5959_v0 }
 0x933   :  { %5545 = vmatprep.mubr.msk.f32.mxu1 %vm5960_vm0, %v5959_v0  ;;  %5544 = vmatpush3.msra.mxu1 %v3301_v32 }
 0x9ea   :  { %v3181_v9 = vpop.f32.mrf.mxu1 }
 0x9eb   :  { %v3182_v11 = vadd.f32 %v4696_v4, %v3181_v9  ;;  %v3634_v9 = vld [vmem:[#allocation13] sm:$0xff] }
 0x9ec   :  { %v5513_v12 = vpop.f32.mrf.mxu1 }
 0x9ed   :  { %v3195_v13 = vmax.f32 %v3182_v11, 0.0 }
 0x9ee   :  { %v3186_v14 = vpop.f32.mrf.mxu1 }
 0x9ef   :  { %v3187_v15 = vadd.f32 %v4696_v4, %v3186_v14  ;;  %5529 = vmatmul.mubr.msk.f32.vlgmr.msra.gmra.mxu0 %vm236_vm2, %v3195_v13 }
 0x9f0   :  { %v5516_v17 = vpop.f32.mrf.mxu1  ;;  %5531 = vmatprep.mubr.msk.f32.mxu0 %vm5960_vm0, %v5959_v0  ;;  %5555 = vmatpush3.msra.mxu0 %v6596_v16  ;;  %v5691_v16 = vld [vmem:[%s7319_s28] sm:$0xff] }
 0x9f1   :  { %v3196_v18 = vmax.f32 %v3187_v15, 0.0  ;;  %5556 = vmatprep.subr.mxu0 %v6579_v6 }
 0x9f2   :  { %v3191_v19 = vpop.f32.mrf.mxu1  ;;  %5557 = vmatpush3.msra.mxu0 %v6579_v6  ;;  %v5692_v6 = vld [vmem:[%s7319_s28 + $0x8] sm:$0xff] }
 0x9f3   :  { %v3192_v20 = vadd.f32 %v4696_v4, %v3191_v19  ;;  %5532 = vmatmul.mubr.msk.f32.gmra.mxu0 %vm236_vm2, %v3196_v18  ;;  %5558 = vmatprep.subr.mxu0 %v6574_v5  ;;  %v3638_v4 = vld [vmem:[#allocation14] sm:$0xff] }
 0x9f4   :  { %v5519_v21 = vpop.f32.mrf.mxu1  ;;  %5534 = vmatprep.mubr.msk.f32.mxu0 %vm5960_vm0, %v5959_v0  ;;  %5559 = vmatpush3.msra.mxu0 %v6574_v5  ;;  %v5694_v5 = vld [vmem:[%s7319_s28 + $0x18] sm:$0xff] }
 0x9f5   :  { %v3197_v22 = vmax.f32 %v3192_v20, 0.0  ;;  %5596 = vmatprep.subr.mxu0 %v3638_v4  ;;  %v4145_v21 = vld [vmem:[%s7294_s15] sm:$0xff] }
 0x9f7   :  { %5535 = vmatmul.mubr.msk.f32.gmra.mxu0 %vm236_vm2, %v3197_v22  ;;  %v3958_v22 = vld [vmem:[%s7293_s14 + $0x8] sm:$0xff] }
 0x9f8   :  { %5560 = vmatprep.mubr.msk.f32.mxu0 %vm1238_vm6, %v5691_v16 }
 0x9fb   :  { %5561 = vmatmul.mubr.msk.f32.vlgmr.msra.gmra.mxu0 %vm1238_vm6, %v5692_v6 }
 0x9fc   :  { %5563 = vmatprep.mubr.msk.f32.mxu0 %vm1238_vm6, %v5693_v23  ;;  %5597 = vmatpush3.msra.mxu0 %v3638_v4  ;;  %v3957_v23 = vld [vmem:[%s7293_s14] sm:$0xff] }
 0x9fd   :  { %4029 = vmatprep.subr.mxu0 %v3958_v22 }
 0x9ff   :  { %5564 = vmatmul.mubr.msk.f32.gmra.mxu0 %vm1238_vm6, %v5694_v5 }
 0xa00   :  { %5566 = vmatprep.mubr.msk.f32.mxu0 %vm1238_vm6, %v5695_v24 }
 0xa03   :  { %5567 = vmatmul.mubr.msk.f32.gmra.mxu0 %vm1238_vm6, %v5696_v25 }
 0xa04   :  { %5569 = vmatprep.mubr.msk.f32.mxu0 %vm1238_vm6, %v5697_v26 }
 0xa07   :  { %5570 = vmatmul.mubr.msk.f32.gmra.mxu0 %vm1238_vm6, %v5698_v27 }
 0xa08   :  { %5572 = vmatprep.mubr.msk.f32.mxu0 %vm1238_vm6, %v5699_v28  ;;  %v4319_v28 = vld [vmem:[#allocation17] sm:$0xff] }
 0xa0b   :  { %5573 = vmatmul.mubr.msk.f32.gmra.mxu0 %vm1238_vm6, %v5700_v29 }
 0xaaf   :  { %v3284_v33 = vpop.f32.mrf.mxu0 }
 0xab0   :  { %v3285_v8 = vadd.f32 %v4700_v10, %v3284_v33 }
 0xab1   :  { %v5530_v34 = vpop.f32.mrf.mxu0 }
 0xab2   :  { %v3298_v35 = vadd.f32 %v3285_v8, %v6912_v1  ;;  %v3637_v1 = vld [vmem:[#allocation13 + $0x18] sm:$0xff] }
 0xab3   :  { %v3289_v36 = vpop.f32.mrf.mxu0 }
 0xab4   :  { %v3290_v37 = vadd.f32 %v4700_v10, %v3289_v36  ;;  %5546 = vmatmul.mubr.msk.f32.vlgmr.msra.gmra.mxu1 %vm236_vm2, %v3298_v35 }
 0xab5   :  { %v5533_v38 = vpop.f32.mrf.mxu0  ;;  %5548 = vmatprep.mubr.msk.f32.mxu1 %vm5960_vm0, %v5959_v0 }
 0xab6   :  { %v3299_v39 = vadd.f32 %v3290_v37, %v6918_v56  ;;  %v5705_v56 = vld [vmem:[%s7320_s0 + $0x20] sm:$0xff] }
 0xab7   :  { %v3294_v7 = vpop.f32.mrf.mxu0 }
 0xab8   :  { %v3295_v40 = vadd.f32 %v4700_v10, %v3294_v7  ;;  %5549 = vmatmul.mubr.msk.f32.gmra.mxu1 %vm236_vm2, %v3299_v39 }
 0xab9   :  { %v5536_v41 = vpop.f32.mrf.mxu0  ;;  %5551 = vmatprep.mubr.msk.f32.mxu1 %vm5960_vm0, %v5959_v0 }
 0xaba   :  { %v3300_v42 = vadd.f32 %v3295_v40, %v6924_v60  ;;  %v5709_v60 = vld [vmem:[%s7320_s0 + $0x40] sm:$0xff] }
 0xabb   :  { %v5562_v2 = vpop.f32.mrf.mxu0 }
 0xabc   :  { %5552 = vmatmul.mubr.msk.f32.gmra.mxu1 %vm236_vm2, %v3300_v42 }
 0xabd   :  { %5581 = vmatprep.mubr.msk.f32.mxu1 %vm1384_vm7, %v5701_v43  ;;  %v3467_v11 = vpop.f32.mrf.mxu0 }
 0xabf   :  { %v5565_v12 = vpop.f32.mrf.mxu0 }
 0xac1   :  { %v3477_v13 = vpop.f32.mrf.mxu0 }
 0xac3   :  { %v5568_v14 = vpop.f32.mrf.mxu0 }
 0xac5   :  { %v3487_v15 = vpop.f32.mrf.mxu0 }
 0xac7   :  { %v5571_v17 = vpop.f32.mrf.mxu0 }
 0xac9   :  { %v3497_v18 = vpop.f32.mrf.mxu0 }
 0xacb   :  { %v5574_v19 = vpop.f32.mrf.mxu0 }
 0xacd   :  { %v3507_v20 = vpop.f32.mrf.mxu0 }
 0xb74   :  { %v3387_v44 = vpop.f32.mrf.mxu1 }
 0xb75   :  { %v3388_v53 = vadd.f32 %v4704_v48, %v3387_v44 }
 0xb76   :  { %v5547_v45 = vpop.f32.mrf.mxu1 }
 0xb78   :  { %v3392_v46 = vpop.f32.mrf.mxu1 }
 0xb79   :  { %v3393_v52 = vadd.f32 %v4704_v48, %v3392_v46 }
 0xb7a   :  { %v5550_v47 = vpop.f32.mrf.mxu1 }
 0xb7c   :  { %v3397_v49 = vpop.f32.mrf.mxu1 }
 0xb7d   :  { %v3398_v50 = vadd.f32 %v4704_v48, %v3397_v49 }
 0xb7e   :  { %v5553_v51 = vpop.f32.mrf.mxu1 }
 0xb7f   :  { %5575 = vmatprep.subr.msk.mxu1 %vm614_vm5, %v3398_v50 }
 0xb80   :  { %5576 = vmatpush3.msk.msra.mxu1 %vm614_vm5, %v3398_v50 }
 0xb81   :  { %5577 = vmatprep.subr.mxu1 %v3393_v52 }
 0xb82   :  { %5578 = vmatpush3.msra.mxu1 %v3393_v52 }
 0xb83   :  { %5579 = vmatprep.subr.mxu1 %v3388_v53 }
 0xb84   :  { %5580 = vmatpush3.msra.mxu1 %v3388_v53 }
 0xb85   :  { %5582 = vmatmul.mubr.msk.f32.vlgmr.msra.gmra.mxu1 %vm1384_vm7, %v5702_v3  ;;  %5613 = vmatprep.subr.mxu1 %v3637_v1 }
 0xb86   :  { %5584 = vmatprep.mubr.msk.f32.mxu1 %vm1384_vm7, %v5703_v54  ;;  %5614 = vmatpush3.msra.mxu1 %v3637_v1 }
 0xb87   :  { %5615 = vmatprep.subr.mxu1 %v3636_v62 }
 0xb88   :  { %5616 = vmatpush3.msra.mxu1 %v3636_v62 }
 0xb89   :  { %5585 = vmatmul.mubr.msk.f32.gmra.mxu1 %vm1384_vm7, %v5704_v55  ;;  %5617 = vmatprep.subr.mxu1 %v3635_v63 }
 0xb8a   :  { %5587 = vmatprep.mubr.msk.f32.mxu1 %vm1384_vm7, %v5705_v56  ;;  %5618 = vmatpush3.msra.mxu1 %v3635_v63  ;;  %v4749_v63 = vld [vmem:[#allocation16] ss:$0 sm:$0xff] }
 0xb8b   :  { %5619 = vmatprep.subr.mxu1 %v3634_v9 }
 0xb8c   :  { %5620 = vmatpush3.msra.mxu1 %v3634_v9 }
 0xb8d   :  { %5588 = vmatmul.mubr.msk.f32.gmra.mxu1 %vm1384_vm7, %v5706_v57  ;;  %5636 = vmatprep.subr.mxu1 %v4145_v21 }
 0xb8e   :  { %5590 = vmatprep.mubr.msk.f32.mxu1 %vm1384_vm7, %v5707_v58 }
 0xb91   :  { %5591 = vmatmul.mubr.msk.f32.gmra.mxu1 %vm1384_vm7, %v5708_v59 }
 0xb92   :  { %5593 = vmatprep.mubr.msk.f32.mxu1 %vm1384_vm7, %v5709_v60 }
 0xb95   :  { %5594 = vmatmul.mubr.msk.f32.gmra.mxu1 %vm1384_vm7, %v5710_v61 }
 0xb96   :  { %5621 = vmatprep.mubr.msk.f32.mxu1 %vm236_vm2, %v3467_v11 }
 0xb99   :  { %5622 = vmatmul.mubr.msk.f32.vlgmr.msra.gmra.mxu1 %vm236_vm2, %v5562_v2 }
 0xb9a   :  { %5624 = vmatprep.mubr.msk.f32.mxu1 %vm236_vm2, %v3477_v13  ;;  %5637 = vmatpush3.msra.mxu1 %v4145_v21 }
 0xb9b   :  { %5653 = vmatprep.subr.mxu1 %v4319_v28 }
 0xb9d   :  { %5625 = vmatmul.mubr.msk.f32.gmra.mxu1 %vm236_vm2, %v5565_v12 }
 0xb9e   :  { %5627 = vmatprep.mubr.msk.f32.mxu1 %vm236_vm2, %v3487_v15 }
 0xba1   :  { %5628 = vmatmul.mubr.msk.f32.gmra.mxu1 %vm236_vm2, %v5568_v14 }
 0xba2   :  { %5630 = vmatprep.mubr.msk.f32.mxu1 %vm236_vm2, %v3497_v18 }
 0xba5   :  { %5631 = vmatmul.mubr.msk.f32.gmra.mxu1 %vm236_vm2, %v5571_v17 }
 0xba6   :  { %5633 = vmatprep.mubr.msk.f32.mxu1 %vm236_vm2, %v3507_v20 }
 0xba9   :  { %5634 = vmatmul.mubr.msk.f32.gmra.mxu1 %vm236_vm2, %v5574_v19 }
 0xc45   :  { %v5583_v16 = vpop.f32.mrf.mxu1 }
 0xc46   :  { %4329 = vrot.lane.b32.xlu0 %v5583_v16, %s5963_s4  ;;  %4155 = vrot.lane.b32.xlu1 %v5583_v16, %s5962_s8 }
 0xc47   :  { %v3585_v6 = vpop.f32.mrf.mxu1 }
 0xc48   :  { %5598 = vmatprep.mubr.msk.f32.mxu0 %vm1538_vm8, %v3585_v6 }
 0xc49   :  { %5599 = vmatmul.mubr.msk.f32.vlgmr.msra.gmra.mxu0 %vm1538_vm8, %v5583_v16  ;;  %v5586_v5 = vpop.f32.mrf.mxu1 }
 0xc4a   :  { %3961 = vrot.lane.b32.xlu1 %v5583_v16, %s5961_s17  ;;  %4153 = vrot.lane.b32.xlu0 %v3585_v6, %s5962_s8 }
 0xc4b   :  { %v3595_v24 = vpop.f32.mrf.mxu1  ;;  %4030 = vmatpush1.msra.mxu0 %v3957_v23 }
 0xc4c   :  { %5601 = vmatprep.mubr.msk.f32.mxu0 %vm1538_vm8, %v3595_v24 }
 0xc4d   :  { %v5589_v25 = vpop.f32.mrf.mxu1  ;;  %5602 = vmatmul.mubr.msk.f32.gmra.mxu0 %vm1538_vm8, %v5586_v5 }
 0xc4e   :  { %4327 = vrot.lane.b32.xlu1 %v3585_v6, %s5963_s4  ;;  %3959 = vrot.lane.b32.xlu0 %v3585_v6, %s5961_s17 }
 0xc4f   :  { %v3605_v26 = vpop.f32.mrf.mxu1 }
 0xc50   :  { %5604 = vmatprep.mubr.msk.f32.mxu0 %vm1538_vm8, %v3605_v26 }
 0xc51   :  { %5605 = vmatmul.mubr.msk.f32.gmra.mxu0 %vm1538_vm8, %v5589_v25  ;;  %v5592_v27 = vpop.f32.mrf.mxu1 }
 0xc52   :  { %3965 = vrot.lane.b32.xlu1 %v5586_v5, %s5961_s17  ;;  %4159 = vrot.lane.b32.xlu0 %v5586_v5, %s5962_s8 }
 0xc53   :  { %v3615_v29 = vpop.f32.mrf.mxu1 }
 0xc54   :  { %5607 = vmatprep.mubr.msk.f32.mxu0 %vm1538_vm8, %v3615_v29 }
 0xc55   :  { %v5595_v30 = vpop.f32.mrf.mxu1  ;;  %5608 = vmatmul.mubr.msk.f32.gmra.mxu0 %vm1538_vm8, %v5592_v27 }
 0xc56   :  { %3963 = vrot.lane.b32.xlu0 %v3595_v24, %s5961_s17  ;;  %4157 = vrot.lane.b32.xlu1 %v3595_v24, %s5962_s8 }
 0xc57   :  { %v3625_v31 = vpop.f32.mrf.mxu1 }
 0xc58   :  { %5610 = vmatprep.mubr.msk.f32.mxu0 %vm1538_vm8, %v3625_v31 }
 0xc59   :  { %5611 = vmatmul.mubr.msk.f32.gmra.mxu0 %vm1538_vm8, %v5595_v30  ;;  %v5623_v57 = vpop.f32.mrf.mxu1 }
 0xc5a   :  { %4163 = vrot.lane.b32.xlu1 %v5589_v25, %s5962_s8  ;;  %4161 = vrot.lane.b32.xlu0 %v3605_v26, %s5962_s8 }
 0xc5b   :  { %4063 = vmatprep.mubr.f32.mxu0 %v5959_v0  ;;  %v3880_v58 = vpop.f32.mrf.mxu1 }
 0xc5d   :  { %v5626_v59 = vpop.f32.mrf.mxu1 }
 0xc5e   :  { %3969 = vrot.lane.b32.xlu1 %v5589_v25, %s5961_s17  ;;  %3967 = vrot.lane.b32.xlu0 %v3605_v26, %s5961_s17 }
 0xc5f   :  { %v3890_v60 = vpop.f32.mrf.mxu1 }
 0xc61   :  { %v5629_v61 = vpop.f32.mrf.mxu1 }
 0xc62   :  { %4167 = vrot.lane.b32.xlu0 %v5592_v27, %s5962_s8  ;;  %4165 = vrot.lane.b32.xlu1 %v3615_v29, %s5962_s8 }
 0xc63   :  { %v3900_v9 = vpop.f32.mrf.mxu1 }
 0xc66   :  { %4171 = vrot.lane.b32.xlu1 %v5595_v30, %s5962_s8  ;;  %4169 = vrot.lane.b32.xlu0 %v3625_v31, %s5962_s8 }
 0xc6a   :  { %4333 = vrot.lane.b32.xlu1 %v5586_v5, %s5963_s4  ;;  %4331 = vrot.lane.b32.xlu0 %v3595_v24, %s5963_s4 }
 0xc6e   :  { %4335 = vrot.lane.b32.xlu1 %v3605_v26, %s5963_s4  ;;  %3971 = vrot.lane.b32.xlu0 %v3615_v29, %s5961_s17 }
 0xc72   :  { %3973 = vrot.lane.b32.xlu1 %v5592_v27, %s5961_s17  ;;  %4337 = vrot.lane.b32.xlu0 %v5589_v25, %s5963_s4 }
 0xc76   :  { %4341 = vrot.lane.b32.xlu1 %v5592_v27, %s5963_s4  ;;  %4339 = vrot.lane.b32.xlu0 %v3615_v29, %s5963_s4 }
 0xc7a   :  { %4343 = vrot.lane.b32.xlu1 %v3625_v31, %s5963_s4  ;;  %3975 = vrot.lane.b32.xlu0 %v3625_v31, %s5961_s17 }
 0xc7e   :  { %3977 = vrot.lane.b32.xlu1 %v5595_v30, %s5961_s17  ;;  %4345 = vrot.lane.b32.xlu0 %v5595_v30, %s5963_s4 }
 0xcb8   :  { %v4330_v32 = vpop.permute.xlu0 %4329  ;;  %v4156_v10 = vpop.permute.xlu1 %4155 }
 0xcbc   :  { %v3962_v33 = vpop.permute.xlu1 %3961  ;;  %v4154_v8 = vpop.permute.xlu0 %4153 }
 0xcbd   :  { %5638 = vmatprep.mubr.msk.f32.mxu1 %vm1538_vm8, %v4154_v8 }
 0xcbe   :  { %5639 = vmatmul.mubr.msk.f32.vlgmr.msra.gmra.mxu1 %vm1538_vm8, %v4156_v10 }
 0xcbf   :  { %5654 = vmatpush3.msra.mxu1 %v4319_v28 }
 0xcc0   :  { %v4328_v34 = vpop.permute.xlu1 %4327  ;;  %v3960_v35 = vpop.permute.xlu0 %3959 }
 0xcc1   :  { %4760 = vmatmul.mubr.msk.f32.vlgmr.msra.gmra.mxu0 %vm1538_vm8, %v3960_v35 }
 0xcc2   :  { %4069 = vmatprep.mubr.f32.mxu0 %v5959_v0 }
 0xcc4   :  { %v3966_v36 = vpop.permute.xlu1 %3965  ;;  %v4160_v37 = vpop.permute.xlu0 %4159 }
 0xcc5   :  { %4761 = vmatmul.mubr.msk.f32.gmra.mxu0 %vm1538_vm8, %v3962_v33 }
 0xcc6   :  { %4075 = vmatprep.mubr.f32.mxu0 %v5959_v0 }
 0xcc8   :  { %v3964_v38 = vpop.permute.xlu0 %3963  ;;  %v4158_v39 = vpop.permute.xlu1 %4157 }
 0xcc9   :  { %4762 = vmatmul.mubr.msk.f32.gmra.mxu0 %vm1538_vm8, %v3964_v38  ;;  %5641 = vmatprep.mubr.msk.f32.mxu1 %vm1538_vm8, %v4158_v39 }
 0xcca   :  { %5642 = vmatmul.mubr.msk.f32.gmra.mxu1 %vm1538_vm8, %v4160_v37  ;;  %4081 = vmatprep.mubr.f32.mxu0 %v5959_v0  ;;  %v4770_v37 = vld [vmem:[%s7295_s16] ss:$0 sm:$0xff] }
 0xccc   :  { %v4164_v7 = vpop.permute.xlu1 %4163  ;;  %v4162_v40 = vpop.permute.xlu0 %4161 }
 0xccd   :  { %4763 = vmatmul.mubr.msk.f32.gmra.mxu0 %vm1538_vm8, %v3966_v36  ;;  %5644 = vmatprep.mubr.msk.f32.mxu1 %vm1538_vm8, %v4162_v40 }
 0xcce   :  { %4087 = vmatprep.mubr.f32.mxu0 %v5959_v0  ;;  %5645 = vmatmul.mubr.msk.f32.gmra.mxu1 %vm1538_vm8, %v4164_v7 }
 0xcd0   :  { %v3970_v41 = vpop.permute.xlu1 %3969  ;;  %v3968_v42 = vpop.permute.xlu0 %3967 }
 0xcd1   :  { %4764 = vmatmul.mubr.msk.f32.gmra.mxu0 %vm1538_vm8, %v3968_v42 }
 0xcd2   :  { %4093 = vmatprep.mubr.f32.mxu0 %v5959_v0 }
 0xcd4   :  { %v4168_v43 = vpop.permute.xlu0 %4167  ;;  %v4166_v44 = vpop.permute.xlu1 %4165 }
 0xcd5   :  { %4765 = vmatmul.mubr.msk.f32.gmra.mxu0 %vm1538_vm8, %v3970_v41  ;;  %5647 = vmatprep.mubr.msk.f32.mxu1 %vm1538_vm8, %v4166_v44 }
 0xcd6   :  { %5648 = vmatmul.mubr.msk.f32.gmra.mxu1 %vm1538_vm8, %v4168_v43  ;;  %4099 = vmatprep.mubr.f32.mxu0 %v5959_v0 }
 0xcd8   :  { %v4172_v45 = vpop.permute.xlu1 %4171  ;;  %v4170_v46 = vpop.permute.xlu0 %4169 }
 0xcd9   :  { %5650 = vmatprep.mubr.msk.f32.mxu1 %vm1538_vm8, %v4170_v46 }
 0xcda   :  { %5651 = vmatmul.mubr.msk.f32.gmra.mxu1 %vm1538_vm8, %v4172_v45 }
 0xcdb   :  { %5655 = vmatprep.mubr.msk.f32.mxu1 %vm1538_vm8, %v4328_v34 }
 0xcdc   :  { %v4334_v47 = vpop.permute.xlu1 %4333  ;;  %v4332_v48 = vpop.permute.xlu0 %4331 }
 0xcde   :  { %5656 = vmatmul.mubr.msk.f32.vlgmr.msra.gmra.mxu1 %vm1538_vm8, %v4330_v32 }
 0xcdf   :  { %5658 = vmatprep.mubr.msk.f32.mxu1 %vm1538_vm8, %v4332_v48 }
 0xce0   :  { %v4336_v49 = vpop.permute.xlu1 %4335  ;;  %v3972_v50 = vpop.permute.xlu0 %3971 }
 0xce1   :  { %4766 = vmatmul.mubr.msk.f32.gmra.mxu0 %vm1538_vm8, %v3972_v50 }
 0xce2   :  { %5659 = vmatmul.mubr.msk.f32.gmra.mxu1 %vm1538_vm8, %v4334_v47  ;;  %4105 = vmatprep.mubr.f32.mxu0 %v5959_v0 }
 0xce3   :  { %5661 = vmatprep.mubr.msk.f32.mxu1 %vm1538_vm8, %v4336_v49 }
 0xce4   :  { %v3974_v51 = vpop.permute.xlu1 %3973  ;;  %v4338_v52 = vpop.permute.xlu0 %4337 }
 0xce5   :  { %4767 = vmatmul.mubr.msk.f32.gmra.mxu0 %vm1538_vm8, %v3974_v51 }
 0xce6   :  { %5662 = vmatmul.mubr.msk.f32.gmra.mxu1 %vm1538_vm8, %v4338_v52  ;;  %4111 = vmatprep.mubr.f32.mxu0 %v5959_v0 }
 0xce8   :  { %v4342_v53 = vpop.permute.xlu1 %4341  ;;  %v4340_v1 = vpop.permute.xlu0 %4339 }
 0xce9   :  { %5664 = vmatprep.mubr.msk.f32.mxu1 %vm1538_vm8, %v4340_v1 }
 0xcea   :  { %5665 = vmatmul.mubr.msk.f32.gmra.mxu1 %vm1538_vm8, %v4342_v53 }
 0xcec   :  { %v4344_v3 = vpop.permute.xlu1 %4343  ;;  %v3976_v54 = vpop.permute.xlu0 %3975 }
 0xced   :  { %4768 = vmatmul.mubr.msk.f32.gmra.mxu0 %vm1538_vm8, %v3976_v54  ;;  %5667 = vmatprep.mubr.msk.f32.mxu1 %vm1538_vm8, %v4344_v3 }
 0xcee   :  { %4117 = vmatprep.mubr.f32.mxu0 %v5959_v0  ;;  %v5632_v0 = vpop.f32.mrf.mxu1 }
 0xcf0   :  { %v3978_v55 = vpop.permute.xlu1 %3977  ;;  %v4346_v56 = vpop.permute.xlu0 %4345 }
 0xcf1   :  { %4769 = vmatmul.mubr.msk.f32.gmra.mxu0 %vm1538_vm8, %v3978_v55  ;;  %5668 = vmatmul.mubr.msk.f32.gmra.mxu1 %vm1538_vm8, %v4346_v56  ;;  %v3910_v21 = vpop.f32.mrf.mxu1 }
 0xcf3   :  { %v5635_v25 = vpop.f32.mrf.mxu1 }
 0xcf5   :  { %v3920_v32 = vpop.f32.mrf.mxu1 }
 0xd09   :  { %v5600_v62 = vpop.f32.mrf.mxu0 }
 0xd0a   :  { %v3886_v2 = vadd.f32 %v5623_v57, %v5600_v62 }
 0xd0b   :  { %v3735_v4 = vpop.f32.mrf.mxu0 }
 0xd0c   :  { %v3937_v11 = vadd.f32 %v4749_v63, %v3886_v2  ;;  %v3881_v12 = vadd.f32 %v3880_v58, %v3735_v4 }
 0xd0d   :  { %v5603_v13 = vpop.f32.mrf.mxu0 }
 0xd0e   :  { %4751 = vst.msk [vmem:[%s7298_s19 + $0x58] sm:$0xff] %vm1846_vm9, %v3937_v11  ;;  %v3936_v14 = vadd.f32 %v4749_v63, %v3881_v12  ;;  %v3896_v15 = vadd.f32 %v5626_v59, %v5603_v13 }
 0xd0f   :  { %v3745_v17 = vpop.f32.mrf.mxu0 }
 0xd10   :  { %4750 = vst.msk [vmem:[%s7298_s19 + $0x50] sm:$0xff] %vm1846_vm9, %v3936_v14  ;;  %v3939_v18 = vadd.f32 %v4749_v63, %v3896_v15  ;;  %v3891_v19 = vadd.f32 %v3890_v60, %v3745_v17 }
 0xd11   :  { %v5606_v20 = vpop.f32.mrf.mxu0 }
 0xd12   :  { %4753 = vst.msk [vmem:[%s7298_s19 + $0x68] sm:$0xff] %vm1846_vm9, %v3939_v18  ;;  %v3938_v22 = vadd.f32 %v4749_v63, %v3891_v19  ;;  %v3906_v16 = vadd.f32 %v5629_v61, %v5606_v20 }
 0xd13   :  { %v3755_v6 = vpop.f32.mrf.mxu0 }
 0xd14   :  { %4752 = vst.msk [vmem:[%s7298_s19 + $0x60] sm:$0xff] %vm1846_vm9, %v3938_v22  ;;  %v3941_v23 = vadd.f32 %v4749_v63, %v3906_v16  ;;  %v3901_v5 = vadd.f32 %v3900_v9, %v3755_v6  ;;  %v4791_v9 = vld [vmem:[%s7297_s18] ss:$0 sm:$0xff] }
 0xd15   :  { %v5609_v24 = vpop.f32.mrf.mxu0 }
 0xd16   :  { %4755 = vst.msk [vmem:[%s7298_s19 + $0x78] sm:$0xff] %vm1846_vm9, %v3941_v23  ;;  %v3940_v26 = vadd.f32 %v4749_v63, %v3901_v5  ;;  %v3916_v27 = vadd.f32 %v5632_v0, %v5609_v24 }
 0xd17   :  { %v3765_v28 = vpop.f32.mrf.mxu0 }
 0xd18   :  { %4754 = vst.msk [vmem:[%s7298_s19 + $0x70] sm:$0xff] %vm1846_vm9, %v3940_v26  ;;  %v3943_v29 = vadd.f32 %v4749_v63, %v3916_v27  ;;  %v3911_v30 = vadd.f32 %v3910_v21, %v3765_v28 }
 0xd19   :  { %v5612_v31 = vpop.f32.mrf.mxu0 }
 0xd1a   :  { %4757 = vst.msk [vmem:[%s7298_s19 + $0x88] sm:$0xff] %vm1846_vm9, %v3943_v29  ;;  %v3942_v10 = vadd.f32 %v4749_v63, %v3911_v30  ;;  %v3926_v33 = vadd.f32 %v5635_v25, %v5612_v31 }
 0xd1b   :  { %v3775_v8 = vpop.f32.mrf.mxu0 }
 0xd1c   :  { %4756 = vst.msk [vmem:[%s7298_s19 + $0x80] sm:$0xff] %vm1846_vm9, %v3942_v10  ;;  %v3945_v34 = vadd.f32 %v4749_v63, %v3926_v33  ;;  %v3921_v35 = vadd.f32 %v3920_v32, %v3775_v8 }
 0xd1e   :  { %4759 = vst.msk [vmem:[%s7298_s19 + $0x98] sm:$0xff] %vm1846_vm9, %v3945_v34  ;;  %v3944_v36 = vadd.f32 %v4749_v63, %v3921_v35 }
 0xd20   :  { %4758 = vst.msk [vmem:[%s7298_s19 + $0x90] sm:$0xff] %vm1846_vm9, %v3944_v36 }
 0xd7e   :  { %v5640_v38 = vpop.f32.mrf.mxu1 }
 0xd7f   :  { %v4265_v39 = vadd.f32 %v5640_v38, %v4770_v37 }
 0xd80   :  { %v4259_v7 = vpop.f32.mrf.mxu1 }
 0xd81   :  { %4782 = vst.msk [vmem:[%s7300_s21 + $0x58] sm:$0xff] %vm1846_vm9, %v4265_v39  ;;  %v4260_v40 = vadd.f32 %v4770_v37, %v4259_v7  ;;  %v4065_v41 = vpop.f32.mrf.mxu0 }
 0xd82   :  { %4125 = vst [vmem:[#allocation19 + $0xa0] sm:$0xff] %v4065_v41 }
 0xd83   :  { %4781 = vst.msk [vmem:[%s7300_s21 + $0x50] sm:$0xff] %vm1846_vm9, %v4260_v40  ;;  %v4067_v42 = vpop.f32.mrf.mxu0 }
 0xd84   :  { %4126 = vst.msk [vmem:[#allocation19 + $0xa8] sm:$0xff] %vm1846_vm9, %v4067_v42 }
 0xd85   :  { %v4071_v43 = vpop.f32.mrf.mxu0 }
 0xd86   :  { %4127 = vst [vmem:[#allocation19 + $0xb0] sm:$0xff] %v4071_v43 }
 0xd87   :  { %v4073_v44 = vpop.f32.mrf.mxu0 }
 0xd88   :  { %4128 = vst.msk [vmem:[#allocation19 + $0xb8] sm:$0xff] %vm1846_vm9, %v4073_v44 }
 0xd89   :  { %v4077_v45 = vpop.f32.mrf.mxu0 }
 0xd8a   :  { %4129 = vst [vmem:[#allocation19 + $0xc0] sm:$0xff] %v4077_v45  ;;  %v5643_v46 = vpop.f32.mrf.mxu1 }
 0xd8b   :  { %v4275_v47 = vadd.f32 %v5643_v46, %v4770_v37  ;;  %v4079_v48 = vpop.f32.mrf.mxu0 }
 0xd8c   :  { %4130 = vst.msk [vmem:[#allocation19 + $0xc8] sm:$0xff] %vm1846_vm9, %v4079_v48  ;;  %v4269_v49 = vpop.f32.mrf.mxu1 }
 0xd8d   :  { %4784 = vst.msk [vmem:[%s7300_s21 + $0x68] sm:$0xff] %vm1846_vm9, %v4275_v47  ;;  %v4270_v50 = vadd.f32 %v4770_v37, %v4269_v49  ;;  %v4083_v51 = vpop.f32.mrf.mxu0 }
 0xd8e   :  { %4131 = vst [vmem:[#allocation19 + $0xd0] sm:$0xff] %v4083_v51  ;;  %v5646_v52 = vpop.f32.mrf.mxu1 }
 0xd8f   :  { %4783 = vst.msk [vmem:[%s7300_s21 + $0x60] sm:$0xff] %vm1846_vm9, %v4270_v50  ;;  %v4085_v53 = vpop.f32.mrf.mxu0  ;;  %v4285_v1 = vadd.f32 %v5646_v52, %v4770_v37 }
 0xd90   :  { %4132 = vst.msk [vmem:[#allocation19 + $0xd8] sm:$0xff] %vm1846_vm9, %v4085_v53  ;;  %v4279_v3 = vpop.f32.mrf.mxu1 }
 0xd91   :  { %4786 = vst.msk [vmem:[%s7300_s21 + $0x78] sm:$0xff] %vm1846_vm9, %v4285_v1  ;;  %v4089_v54 = vpop.f32.mrf.mxu0  ;;  %v4280_v55 = vadd.f32 %v4770_v37, %v4279_v3 }
 0xd92   :  { %4133 = vst [vmem:[#allocation19 + $0xe0] sm:$0xff] %v4089_v54 }
 0xd93   :  { %4785 = vst.msk [vmem:[%s7300_s21 + $0x70] sm:$0xff] %vm1846_vm9, %v4280_v55  ;;  %v4091_v56 = vpop.f32.mrf.mxu0 }
 0xd94   :  { %4134 = vst.msk [vmem:[#allocation19 + $0xe8] sm:$0xff] %vm1846_vm9, %v4091_v56 }
 0xd95   :  { %v4095_v57 = vpop.f32.mrf.mxu0 }
 0xd96   :  { %4135 = vst [vmem:[#allocation19 + $0xf0] sm:$0xff] %v4095_v57  ;;  %v5649_v58 = vpop.f32.mrf.mxu1 }
 0xd97   :  { %v4295_v59 = vadd.f32 %v5649_v58, %v4770_v37  ;;  %v4097_v60 = vpop.f32.mrf.mxu0 }
 0xd98   :  { %4136 = vst.msk [vmem:[#allocation19 + $0xf8] sm:$0xff] %vm1846_vm9, %v4097_v60  ;;  %v4289_v61 = vpop.f32.mrf.mxu1 }
 0xd99   :  { %4788 = vst.msk [vmem:[%s7300_s21 + $0x88] sm:$0xff] %vm1846_vm9, %v4295_v59  ;;  %v4290_v62 = vadd.f32 %v4770_v37, %v4289_v61 }
 0xd9a   :  { %v5652_v63 = vpop.f32.mrf.mxu1 }
 0xd9b   :  { %4787 = vst.msk [vmem:[%s7300_s21 + $0x80] sm:$0xff] %vm1846_vm9, %v4290_v62  ;;  %v4305_v2 = vadd.f32 %v5652_v63, %v4770_v37 }
 0xd9c   :  { %v4299_v4 = vpop.f32.mrf.mxu1 }
 0xd9d   :  { %4790 = vst.msk [vmem:[%s7300_s21 + $0x98] sm:$0xff] %vm1846_vm9, %v4305_v2  ;;  %v4300_v11 = vadd.f32 %v4770_v37, %v4299_v4 }
 0xd9e   :  { %v5657_v12 = vpop.f32.mrf.mxu1 }
 0xd9f   :  { %4789 = vst.msk [vmem:[%s7300_s21 + $0x90] sm:$0xff] %vm1846_vm9, %v4300_v11  ;;  %v4439_v13 = vadd.f32 %v5657_v12, %v4791_v9 }
 0xda0   :  { %v4433_v0 = vpop.f32.mrf.mxu1 }
 0xda1   :  { %4803 = vst.msk [vmem:[%s7301_s22 + $0x58] sm:$0xff] %vm1846_vm9, %v4439_v13  ;;  %v4434_v14 = vadd.f32 %v4791_v9, %v4433_v0  ;;  %v4101_v15 = vpop.f32.mrf.mxu0 }
 0xda2   :  { %4137 = vst [vmem:[#allocation19 + $0x100] sm:$0xff] %v4101_v15  ;;  %v5660_v17 = vpop.f32.mrf.mxu1 }
 0xda3   :  { %4802 = vst.msk [vmem:[%s7301_s22 + $0x50] sm:$0xff] %vm1846_vm9, %v4434_v14  ;;  %v4449_v18 = vadd.f32 %v5660_v17, %v4791_v9  ;;  %v4103_v19 = vpop.f32.mrf.mxu0 }
 0xda4   :  { %4138 = vst.msk [vmem:[#allocation19 + $0x108] sm:$0xff] %vm1846_vm9, %v4103_v19  ;;  %v4443_v20 = vpop.f32.mrf.mxu1 }
 0xda5   :  { %4805 = vst.msk [vmem:[%s7301_s22 + $0x68] sm:$0xff] %vm1846_vm9, %v4449_v18  ;;  %v4444_v21 = vadd.f32 %v4791_v9, %v4443_v20  ;;  %v4107_v22 = vpop.f32.mrf.mxu0 }
 0xda6   :  { %4139 = vst [vmem:[#allocation19 + $0x110] sm:$0xff] %v4107_v22  ;;  %v5663_v16 = vpop.f32.mrf.mxu1 }
 0xda7   :  { %4804 = vst.msk [vmem:[%s7301_s22 + $0x60] sm:$0xff] %vm1846_vm9, %v4444_v21  ;;  %v4459_v6 = vadd.f32 %v5663_v16, %v4791_v9  ;;  %v4109_v23 = vpop.f32.mrf.mxu0 }
 0xda8   :  { %4140 = vst.msk [vmem:[#allocation19 + $0x118] sm:$0xff] %vm1846_vm9, %v4109_v23  ;;  %v4453_v5 = vpop.f32.mrf.mxu1 }
 0xda9   :  { %4807 = vst.msk [vmem:[%s7301_s22 + $0x78] sm:$0xff] %vm1846_vm9, %v4459_v6  ;;  %v4454_v24 = vadd.f32 %v4791_v9, %v4453_v5 }
 0xdaa   :  { %v5666_v25 = vpop.f32.mrf.mxu1 }
 0xdab   :  { %4806 = vst.msk [vmem:[%s7301_s22 + $0x70] sm:$0xff] %vm1846_vm9, %v4454_v24  ;;  %v4469_v26 = vadd.f32 %v5666_v25, %v4791_v9 }
 0xdac   :  { %v4463_v27 = vpop.f32.mrf.mxu1 }
 0xdad   :  { %4809 = vst.msk [vmem:[%s7301_s22 + $0x88] sm:$0xff] %vm1846_vm9, %v4469_v26  ;;  %v4464_v28 = vadd.f32 %v4791_v9, %v4463_v27  ;;  %v4113_v29 = vpop.f32.mrf.mxu0 }
 0xdae   :  { %4141 = vst [vmem:[#allocation19 + $0x120] sm:$0xff] %v4113_v29 }
 0xdaf   :  { %4808 = vst.msk [vmem:[%s7301_s22 + $0x80] sm:$0xff] %vm1846_vm9, %v4464_v28  ;;  %v4115_v30 = vpop.f32.mrf.mxu0 }
 0xdb0   :  { %4142 = vst.msk [vmem:[#allocation19 + $0x128] sm:$0xff] %vm1846_vm9, %v4115_v30 }
 0xdb1   :  { %v4119_v31 = vpop.f32.mrf.mxu0  ;;  %v5669_v32 = vpop.f32.mrf.mxu1 }
 0xdb2   :  { %4143 = vst [vmem:[#allocation19 + $0x130] sm:$0xff] %v4119_v31  ;;  %v4479_v10 = vadd.f32 %v5669_v32, %v4791_v9 }
 0xdb3   :  { %v4121_v33 = vpop.f32.mrf.mxu0  ;;  %v4473_v8 = vpop.f32.mrf.mxu1 }
 0xdb4   :  { %4811 = vst.msk [vmem:[%s7301_s22 + $0x98] sm:$0xff] %vm1846_vm9, %v4479_v10  ;;  %4144 = vst.msk [vmem:[#allocation19 + $0x138] sm:$0xff] %vm1846_vm9, %v4121_v33  ;;  %v4474_v34 = vadd.f32 %v4791_v9, %v4473_v8 }
 0xdb5   :  { %5922 = shalt.err (!%p5919_p12)
}
 0xdb6   :  { %s5965_s25 = smov 256   ;;  %4810 = vst.msk [vmem:[%s7301_s22 + $0x90] sm:$0xff] %vm1846_vm9, %v4474_v34 }
 0xdb7   :  { %4506 = dma.vmem_to_hbm [thread:$0]  %s4501_s5, 5120, %s7299_s20, [#allocation4], %s5965_s25, %s5965_s25, %s5946_s30  }
 0xdb8   :  { %5943 = dma.done.wait [#allocation4], 5120  }
 0xdb9   :  { %5944 = vsyncadd [#allocation4], 4294962176 }
 0xdba   :  { %4520 = vsyncpa [#allocation3], 1 }
 0xdbb   :  { %4521 = vsyncpa [#allocation6], 1 }
 0xdbc   :  { %4522 = vsyncpa [#allocation9], 1 }
 0xdbd   :  { %4523 = vsyncpa [#allocation12], 1 }
 0xdbe   :  { %4524 = vsyncpa [#allocation15], 1 }
 0xdbf   :  { %4525 = vsyncpa [#allocation18], 1 }
 0xdc0   :  { %4526 = vsyncpa [#allocation4], 1 }

</bundles_post_ra>
